<compile_context>
chip_gen: v7x
topology: tpu7x:2x2x1
jax: 0.10.0
libtpu: 0.0.40
codegen_flags: <defaults>
</compile_context>

<pallas_src>
import numpy as np
import jax
import jax.numpy as jnp
from jax.experimental import pallas as pl
from jax.experimental.pallas import tpu as pltpu

VMEM = pltpu.MemorySpace.VMEM

# ---------------- model hyper-params (small, deterministic, synthetic) ------------
B = 2
IN_CHANS = 3
IMG = 16            # input spatial size (NCHW: (B, 3, 16, 16))
STEM = 8            # stem_size (round_chs_fn applied -> 8)
IN_CHS = 8          # FCB block in_chs (== stem output)
OUT_CHS = 8         # FCB block out_chs (== in_chs, stride 1 -> has_skip -> fourier path)
MID = 16            # make_divisible(in_chs * exp_ratio * 1.25) with exp_ratio = 1.6
DW_K = 7            # depthwise conv kernel size in the fourier block
FF_K = 7            # FourierFilter kernel_size
NUM_FEATURES = 32   # conv_head output features
NUM_CLASSES = 10
BN_EPS = 1e-5

HO = IMG // 2            # 8 (stem stride 2)
WO = IMG // 2            # 8
WF = WO // 2 + 1         # 5  (rfft2 width)
HW = HO * WO             # 64 spatial positions per image
M = B * HW               # 128 = lane dimension used throughout the fused kernel
NFR = HO * WF            # 40 frequency bins per image
K_STEM = 3 * 3 * IN_CHANS      # 27
K_STEM_PAD = 32

# The whole layout scheme hard-codes a single 128-lane tile.
assert B * HW == M and M <= 128, "layout hard-codes B*H*W == 128 lanes"
assert B * NFR <= M


# ============================== the fused Pallas kernel ============================

def fused_forward_kernel(
    patches_ref,      # (K_STEM_PAD, M) bf16   im2col'd stem input (K x B*H*W)
    stem_w_ref,       # (STEM, K_STEM_PAD) bf16  stem weight^T, BN1 scale folded
    stem_shift_ref,   # (STEM, 1) f32
    pw_w_ref,         # (2*MID, STEM) bf16       conv_pw weight^T, BN scale folded
    pw_shift_ref,     # (2*MID, 1) f32
    dw_w_ref,         # (MID, 49) f32            depthwise taps, bn2 scale folded
    dw_mask_ref,      # (49, M) f32              per-tap valid-lane masks (zero-pad edges)
    fri_hbm_ref,      # (M, 2M) bf16  [ANY]      fused rfft2 matrix [FR | FI]
    wr1_ref,          # (MID, M) f32             1 + scattered real FourierFilter weight
    wi_ref,           # (MID, M) f32             scattered imag FourierFilter weight
    bri_hbm_ref,      # (2M, M) bf16  [ANY]      fused irfft2 matrix [BR ; BI]
    bn2_shift_ref,    # (MID, 1) f32
    pwl_w_ref,        # (OUT_CHS, MID) bf16      conv_pwl weight^T (no bias in module)
    pool_ref,         # (B, M) bf16              global-average-pooling matrix
    head_w_ref,       # (OUT_CHS, NUM_FEATURES) bf16
    head_b_ref,       # (1, NUM_FEATURES) f32
    cls_w_ref,        # (NUM_FEATURES, NUM_CLASSES) bf16
    cls_b_ref,        # (1, NUM_CLASSES) f32
    out_ref,          # (B, NUM_CLASSES) f32
    fri_vmem,         # scratch (M, 2M) bf16
    bri_vmem,         # scratch (2M, M) bf16
    dma_sem,          # scratch DMA semaphores (2,)
):
    f32 = jnp.float32
    bf16 = jnp.bfloat16

    # ---- kick off the DFT-table DMAs first so they overlap stem/conv_pw/conv_dw ----
    fri_cp = pltpu.make_async_copy(fri_hbm_ref, fri_vmem, dma_sem.at[0])
    bri_cp = pltpu.make_async_copy(bri_hbm_ref, bri_vmem, dma_sem.at[1])
    fri_cp.start()
    bri_cp.start()

    # ---- stem: 3x3 s2 conv (im2col outside) + BN1 + ReLU.  layout: (C, B*H*W) ----
    s = jnp.dot(stem_w_ref[...], patches_ref[...], preferred_element_type=f32)
    s = jnp.maximum(s + stem_shift_ref[...], 0.0)                     # (STEM, M)
    shortcut = s

    # ---- FCB block: conv_pw (1x1 -> 2*MID) + BN1 + ReLU ----
    y = jnp.dot(pw_w_ref[...], s.astype(bf16), preferred_element_type=f32)
    y = jnp.maximum(y + pw_shift_ref[...], 0.0)                       # (2*MID, M)
    x1 = y[:MID, :]                                                   # chunk(2, channel)
    x2 = y[MID:, :]

    # ---- conv_dw: depthwise 7x7 (stride 1, pad 3) as 49 shifted-window FMAs ----
    # rolled[c, lane] = x1[c, lane + s_off]; per-tap mask zeroes lanes whose source
    # falls outside the 8x8 image (also kills any cross-batch-block wraparound).
    ctr = (DW_K // 2) * DW_K + DW_K // 2                              # center tap (0,0)
    d1 = x1 * dw_w_ref[:, ctr:ctr + 1]
    for ky in range(DW_K):
        for kx in range(DW_K):
            t = ky * DW_K + kx
            if t == ctr:
                continue
            s_off = (ky - DW_K // 2) * WO + (kx - DW_K // 2)
            rolled = pltpu.roll(x1, shift=(-s_off) % M, axis=1)
            d1 = d1 + (rolled * dw_mask_ref[t:t + 1, :]) * dw_w_ref[:, t:t + 1]

    # ---- FourierFilter: rfft2 -> x*(1+w) -> irfft2 as 2 fused bf16 DFT matmuls ----
    # TODO(synk): Pallas has no FFT primitive; rfft2/irfft2 are realised as precomputed
    #             DFT-matrix matmuls (matrices built once at init with numpy fft).
    fri_cp.wait()
    xri = jnp.dot(x2.astype(bf16), fri_vmem[...], preferred_element_type=f32)  # (MID, 2M)
    xr = xri[:, :M]
    xi = xri[:, M:]
    yr = xr * wr1_ref[...] - xi * wi_ref[...]                         # (1 + w) folded at init
    yi = xr * wi_ref[...] + xi * wr1_ref[...]
    yri = jnp.concatenate([yr.astype(bf16), yi.astype(bf16)], axis=1)  # (MID, 2M)
    bri_cp.wait()
    d2 = jnp.dot(yri, bri_vmem[...], preferred_element_type=f32)      # (MID, M)

    # ---- x1 * x2 -> BN2 (scale folded into dw taps) -> ReLU (se = Identity) ----
    z = jnp.maximum(d1 * d2 + bn2_shift_ref[...], 0.0)                # (MID, M)

    # ---- conv_pwl (1x1 -> OUT_CHS), bn3 = Identity, drop_path(0) + shortcut ----
    o = jnp.dot(pwl_w_ref[...], z.astype(bf16), preferred_element_type=f32)
    o = o + shortcut                                                  # (OUT_CHS, M)

    # ---- head: global avg pool (MXU matmul), conv_head + ReLU, classifier ----
    pooled = jax.lax.dot_general(pool_ref[...], o.astype(bf16),
                                 (((1,), (1,)), ((), ())),
                                 preferred_element_type=f32)          # (B, OUT_CHS)
    h = jnp.dot(pooled.astype(bf16), head_w_ref[...], preferred_element_type=f32)
    h = jnp.maximum(h + head_b_ref[...], 0.0)                         # (B, NUM_FEATURES)
    logits = jnp.dot(h.astype(bf16), cls_w_ref[...], preferred_element_type=f32)
    out_ref[...] = logits + cls_b_ref[...]                            # (B, NUM_CLASSES)


# ============================== parameter setup (glue, init-time only) =============

def bn_params(c):
    # _init_weights: BN weight=1, bias=0; fresh running stats mean=0, var=1.
    return dict(gamma=jnp.ones((c,), jnp.float32), beta=jnp.zeros((c,), jnp.float32),
                mean=jnp.zeros((c,), jnp.float32), var=jnp.ones((c,), jnp.float32))


def fold_bn(conv_bias, bn):
    """Fold BatchNorm (inference) and conv bias into a per-channel scale/shift."""
    scale = bn['gamma'] / jnp.sqrt(bn['var'] + BN_EPS)
    b = conv_bias if conv_bias is not None else jnp.zeros_like(bn['beta'])
    shift = bn['beta'] + (b - bn['mean']) * scale
    return scale, shift


def fourier_full_weight(cw, H, Wf, ksize=FF_K):
    """Replicates FourierFilter.get_mask + masked_scatter: place the (C, k, k//2+1)
    complex weight into a zero (C, H, Wf) frequency-domain grid, row-major per channel."""
    C = cw.shape[0]
    ix = np.minimum(np.arange(H, dtype=np.float64) + 0.1,
                    np.arange(H, 0, -1, dtype=np.float64))
    iy = np.arange(Wf, dtype=np.float64)
    mask = np.maximum(ix[:, None], iy[None, :]) < (ksize / 2 + 0.1)
    pos = np.argwhere(mask)                       # row-major True positions
    assert pos.shape[0] == ksize * (ksize // 2 + 1), "spatial size too small for FourierFilter"
    wr = np.zeros((C, H, Wf), np.float32)
    wi = np.zeros((C, H, Wf), np.float32)
    wr[:, pos[:, 0], pos[:, 1]] = cw[..., 0].reshape(C, -1)
    wi[:, pos[:, 0], pos[:, 1]] = cw[..., 1].reshape(C, -1)
    return wr, wi


def dft_matrices():
    """Fused right-multiplication matrices implementing rfft2 / irfft2 (norm='ortho')
    on row-major flattened 8x8 spatial blocks, block-diagonal over the batch blocks of
    the lane axis:  [FR | FI]  (M, 2M)  and  [BR ; BI]  (2M, M), stored in bf16."""
    eye_sp = np.eye(HW, dtype=np.float64).reshape(HW, HO, WO)
    F = np.fft.rfft2(eye_sp, norm='ortho')                            # (HW, HO, WF) complex
    FRt = np.real(F).reshape(HW, NFR).astype(np.float32)
    FIt = np.imag(F).reshape(HW, NFR).astype(np.float32)
    eye_fr = np.eye(NFR, dtype=np.complex128).reshape(NFR, HO, WF)
    BRt = np.fft.irfft2(eye_fr, s=(HO, WO), norm='ortho').reshape(NFR, HW).astype(np.float32)
    BIt = np.fft.irfft2(1j * eye_fr, s=(HO, WO), norm='ortho').reshape(NFR, HW).astype(np.float32)
    FRI = np.zeros((M, 2 * M), np.float32)
    BRI = np.zeros((2 * M, M), np.float32)
    for b in range(B):
        sp = slice(b * HW, (b + 1) * HW)
        fq = slice(b * NFR, (b + 1) * NFR)
        FRI[sp, fq] = FRt
        FRI[sp, M + b * NFR:M + (b + 1) * NFR] = FIt
        BRI[fq, sp] = BRt
        BRI[M + b * NFR:M + (b + 1) * NFR, sp] = BIt
    return jnp.asarray(FRI, jnp.bfloat16), jnp.asarray(BRI, jnp.bfloat16)


def dw_masks():
    """(49, M) per-tap validity masks for the shifted-window depthwise conv."""
    oy, ox = np.meshgrid(np.arange(HO), np.arange(WO), indexing='ij')
    masks = np.zeros((DW_K * DW_K, M), np.float32)
    for ky in range(DW_K):
        for kx in range(DW_K):
            dy, dx = ky - DW_K // 2, kx - DW_K // 2
            valid = ((oy + dy >= 0) & (oy + dy < HO) &
                     (ox + dx >= 0) & (ox + dx < WO)).astype(np.float32).reshape(HW)
            masks[ky * DW_K + kx] = np.tile(valid, B)
    return jnp.asarray(masks)


def init_params(key):
    ks = jax.random.split(key, 8)

    def w(k, shape, std=0.02):
        # trunc_normal_(std=0.02) approximated with plain normal (deterministic, synthetic)
        return jax.random.normal(k, shape, jnp.float32) * std

    # ---- raw module parameters (biases are zero per _init_weights) ----
    stem_w = w(ks[0], (K_STEM, STEM))                        # conv_stem (im2col layout)
    pw_w = w(ks[1], (IN_CHS, 2 * MID))                       # conv_pw 1x1
    dw_w = w(ks[2], (MID, DW_K * DW_K))                      # depthwise 7x7, no bias
    fourier_cw = jax.random.normal(ks[3], (MID, FF_K, FF_K // 2 + 1, 2), jnp.float32) * 0.2
    pwl_w = w(ks[4], (MID, OUT_CHS))                         # conv_pwl 1x1 (no bias)
    head_w = w(ks[5], (OUT_CHS, NUM_FEATURES))               # conv_head 1x1 (bias = 0)
    cls_w = w(ks[6], (NUM_FEATURES, NUM_CLASSES))            # classifier (bias = 0)

    bn1, bn_pw, bn2 = bn_params(STEM), bn_params(2 * MID), bn_params(MID)

    # ---- fold BN scale into the weight columns; keep shifts as (C, 1) columns ----
    s_stem, t_stem = fold_bn(None, bn1)
    s_pw, t_pw = fold_bn(None, bn_pw)
    s_bn2, t_bn2 = fold_bn(None, bn2)

    stem_wt = jnp.pad((stem_w * s_stem[None, :]).T, ((0, 0), (0, K_STEM_PAD - K_STEM)))
    pw_wt = (pw_w * s_pw[None, :]).T

    # ---- FourierFilter: scattered complex weight (with the "+1" folded in) ----
    FRI, BRI = dft_matrices()
    wr, wi = fourier_full_weight(np.asarray(fourier_cw), HO, WF)      # (MID, HO, WF)
    wr1_full = np.ones((MID, M), np.float32)     # 1 + wr ; padding lanes stay 1 (x is 0 there)
    wi_full = np.zeros((MID, M), np.float32)
    for b in range(B):
        wr1_full[:, b * NFR:(b + 1) * NFR] = 1.0 + wr.reshape(MID, NFR)
        wi_full[:, b * NFR:(b + 1) * NFR] = wi.reshape(MID, NFR)

    # ---- global average pooling as an MXU matmul (1/64 is exact in bf16) ----
    pool = np.zeros((B, M), np.float32)
    for b in range(B):
        pool[b, b * HW:(b + 1) * HW] = 1.0 / HW

    return dict(
        stem_wt=stem_wt.astype(jnp.bfloat16),
        stem_shift=t_stem.reshape(STEM, 1),
        pw_wt=pw_wt.astype(jnp.bfloat16),
        pw_shift=t_pw.reshape(2 * MID, 1),
        dw_w=dw_w * s_bn2[:, None],               # bn2 scale folded into the taps
        dw_mask=dw_masks(),
        fri=FRI, bri=BRI,
        ff_wr1=jnp.asarray(wr1_full), ff_wi=jnp.asarray(wi_full),
        bn2_shift=t_bn2.reshape(MID, 1),
        pwl_wt=pwl_w.T.astype(jnp.bfloat16),
        pool=jnp.asarray(pool, jnp.bfloat16),
        head_w=head_w.astype(jnp.bfloat16),
        head_b=jnp.zeros((1, NUM_FEATURES), jnp.float32),
        cls_w=cls_w.astype(jnp.bfloat16),
        cls_b=jnp.zeros((1, NUM_CLASSES), jnp.float32),
    )


# ============================== forward pass =======================================

@jax.jit
def forward(x_nchw, p):
    # stride-2 3x3 im2col for the stem (one-shot XLA glue); everything else is one
    # fused pallas_call with all intermediates VMEM-resident.
    x = jnp.transpose(x_nchw, (0, 2, 3, 1)).astype(jnp.float32)       # NCHW -> NHWC
    xp = jnp.pad(x, ((0, 0), (1, 1), (1, 1), (0, 0)))
    taps = [xp[:, ky:ky + 2 * HO:2, kx:kx + 2 * WO:2, :]
            for ky in range(3) for kx in range(3)]
    patches = jnp.concatenate(taps, axis=-1).reshape(B * HW, K_STEM)  # (M, 27)
    patches_t = jnp.pad(patches.T, ((0, K_STEM_PAD - K_STEM), (0, 0)))
    patches_t = patches_t.astype(jnp.bfloat16)                        # (32, M)

    args = (patches_t,
            p['stem_wt'], p['stem_shift'],
            p['pw_wt'], p['pw_shift'],
            p['dw_w'], p['dw_mask'],
            p['fri'], p['ff_wr1'], p['ff_wi'], p['bri'],
            p['bn2_shift'],
            p['pwl_wt'],
            p['pool'],
            p['head_w'], p['head_b'], p['cls_w'], p['cls_b'])

    in_specs = [pl.BlockSpec(memory_space=VMEM)] * len(args)
    in_specs[7] = pl.BlockSpec(memory_space=pl.ANY)    # fri -> manual DMA (overlapped)
    in_specs[10] = pl.BlockSpec(memory_space=pl.ANY)   # bri -> manual DMA (overlapped)

    return pl.pallas_call(
        fused_forward_kernel,
        out_shape=jax.ShapeDtypeStruct((B, NUM_CLASSES), jnp.float32),
        in_specs=in_specs,
        out_specs=pl.BlockSpec(memory_space=VMEM),
        scratch_shapes=[pltpu.VMEM((M, 2 * M), jnp.bfloat16),
                        pltpu.VMEM((2 * M, M), jnp.bfloat16),
                        pltpu.SemaphoreType.DMA((2,))],
    )(*args)


# ============================== driver =============================================

if __name__ == "__main__":
    key = jax.random.PRNGKey(0)
    pkey, xkey = jax.random.split(key)
    params = init_params(pkey)
    x = jax.random.normal(xkey, (B, IN_CHANS, IMG, IMG), jnp.float32)

    logits = forward(x, params)
    jax.block_until_ready(logits)

    assert logits.shape == (B, NUM_CLASSES), logits.shape
    assert bool(jnp.all(jnp.isfinite(logits)))
    print("KERNEL_OK")
</pallas_src>

<mosaic_0001>
module attributes {stable_mosaic.version = 11 : i64} {
  func.func @fused_forward_kernel(%arg0: memref<32x128xbf16, #tpu.memory_space<vmem>>, %arg1: memref<8x32xbf16, #tpu.memory_space<vmem>>, %arg2: memref<8x1xf32, #tpu.memory_space<vmem>>, %arg3: memref<32x8xbf16, #tpu.memory_space<vmem>>, %arg4: memref<32x1xf32, #tpu.memory_space<vmem>>, %arg5: memref<16x49xf32, #tpu.memory_space<vmem>>, %arg6: memref<49x128xf32, #tpu.memory_space<vmem>>, %arg7: memref<128x256xbf16, #tpu.memory_space<any>>, %arg8: memref<16x128xf32, #tpu.memory_space<vmem>>, %arg9: memref<16x128xf32, #tpu.memory_space<vmem>>, %arg10: memref<256x128xbf16, #tpu.memory_space<any>>, %arg11: memref<16x1xf32, #tpu.memory_space<vmem>>, %arg12: memref<8x16xbf16, #tpu.memory_space<vmem>>, %arg13: memref<2x128xbf16, #tpu.memory_space<vmem>>, %arg14: memref<8x32xbf16, #tpu.memory_space<vmem>>, %arg15: memref<1x32xf32, #tpu.memory_space<vmem>>, %arg16: memref<32x10xbf16, #tpu.memory_space<vmem>>, %arg17: memref<1x10xf32, #tpu.memory_space<vmem>>, %arg18: memref<2x10xf32, #tpu.memory_space<vmem>>, %arg19: memref<128x256xbf16, #tpu.memory_space<vmem>>, %arg20: memref<256x128xbf16, #tpu.memory_space<vmem>>, %arg21: memref<2x!tpu.dma_semaphore, #tpu.memory_space<semaphore_mem>>) attributes {dimension_semantics = [], scalar_prefetch = 0 : i64, scratch_operands = 3 : i64, tpu.core_type = #tpu.core_type<tc>} {
    %c0_i32 = arith.constant 0 : i32
    %0 = tpu.memref_slice %arg21[%c0_i32] : memref<2x!tpu.dma_semaphore, #tpu.memory_space<semaphore_mem>> -> memref<1x!tpu.dma_semaphore, #tpu.memory_space<semaphore_mem>>
    %1 = tpu.memref_squeeze %0 : memref<1x!tpu.dma_semaphore, #tpu.memory_space<semaphore_mem>> -> memref<!tpu.dma_semaphore, #tpu.memory_space<semaphore_mem>>
    tpu.enqueue_dma source(%arg7 : memref<128x256xbf16, #tpu.memory_space<any>>) target(%arg19 : memref<128x256xbf16, #tpu.memory_space<vmem>>) target_semaphore(%1 : memref<!tpu.dma_semaphore, #tpu.memory_space<semaphore_mem>>)
    %c1_i32 = arith.constant 1 : i32
    %2 = tpu.memref_slice %arg21[%c1_i32] : memref<2x!tpu.dma_semaphore, #tpu.memory_space<semaphore_mem>> -> memref<1x!tpu.dma_semaphore, #tpu.memory_space<semaphore_mem>>
    %3 = tpu.memref_squeeze %2 : memref<1x!tpu.dma_semaphore, #tpu.memory_space<semaphore_mem>> -> memref<!tpu.dma_semaphore, #tpu.memory_space<semaphore_mem>>
    tpu.enqueue_dma source(%arg10 : memref<256x128xbf16, #tpu.memory_space<any>>) target(%arg20 : memref<256x128xbf16, #tpu.memory_space<vmem>>) target_semaphore(%3 : memref<!tpu.dma_semaphore, #tpu.memory_space<semaphore_mem>>)
    %c0 = arith.constant 0 : index
    %c0_0 = arith.constant 0 : index
    %4 = vector.load %arg1[%c0, %c0_0] : memref<8x32xbf16, #tpu.memory_space<vmem>>, vector<8x32xbf16>
    %c0_1 = arith.constant 0 : index
    %c0_2 = arith.constant 0 : index
    %5 = vector.load %arg0[%c0_1, %c0_2] : memref<32x128xbf16, #tpu.memory_space<vmem>>, vector<32x128xbf16>
    %cst = arith.constant dense<0.000000e+00> : vector<8x128xf32>
    %6 = tpu.matmul %4, %5, %cst {dimension_numbers = #tpu.dot_dimension_numbers<[1], [0], [0], [1], [0, 0, 1, 1], [], []>} : vector<8x32xbf16>, vector<32x128xbf16>, vector<8x128xf32> -> vector<8x128xf32>
    %c0_3 = arith.constant 0 : index
    %c0_4 = arith.constant 0 : index
    %7 = vector.load %arg2[%c0_3, %c0_4] : memref<8x1xf32, #tpu.memory_space<vmem>>, vector<8x1xf32>
    %8 = vector.broadcast %7 : vector<8x1xf32> to vector<8x128xf32>
    %9 = arith.addf %6, %8 : vector<8x128xf32>
    %cst_5 = arith.constant 0.000000e+00 : f32
    %10 = vector.broadcast %cst_5 : f32 to vector<8x128xf32>
    %11 = arith.maximumf %9, %10 : vector<8x128xf32>
    %c0_6 = arith.constant 0 : index
    %c0_7 = arith.constant 0 : index
    %12 = vector.load %arg3[%c0_6, %c0_7] : memref<32x8xbf16, #tpu.memory_space<vmem>>, vector<32x8xbf16>
    %13 = arith.truncf %11 : vector<8x128xf32> to vector<8x128xbf16>
    %cst_8 = arith.constant dense<0.000000e+00> : vector<32x128xf32>
    %14 = tpu.matmul %12, %13, %cst_8 {dimension_numbers = #tpu.dot_dimension_numbers<[1], [0], [0], [1], [0, 0, 1, 1], [], []>} : vector<32x8xbf16>, vector<8x128xbf16>, vector<32x128xf32> -> vector<32x128xf32>
    %c0_9 = arith.constant 0 : index
    %c0_10 = arith.constant 0 : index
    %15 = vector.load %arg4[%c0_9, %c0_10] : memref<32x1xf32, #tpu.memory_space<vmem>>, vector<32x1xf32>
    %16 = vector.broadcast %15 : vector<32x1xf32> to vector<32x128xf32>
    %17 = arith.addf %14, %16 : vector<32x128xf32>
    %cst_11 = arith.constant 0.000000e+00 : f32
    %18 = vector.broadcast %cst_11 : f32 to vector<32x128xf32>
    %19 = arith.maximumf %17, %18 : vector<32x128xf32>
    %20 = vector.extract_strided_slice %19 {offsets = [0, 0], sizes = [16, 128], strides = [1, 1]} : vector<32x128xf32> to vector<16x128xf32>
    %21 = vector.extract_strided_slice %19 {offsets = [16, 0], sizes = [16, 128], strides = [1, 1]} : vector<32x128xf32> to vector<16x128xf32>
    %c0_12 = arith.constant 0 : index
    %c24 = arith.constant 24 : index
    %22 = vector.load %arg5[%c0_12, %c24] : memref<16x49xf32, #tpu.memory_space<vmem>>, vector<16x1xf32>
    %23 = vector.broadcast %22 : vector<16x1xf32> to vector<16x128xf32>
    %24 = arith.mulf %20, %23 : vector<16x128xf32>
    %c27_i32 = arith.constant 27 : i32
    %25 = tpu.dynamic_rotate %20 by %c27_i32 dim 1 : vector<16x128xf32>, i32 -> vector<16x128xf32>
    %c0_13 = arith.constant 0 : index
    %c0_14 = arith.constant 0 : index
    %26 = vector.load %arg6[%c0_13, %c0_14] : memref<49x128xf32, #tpu.memory_space<vmem>>, vector<1x128xf32>
    %27 = vector.broadcast %26 : vector<1x128xf32> to vector<16x128xf32>
    %28 = arith.mulf %25, %27 : vector<16x128xf32>
    %c0_15 = arith.constant 0 : index
    %c0_16 = arith.constant 0 : index
    %29 = vector.load %arg5[%c0_15, %c0_16] : memref<16x49xf32, #tpu.memory_space<vmem>>, vector<16x1xf32>
    %30 = vector.broadcast %29 : vector<16x1xf32> to vector<16x128xf32>
    %31 = arith.mulf %28, %30 : vector<16x128xf32>
    %32 = arith.addf %24, %31 : vector<16x128xf32>
    %c26_i32 = arith.constant 26 : i32
    %33 = tpu.dynamic_rotate %20 by %c26_i32 dim 1 : vector<16x128xf32>, i32 -> vector<16x128xf32>
    %c1 = arith.constant 1 : index
    %c0_17 = arith.constant 0 : index
    %34 = vector.load %arg6[%c1, %c0_17] : memref<49x128xf32, #tpu.memory_space<vmem>>, vector<1x128xf32>
    %35 = vector.broadcast %34 : vector<1x128xf32> to vector<16x128xf32>
    %36 = arith.mulf %33, %35 : vector<16x128xf32>
    %c0_18 = arith.constant 0 : index
    %c1_19 = arith.constant 1 : index
    %37 = vector.load %arg5[%c0_18, %c1_19] : memref<16x49xf32, #tpu.memory_space<vmem>>, vector<16x1xf32>
    %38 = vector.broadcast %37 : vector<16x1xf32> to vector<16x128xf32>
    %39 = arith.mulf %36, %38 : vector<16x128xf32>
    %40 = arith.addf %32, %39 : vector<16x128xf32>
    %c25_i32 = arith.constant 25 : i32
    %41 = tpu.dynamic_rotate %20 by %c25_i32 dim 1 : vector<16x128xf32>, i32 -> vector<16x128xf32>
    %c2 = arith.constant 2 : index
    %c0_20 = arith.constant 0 : index
    %42 = vector.load %arg6[%c2, %c0_20] : memref<49x128xf32, #tpu.memory_space<vmem>>, vector<1x128xf32>
    %43 = vector.broadcast %42 : vector<1x128xf32> to vector<16x128xf32>
    %44 = arith.mulf %41, %43 : vector<16x128xf32>
    %c0_21 = arith.constant 0 : index
    %c2_22 = arith.constant 2 : index
    %45 = vector.load %arg5[%c0_21, %c2_22] : memref<16x49xf32, #tpu.memory_space<vmem>>, vector<16x1xf32>
    %46 = vector.broadcast %45 : vector<16x1xf32> to vector<16x128xf32>
    %47 = arith.mulf %44, %46 : vector<16x128xf32>
    %48 = arith.addf %40, %47 : vector<16x128xf32>
    %c24_i32 = arith.constant 24 : i32
    %49 = tpu.dynamic_rotate %20 by %c24_i32 dim 1 : vector<16x128xf32>, i32 -> vector<16x128xf32>
    %c3 = arith.constant 3 : index
    %c0_23 = arith.constant 0 : index
    %50 = vector.load %arg6[%c3, %c0_23] : memref<49x128xf32, #tpu.memory_space<vmem>>, vector<1x128xf32>
    %51 = vector.broadcast %50 : vector<1x128xf32> to vector<16x128xf32>
    %52 = arith.mulf %49, %51 : vector<16x128xf32>
    %c0_24 = arith.constant 0 : index
    %c3_25 = arith.constant 3 : index
    %53 = vector.load %arg5[%c0_24, %c3_25] : memref<16x49xf32, #tpu.memory_space<vmem>>, vector<16x1xf32>
    %54 = vector.broadcast %53 : vector<16x1xf32> to vector<16x128xf32>
    %55 = arith.mulf %52, %54 : vector<16x128xf32>
    %56 = arith.addf %48, %55 : vector<16x128xf32>
    %c23_i32 = arith.constant 23 : i32
    %57 = tpu.dynamic_rotate %20 by %c23_i32 dim 1 : vector<16x128xf32>, i32 -> vector<16x128xf32>
    %c4 = arith.constant 4 : index
    %c0_26 = arith.constant 0 : index
    %58 = vector.load %arg6[%c4, %c0_26] : memref<49x128xf32, #tpu.memory_space<vmem>>, vector<1x128xf32>
    %59 = vector.broadcast %58 : vector<1x128xf32> to vector<16x128xf32>
    %60 = arith.mulf %57, %59 : vector<16x128xf32>
    %c0_27 = arith.constant 0 : index
    %c4_28 = arith.constant 4 : index
    %61 = vector.load %arg5[%c0_27, %c4_28] : memref<16x49xf32, #tpu.memory_space<vmem>>, vector<16x1xf32>
    %62 = vector.broadcast %61 : vector<16x1xf32> to vector<16x128xf32>
    %63 = arith.mulf %60, %62 : vector<16x128xf32>
    %64 = arith.addf %56, %63 : vector<16x128xf32>
    %c22_i32 = arith.constant 22 : i32
    %65 = tpu.dynamic_rotate %20 by %c22_i32 dim 1 : vector<16x128xf32>, i32 -> vector<16x128xf32>
    %c5 = arith.constant 5 : index
    %c0_29 = arith.constant 0 : index
    %66 = vector.load %arg6[%c5, %c0_29] : memref<49x128xf32, #tpu.memory_space<vmem>>, vector<1x128xf32>
    %67 = vector.broadcast %66 : vector<1x128xf32> to vector<16x128xf32>
    %68 = arith.mulf %65, %67 : vector<16x128xf32>
    %c0_30 = arith.constant 0 : index
    %c5_31 = arith.constant 5 : index
    %69 = vector.load %arg5[%c0_30, %c5_31] : memref<16x49xf32, #tpu.memory_space<vmem>>, vector<16x1xf32>
    %70 = vector.broadcast %69 : vector<16x1xf32> to vector<16x128xf32>
    %71 = arith.mulf %68, %70 : vector<16x128xf32>
    %72 = arith.addf %64, %71 : vector<16x128xf32>
    %c21_i32 = arith.constant 21 : i32
    %73 = tpu.dynamic_rotate %20 by %c21_i32 dim 1 : vector<16x128xf32>, i32 -> vector<16x128xf32>
    %c6 = arith.constant 6 : index
    %c0_32 = arith.constant 0 : index
    %74 = vector.load %arg6[%c6, %c0_32] : memref<49x128xf32, #tpu.memory_space<vmem>>, vector<1x128xf32>
    %75 = vector.broadcast %74 : vector<1x128xf32> to vector<16x128xf32>
    %76 = arith.mulf %73, %75 : vector<16x128xf32>
    %c0_33 = arith.constant 0 : index
    %c6_34 = arith.constant 6 : index
    %77 = vector.load %arg5[%c0_33, %c6_34] : memref<16x49xf32, #tpu.memory_space<vmem>>, vector<16x1xf32>
    %78 = vector.broadcast %77 : vector<16x1xf32> to vector<16x128xf32>
    %79 = arith.mulf %76, %78 : vector<16x128xf32>
    %80 = arith.addf %72, %79 : vector<16x128xf32>
    %c19_i32 = arith.constant 19 : i32
    %81 = tpu.dynamic_rotate %20 by %c19_i32 dim 1 : vector<16x128xf32>, i32 -> vector<16x128xf32>
    %c7 = arith.constant 7 : index
    %c0_35 = arith.constant 0 : index
    %82 = vector.load %arg6[%c7, %c0_35] : memref<49x128xf32, #tpu.memory_space<vmem>>, vector<1x128xf32>
    %83 = vector.broadcast %82 : vector<1x128xf32> to vector<16x128xf32>
    %84 = arith.mulf %81, %83 : vector<16x128xf32>
    %c0_36 = arith.constant 0 : index
    %c7_37 = arith.constant 7 : index
    %85 = vector.load %arg5[%c0_36, %c7_37] : memref<16x49xf32, #tpu.memory_space<vmem>>, vector<16x1xf32>
    %86 = vector.broadcast %85 : vector<16x1xf32> to vector<16x128xf32>
    %87 = arith.mulf %84, %86 : vector<16x128xf32>
    %88 = arith.addf %80, %87 : vector<16x128xf32>
    %c18_i32 = arith.constant 18 : i32
    %89 = tpu.dynamic_rotate %20 by %c18_i32 dim 1 : vector<16x128xf32>, i32 -> vector<16x128xf32>
    %c8 = arith.constant 8 : index
    %c0_38 = arith.constant 0 : index
    %90 = vector.load %arg6[%c8, %c0_38] : memref<49x128xf32, #tpu.memory_space<vmem>>, vector<1x128xf32>
    %91 = vector.broadcast %90 : vector<1x128xf32> to vector<16x128xf32>
    %92 = arith.mulf %89, %91 : vector<16x128xf32>
    %c0_39 = arith.constant 0 : index
    %c8_40 = arith.constant 8 : index
    %93 = vector.load %arg5[%c0_39, %c8_40] : memref<16x49xf32, #tpu.memory_space<vmem>>, vector<16x1xf32>
    %94 = vector.broadcast %93 : vector<16x1xf32> to vector<16x128xf32>
    %95 = arith.mulf %92, %94 : vector<16x128xf32>
    %96 = arith.addf %88, %95 : vector<16x128xf32>
    %c17_i32 = arith.constant 17 : i32
    %97 = tpu.dynamic_rotate %20 by %c17_i32 dim 1 : vector<16x128xf32>, i32 -> vector<16x128xf32>
    %c9 = arith.constant 9 : index
    %c0_41 = arith.constant 0 : index
    %98 = vector.load %arg6[%c9, %c0_41] : memref<49x128xf32, #tpu.memory_space<vmem>>, vector<1x128xf32>
    %99 = vector.broadcast %98 : vector<1x128xf32> to vector<16x128xf32>
    %100 = arith.mulf %97, %99 : vector<16x128xf32>
    %c0_42 = arith.constant 0 : index
    %c9_43 = arith.constant 9 : index
    %101 = vector.load %arg5[%c0_42, %c9_43] : memref<16x49xf32, #tpu.memory_space<vmem>>, vector<16x1xf32>
    %102 = vector.broadcast %101 : vector<16x1xf32> to vector<16x128xf32>
    %103 = arith.mulf %100, %102 : vector<16x128xf32>
    %104 = arith.addf %96, %103 : vector<16x128xf32>
    %c16_i32 = arith.constant 16 : i32
    %105 = tpu.dynamic_rotate %20 by %c16_i32 dim 1 : vector<16x128xf32>, i32 -> vector<16x128xf32>
    %c10 = arith.constant 10 : index
    %c0_44 = arith.constant 0 : index
    %106 = vector.load %arg6[%c10, %c0_44] : memref<49x128xf32, #tpu.memory_space<vmem>>, vector<1x128xf32>
    %107 = vector.broadcast %106 : vector<1x128xf32> to vector<16x128xf32>
    %108 = arith.mulf %105, %107 : vector<16x128xf32>
    %c0_45 = arith.constant 0 : index
    %c10_46 = arith.constant 10 : index
    %109 = vector.load %arg5[%c0_45, %c10_46] : memref<16x49xf32, #tpu.memory_space<vmem>>, vector<16x1xf32>
    %110 = vector.broadcast %109 : vector<16x1xf32> to vector<16x128xf32>
    %111 = arith.mulf %108, %110 : vector<16x128xf32>
    %112 = arith.addf %104, %111 : vector<16x128xf32>
    %c15_i32 = arith.constant 15 : i32
    %113 = tpu.dynamic_rotate %20 by %c15_i32 dim 1 : vector<16x128xf32>, i32 -> vector<16x128xf32>
    %c11 = arith.constant 11 : index
    %c0_47 = arith.constant 0 : index
    %114 = vector.load %arg6[%c11, %c0_47] : memref<49x128xf32, #tpu.memory_space<vmem>>, vector<1x128xf32>
    %115 = vector.broadcast %114 : vector<1x128xf32> to vector<16x128xf32>
    %116 = arith.mulf %113, %115 : vector<16x128xf32>
    %c0_48 = arith.constant 0 : index
    %c11_49 = arith.constant 11 : index
    %117 = vector.load %arg5[%c0_48, %c11_49] : memref<16x49xf32, #tpu.memory_space<vmem>>, vector<16x1xf32>
    %118 = vector.broadcast %117 : vector<16x1xf32> to vector<16x128xf32>
    %119 = arith.mulf %116, %118 : vector<16x128xf32>
    %120 = arith.addf %112, %119 : vector<16x128xf32>
    %c14_i32 = arith.constant 14 : i32
    %121 = tpu.dynamic_rotate %20 by %c14_i32 dim 1 : vector<16x128xf32>, i32 -> vector<16x128xf32>
    %c12 = arith.constant 12 : index
    %c0_50 = arith.constant 0 : index
    %122 = vector.load %arg6[%c12, %c0_50] : memref<49x128xf32, #tpu.memory_space<vmem>>, vector<1x128xf32>
    %123 = vector.broadcast %122 : vector<1x128xf32> to vector<16x128xf32>
    %124 = arith.mulf %121, %123 : vector<16x128xf32>
    %c0_51 = arith.constant 0 : index
    %c12_52 = arith.constant 12 : index
    %125 = vector.load %arg5[%c0_51, %c12_52] : memref<16x49xf32, #tpu.memory_space<vmem>>, vector<16x1xf32>
    %126 = vector.broadcast %125 : vector<16x1xf32> to vector<16x128xf32>
    %127 = arith.mulf %124, %126 : vector<16x128xf32>
    %128 = arith.addf %120, %127 : vector<16x128xf32>
    %c13_i32 = arith.constant 13 : i32
    %129 = tpu.dynamic_rotate %20 by %c13_i32 dim 1 : vector<16x128xf32>, i32 -> vector<16x128xf32>
    %c13 = arith.constant 13 : index
    %c0_53 = arith.constant 0 : index
    %130 = vector.load %arg6[%c13, %c0_53] : memref<49x128xf32, #tpu.memory_space<vmem>>, vector<1x128xf32>
    %131 = vector.broadcast %130 : vector<1x128xf32> to vector<16x128xf32>
    %132 = arith.mulf %129, %131 : vector<16x128xf32>
    %c0_54 = arith.constant 0 : index
    %c13_55 = arith.constant 13 : index
    %133 = vector.load %arg5[%c0_54, %c13_55] : memref<16x49xf32, #tpu.memory_space<vmem>>, vector<16x1xf32>
    %134 = vector.broadcast %133 : vector<16x1xf32> to vector<16x128xf32>
    %135 = arith.mulf %132, %134 : vector<16x128xf32>
    %136 = arith.addf %128, %135 : vector<16x128xf32>
    %c11_i32 = arith.constant 11 : i32
    %137 = tpu.dynamic_rotate %20 by %c11_i32 dim 1 : vector<16x128xf32>, i32 -> vector<16x128xf32>
    %c14 = arith.constant 14 : index
    %c0_56 = arith.constant 0 : index
    %138 = vector.load %arg6[%c14, %c0_56] : memref<49x128xf32, #tpu.memory_space<vmem>>, vector<1x128xf32>
    %139 = vector.broadcast %138 : vector<1x128xf32> to vector<16x128xf32>
    %140 = arith.mulf %137, %139 : vector<16x128xf32>
    %c0_57 = arith.constant 0 : index
    %c14_58 = arith.constant 14 : index
    %141 = vector.load %arg5[%c0_57, %c14_58] : memref<16x49xf32, #tpu.memory_space<vmem>>, vector<16x1xf32>
    %142 = vector.broadcast %141 : vector<16x1xf32> to vector<16x128xf32>
    %143 = arith.mulf %140, %142 : vector<16x128xf32>
    %144 = arith.addf %136, %143 : vector<16x128xf32>
    %c10_i32 = arith.constant 10 : i32
    %145 = tpu.dynamic_rotate %20 by %c10_i32 dim 1 : vector<16x128xf32>, i32 -> vector<16x128xf32>
    %c15 = arith.constant 15 : index
    %c0_59 = arith.constant 0 : index
    %146 = vector.load %arg6[%c15, %c0_59] : memref<49x128xf32, #tpu.memory_space<vmem>>, vector<1x128xf32>
    %147 = vector.broadcast %146 : vector<1x128xf32> to vector<16x128xf32>
    %148 = arith.mulf %145, %147 : vector<16x128xf32>
    %c0_60 = arith.constant 0 : index
    %c15_61 = arith.constant 15 : index
    %149 = vector.load %arg5[%c0_60, %c15_61] : memref<16x49xf32, #tpu.memory_space<vmem>>, vector<16x1xf32>
    %150 = vector.broadcast %149 : vector<16x1xf32> to vector<16x128xf32>
    %151 = arith.mulf %148, %150 : vector<16x128xf32>
    %152 = arith.addf %144, %151 : vector<16x128xf32>
    %c9_i32 = arith.constant 9 : i32
    %153 = tpu.dynamic_rotate %20 by %c9_i32 dim 1 : vector<16x128xf32>, i32 -> vector<16x128xf32>
    %c16 = arith.constant 16 : index
    %c0_62 = arith.constant 0 : index
    %154 = vector.load %arg6[%c16, %c0_62] : memref<49x128xf32, #tpu.memory_space<vmem>>, vector<1x128xf32>
    %155 = vector.broadcast %154 : vector<1x128xf32> to vector<16x128xf32>
    %156 = arith.mulf %153, %155 : vector<16x128xf32>
    %c0_63 = arith.constant 0 : index
    %c16_64 = arith.constant 16 : index
    %157 = vector.load %arg5[%c0_63, %c16_64] : memref<16x49xf32, #tpu.memory_space<vmem>>, vector<16x1xf32>
    %158 = vector.broadcast %157 : vector<16x1xf32> to vector<16x128xf32>
    %159 = arith.mulf %156, %158 : vector<16x128xf32>
    %160 = arith.addf %152, %159 : vector<16x128xf32>
    %c8_i32 = arith.constant 8 : i32
    %161 = tpu.dynamic_rotate %20 by %c8_i32 dim 1 : vector<16x128xf32>, i32 -> vector<16x128xf32>
    %c17 = arith.constant 17 : index
    %c0_65 = arith.constant 0 : index
    %162 = vector.load %arg6[%c17, %c0_65] : memref<49x128xf32, #tpu.memory_space<vmem>>, vector<1x128xf32>
    %163 = vector.broadcast %162 : vector<1x128xf32> to vector<16x128xf32>
    %164 = arith.mulf %161, %163 : vector<16x128xf32>
    %c0_66 = arith.constant 0 : index
    %c17_67 = arith.constant 17 : index
    %165 = vector.load %arg5[%c0_66, %c17_67] : memref<16x49xf32, #tpu.memory_space<vmem>>, vector<16x1xf32>
    %166 = vector.broadcast %165 : vector<16x1xf32> to vector<16x128xf32>
    %167 = arith.mulf %164, %166 : vector<16x128xf32>
    %168 = arith.addf %160, %167 : vector<16x128xf32>
    %c7_i32 = arith.constant 7 : i32
    %169 = tpu.dynamic_rotate %20 by %c7_i32 dim 1 : vector<16x128xf32>, i32 -> vector<16x128xf32>
    %c18 = arith.constant 18 : index
    %c0_68 = arith.constant 0 : index
    %170 = vector.load %arg6[%c18, %c0_68] : memref<49x128xf32, #tpu.memory_space<vmem>>, vector<1x128xf32>
    %171 = vector.broadcast %170 : vector<1x128xf32> to vector<16x128xf32>
    %172 = arith.mulf %169, %171 : vector<16x128xf32>
    %c0_69 = arith.constant 0 : index
    %c18_70 = arith.constant 18 : index
    %173 = vector.load %arg5[%c0_69, %c18_70] : memref<16x49xf32, #tpu.memory_space<vmem>>, vector<16x1xf32>
    %174 = vector.broadcast %173 : vector<16x1xf32> to vector<16x128xf32>
    %175 = arith.mulf %172, %174 : vector<16x128xf32>
    %176 = arith.addf %168, %175 : vector<16x128xf32>
    %c6_i32 = arith.constant 6 : i32
    %177 = tpu.dynamic_rotate %20 by %c6_i32 dim 1 : vector<16x128xf32>, i32 -> vector<16x128xf32>
    %c19 = arith.constant 19 : index
    %c0_71 = arith.constant 0 : index
    %178 = vector.load %arg6[%c19, %c0_71] : memref<49x128xf32, #tpu.memory_space<vmem>>, vector<1x128xf32>
    %179 = vector.broadcast %178 : vector<1x128xf32> to vector<16x128xf32>
    %180 = arith.mulf %177, %179 : vector<16x128xf32>
    %c0_72 = arith.constant 0 : index
    %c19_73 = arith.constant 19 : index
    %181 = vector.load %arg5[%c0_72, %c19_73] : memref<16x49xf32, #tpu.memory_space<vmem>>, vector<16x1xf32>
    %182 = vector.broadcast %181 : vector<16x1xf32> to vector<16x128xf32>
    %183 = arith.mulf %180, %182 : vector<16x128xf32>
    %184 = arith.addf %176, %183 : vector<16x128xf32>
    %c5_i32 = arith.constant 5 : i32
    %185 = tpu.dynamic_rotate %20 by %c5_i32 dim 1 : vector<16x128xf32>, i32 -> vector<16x128xf32>
    %c20 = arith.constant 20 : index
    %c0_74 = arith.constant 0 : index
    %186 = vector.load %arg6[%c20, %c0_74] : memref<49x128xf32, #tpu.memory_space<vmem>>, vector<1x128xf32>
    %187 = vector.broadcast %186 : vector<1x128xf32> to vector<16x128xf32>
    %188 = arith.mulf %185, %187 : vector<16x128xf32>
    %c0_75 = arith.constant 0 : index
    %c20_76 = arith.constant 20 : index
    %189 = vector.load %arg5[%c0_75, %c20_76] : memref<16x49xf32, #tpu.memory_space<vmem>>, vector<16x1xf32>
    %190 = vector.broadcast %189 : vector<16x1xf32> to vector<16x128xf32>
    %191 = arith.mulf %188, %190 : vector<16x128xf32>
    %192 = arith.addf %184, %191 : vector<16x128xf32>
    %c3_i32 = arith.constant 3 : i32
    %193 = tpu.dynamic_rotate %20 by %c3_i32 dim 1 : vector<16x128xf32>, i32 -> vector<16x128xf32>
    %c21 = arith.constant 21 : index
    %c0_77 = arith.constant 0 : index
    %194 = vector.load %arg6[%c21, %c0_77] : memref<49x128xf32, #tpu.memory_space<vmem>>, vector<1x128xf32>
    %195 = vector.broadcast %194 : vector<1x128xf32> to vector<16x128xf32>
    %196 = arith.mulf %193, %195 : vector<16x128xf32>
    %c0_78 = arith.constant 0 : index
    %c21_79 = arith.constant 21 : index
    %197 = vector.load %arg5[%c0_78, %c21_79] : memref<16x49xf32, #tpu.memory_space<vmem>>, vector<16x1xf32>
    %198 = vector.broadcast %197 : vector<16x1xf32> to vector<16x128xf32>
    %199 = arith.mulf %196, %198 : vector<16x128xf32>
    %200 = arith.addf %192, %199 : vector<16x128xf32>
    %c2_i32 = arith.constant 2 : i32
    %201 = tpu.dynamic_rotate %20 by %c2_i32 dim 1 : vector<16x128xf32>, i32 -> vector<16x128xf32>
    %c22 = arith.constant 22 : index
    %c0_80 = arith.constant 0 : index
    %202 = vector.load %arg6[%c22, %c0_80] : memref<49x128xf32, #tpu.memory_space<vmem>>, vector<1x128xf32>
    %203 = vector.broadcast %202 : vector<1x128xf32> to vector<16x128xf32>
    %204 = arith.mulf %201, %203 : vector<16x128xf32>
    %c0_81 = arith.constant 0 : index
    %c22_82 = arith.constant 22 : index
    %205 = vector.load %arg5[%c0_81, %c22_82] : memref<16x49xf32, #tpu.memory_space<vmem>>, vector<16x1xf32>
    %206 = vector.broadcast %205 : vector<16x1xf32> to vector<16x128xf32>
    %207 = arith.mulf %204, %206 : vector<16x128xf32>
    %208 = arith.addf %200, %207 : vector<16x128xf32>
    %c1_i32_83 = arith.constant 1 : i32
    %209 = tpu.dynamic_rotate %20 by %c1_i32_83 dim 1 : vector<16x128xf32>, i32 -> vector<16x128xf32>
    %c23 = arith.constant 23 : index
    %c0_84 = arith.constant 0 : index
    %210 = vector.load %arg6[%c23, %c0_84] : memref<49x128xf32, #tpu.memory_space<vmem>>, vector<1x128xf32>
    %211 = vector.broadcast %210 : vector<1x128xf32> to vector<16x128xf32>
    %212 = arith.mulf %209, %211 : vector<16x128xf32>
    %c0_85 = arith.constant 0 : index
    %c23_86 = arith.constant 23 : index
    %213 = vector.load %arg5[%c0_85, %c23_86] : memref<16x49xf32, #tpu.memory_space<vmem>>, vector<16x1xf32>
    %214 = vector.broadcast %213 : vector<16x1xf32> to vector<16x128xf32>
    %215 = arith.mulf %212, %214 : vector<16x128xf32>
    %216 = arith.addf %208, %215 : vector<16x128xf32>
    %c127_i32 = arith.constant 127 : i32
    %217 = tpu.dynamic_rotate %20 by %c127_i32 dim 1 : vector<16x128xf32>, i32 -> vector<16x128xf32>
    %c25 = arith.constant 25 : index
    %c0_87 = arith.constant 0 : index
    %218 = vector.load %arg6[%c25, %c0_87] : memref<49x128xf32, #tpu.memory_space<vmem>>, vector<1x128xf32>
    %219 = vector.broadcast %218 : vector<1x128xf32> to vector<16x128xf32>
    %220 = arith.mulf %217, %219 : vector<16x128xf32>
    %c0_88 = arith.constant 0 : index
    %c25_89 = arith.constant 25 : index
    %221 = vector.load %arg5[%c0_88, %c25_89] : memref<16x49xf32, #tpu.memory_space<vmem>>, vector<16x1xf32>
    %222 = vector.broadcast %221 : vector<16x1xf32> to vector<16x128xf32>
    %223 = arith.mulf %220, %222 : vector<16x128xf32>
    %224 = arith.addf %216, %223 : vector<16x128xf32>
    %c126_i32 = arith.constant 126 : i32
    %225 = tpu.dynamic_rotate %20 by %c126_i32 dim 1 : vector<16x128xf32>, i32 -> vector<16x128xf32>
    %c26 = arith.constant 26 : index
    %c0_90 = arith.constant 0 : index
    %226 = vector.load %arg6[%c26, %c0_90] : memref<49x128xf32, #tpu.memory_space<vmem>>, vector<1x128xf32>
    %227 = vector.broadcast %226 : vector<1x128xf32> to vector<16x128xf32>
    %228 = arith.mulf %225, %227 : vector<16x128xf32>
    %c0_91 = arith.constant 0 : index
    %c26_92 = arith.constant 26 : index
    %229 = vector.load %arg5[%c0_91, %c26_92] : memref<16x49xf32, #tpu.memory_space<vmem>>, vector<16x1xf32>
    %230 = vector.broadcast %229 : vector<16x1xf32> to vector<16x128xf32>
    %231 = arith.mulf %228, %230 : vector<16x128xf32>
    %232 = arith.addf %224, %231 : vector<16x128xf32>
    %c125_i32 = arith.constant 125 : i32
    %233 = tpu.dynamic_rotate %20 by %c125_i32 dim 1 : vector<16x128xf32>, i32 -> vector<16x128xf32>
    %c27 = arith.constant 27 : index
    %c0_93 = arith.constant 0 : index
    %234 = vector.load %arg6[%c27, %c0_93] : memref<49x128xf32, #tpu.memory_space<vmem>>, vector<1x128xf32>
    %235 = vector.broadcast %234 : vector<1x128xf32> to vector<16x128xf32>
    %236 = arith.mulf %233, %235 : vector<16x128xf32>
    %c0_94 = arith.constant 0 : index
    %c27_95 = arith.constant 27 : index
    %237 = vector.load %arg5[%c0_94, %c27_95] : memref<16x49xf32, #tpu.memory_space<vmem>>, vector<16x1xf32>
    %238 = vector.broadcast %237 : vector<16x1xf32> to vector<16x128xf32>
    %239 = arith.mulf %236, %238 : vector<16x128xf32>
    %240 = arith.addf %232, %239 : vector<16x128xf32>
    %c123_i32 = arith.constant 123 : i32
    %241 = tpu.dynamic_rotate %20 by %c123_i32 dim 1 : vector<16x128xf32>, i32 -> vector<16x128xf32>
    %c28 = arith.constant 28 : index
    %c0_96 = arith.constant 0 : index
    %242 = vector.load %arg6[%c28, %c0_96] : memref<49x128xf32, #tpu.memory_space<vmem>>, vector<1x128xf32>
    %243 = vector.broadcast %242 : vector<1x128xf32> to vector<16x128xf32>
    %244 = arith.mulf %241, %243 : vector<16x128xf32>
    %c0_97 = arith.constant 0 : index
    %c28_98 = arith.constant 28 : index
    %245 = vector.load %arg5[%c0_97, %c28_98] : memref<16x49xf32, #tpu.memory_space<vmem>>, vector<16x1xf32>
    %246 = vector.broadcast %245 : vector<16x1xf32> to vector<16x128xf32>
    %247 = arith.mulf %244, %246 : vector<16x128xf32>
    %248 = arith.addf %240, %247 : vector<16x128xf32>
    %c122_i32 = arith.constant 122 : i32
    %249 = tpu.dynamic_rotate %20 by %c122_i32 dim 1 : vector<16x128xf32>, i32 -> vector<16x128xf32>
    %c29 = arith.constant 29 : index
    %c0_99 = arith.constant 0 : index
    %250 = vector.load %arg6[%c29, %c0_99] : memref<49x128xf32, #tpu.memory_space<vmem>>, vector<1x128xf32>
    %251 = vector.broadcast %250 : vector<1x128xf32> to vector<16x128xf32>
    %252 = arith.mulf %249, %251 : vector<16x128xf32>
    %c0_100 = arith.constant 0 : index
    %c29_101 = arith.constant 29 : index
    %253 = vector.load %arg5[%c0_100, %c29_101] : memref<16x49xf32, #tpu.memory_space<vmem>>, vector<16x1xf32>
    %254 = vector.broadcast %253 : vector<16x1xf32> to vector<16x128xf32>
    %255 = arith.mulf %252, %254 : vector<16x128xf32>
    %256 = arith.addf %248, %255 : vector<16x128xf32>
    %c121_i32 = arith.constant 121 : i32
    %257 = tpu.dynamic_rotate %20 by %c121_i32 dim 1 : vector<16x128xf32>, i32 -> vector<16x128xf32>
    %c30 = arith.constant 30 : index
    %c0_102 = arith.constant 0 : index
    %258 = vector.load %arg6[%c30, %c0_102] : memref<49x128xf32, #tpu.memory_space<vmem>>, vector<1x128xf32>
    %259 = vector.broadcast %258 : vector<1x128xf32> to vector<16x128xf32>
    %260 = arith.mulf %257, %259 : vector<16x128xf32>
    %c0_103 = arith.constant 0 : index
    %c30_104 = arith.constant 30 : index
    %261 = vector.load %arg5[%c0_103, %c30_104] : memref<16x49xf32, #tpu.memory_space<vmem>>, vector<16x1xf32>
    %262 = vector.broadcast %261 : vector<16x1xf32> to vector<16x128xf32>
    %263 = arith.mulf %260, %262 : vector<16x128xf32>
    %264 = arith.addf %256, %263 : vector<16x128xf32>
    %c120_i32 = arith.constant 120 : i32
    %265 = tpu.dynamic_rotate %20 by %c120_i32 dim 1 : vector<16x128xf32>, i32 -> vector<16x128xf32>
    %c31 = arith.constant 31 : index
    %c0_105 = arith.constant 0 : index
    %266 = vector.load %arg6[%c31, %c0_105] : memref<49x128xf32, #tpu.memory_space<vmem>>, vector<1x128xf32>
    %267 = vector.broadcast %266 : vector<1x128xf32> to vector<16x128xf32>
    %268 = arith.mulf %265, %267 : vector<16x128xf32>
    %c0_106 = arith.constant 0 : index
    %c31_107 = arith.constant 31 : index
    %269 = vector.load %arg5[%c0_106, %c31_107] : memref<16x49xf32, #tpu.memory_space<vmem>>, vector<16x1xf32>
    %270 = vector.broadcast %269 : vector<16x1xf32> to vector<16x128xf32>
    %271 = arith.mulf %268, %270 : vector<16x128xf32>
    %272 = arith.addf %264, %271 : vector<16x128xf32>
    %c119_i32 = arith.constant 119 : i32
    %273 = tpu.dynamic_rotate %20 by %c119_i32 dim 1 : vector<16x128xf32>, i32 -> vector<16x128xf32>
    %c32 = arith.constant 32 : index
    %c0_108 = arith.constant 0 : index
    %274 = vector.load %arg6[%c32, %c0_108] : memref<49x128xf32, #tpu.memory_space<vmem>>, vector<1x128xf32>
    %275 = vector.broadcast %274 : vector<1x128xf32> to vector<16x128xf32>
    %276 = arith.mulf %273, %275 : vector<16x128xf32>
    %c0_109 = arith.constant 0 : index
    %c32_110 = arith.constant 32 : index
    %277 = vector.load %arg5[%c0_109, %c32_110] : memref<16x49xf32, #tpu.memory_space<vmem>>, vector<16x1xf32>
    %278 = vector.broadcast %277 : vector<16x1xf32> to vector<16x128xf32>
    %279 = arith.mulf %276, %278 : vector<16x128xf32>
    %280 = arith.addf %272, %279 : vector<16x128xf32>
    %c118_i32 = arith.constant 118 : i32
    %281 = tpu.dynamic_rotate %20 by %c118_i32 dim 1 : vector<16x128xf32>, i32 -> vector<16x128xf32>
    %c33 = arith.constant 33 : index
    %c0_111 = arith.constant 0 : index
    %282 = vector.load %arg6[%c33, %c0_111] : memref<49x128xf32, #tpu.memory_space<vmem>>, vector<1x128xf32>
    %283 = vector.broadcast %282 : vector<1x128xf32> to vector<16x128xf32>
    %284 = arith.mulf %281, %283 : vector<16x128xf32>
    %c0_112 = arith.constant 0 : index
    %c33_113 = arith.constant 33 : index
    %285 = vector.load %arg5[%c0_112, %c33_113] : memref<16x49xf32, #tpu.memory_space<vmem>>, vector<16x1xf32>
    %286 = vector.broadcast %285 : vector<16x1xf32> to vector<16x128xf32>
    %287 = arith.mulf %284, %286 : vector<16x128xf32>
    %288 = arith.addf %280, %287 : vector<16x128xf32>
    %c117_i32 = arith.constant 117 : i32
    %289 = tpu.dynamic_rotate %20 by %c117_i32 dim 1 : vector<16x128xf32>, i32 -> vector<16x128xf32>
    %c34 = arith.constant 34 : index
    %c0_114 = arith.constant 0 : index
    %290 = vector.load %arg6[%c34, %c0_114] : memref<49x128xf32, #tpu.memory_space<vmem>>, vector<1x128xf32>
    %291 = vector.broadcast %290 : vector<1x128xf32> to vector<16x128xf32>
    %292 = arith.mulf %289, %291 : vector<16x128xf32>
    %c0_115 = arith.constant 0 : index
    %c34_116 = arith.constant 34 : index
    %293 = vector.load %arg5[%c0_115, %c34_116] : memref<16x49xf32, #tpu.memory_space<vmem>>, vector<16x1xf32>
    %294 = vector.broadcast %293 : vector<16x1xf32> to vector<16x128xf32>
    %295 = arith.mulf %292, %294 : vector<16x128xf32>
    %296 = arith.addf %288, %295 : vector<16x128xf32>
    %c115_i32 = arith.constant 115 : i32
    %297 = tpu.dynamic_rotate %20 by %c115_i32 dim 1 : vector<16x128xf32>, i32 -> vector<16x128xf32>
    %c35 = arith.constant 35 : index
    %c0_117 = arith.constant 0 : index
    %298 = vector.load %arg6[%c35, %c0_117] : memref<49x128xf32, #tpu.memory_space<vmem>>, vector<1x128xf32>
    %299 = vector.broadcast %298 : vector<1x128xf32> to vector<16x128xf32>
    %300 = arith.mulf %297, %299 : vector<16x128xf32>
    %c0_118 = arith.constant 0 : index
    %c35_119 = arith.constant 35 : index
    %301 = vector.load %arg5[%c0_118, %c35_119] : memref<16x49xf32, #tpu.memory_space<vmem>>, vector<16x1xf32>
    %302 = vector.broadcast %301 : vector<16x1xf32> to vector<16x128xf32>
    %303 = arith.mulf %300, %302 : vector<16x128xf32>
    %304 = arith.addf %296, %303 : vector<16x128xf32>
    %c114_i32 = arith.constant 114 : i32
    %305 = tpu.dynamic_rotate %20 by %c114_i32 dim 1 : vector<16x128xf32>, i32 -> vector<16x128xf32>
    %c36 = arith.constant 36 : index
    %c0_120 = arith.constant 0 : index
    %306 = vector.load %arg6[%c36, %c0_120] : memref<49x128xf32, #tpu.memory_space<vmem>>, vector<1x128xf32>
    %307 = vector.broadcast %306 : vector<1x128xf32> to vector<16x128xf32>
    %308 = arith.mulf %305, %307 : vector<16x128xf32>
    %c0_121 = arith.constant 0 : index
    %c36_122 = arith.constant 36 : index
    %309 = vector.load %arg5[%c0_121, %c36_122] : memref<16x49xf32, #tpu.memory_space<vmem>>, vector<16x1xf32>
    %310 = vector.broadcast %309 : vector<16x1xf32> to vector<16x128xf32>
    %311 = arith.mulf %308, %310 : vector<16x128xf32>
    %312 = arith.addf %304, %311 : vector<16x128xf32>
    %c113_i32 = arith.constant 113 : i32
    %313 = tpu.dynamic_rotate %20 by %c113_i32 dim 1 : vector<16x128xf32>, i32 -> vector<16x128xf32>
    %c37 = arith.constant 37 : index
    %c0_123 = arith.constant 0 : index
    %314 = vector.load %arg6[%c37, %c0_123] : memref<49x128xf32, #tpu.memory_space<vmem>>, vector<1x128xf32>
    %315 = vector.broadcast %314 : vector<1x128xf32> to vector<16x128xf32>
    %316 = arith.mulf %313, %315 : vector<16x128xf32>
    %c0_124 = arith.constant 0 : index
    %c37_125 = arith.constant 37 : index
    %317 = vector.load %arg5[%c0_124, %c37_125] : memref<16x49xf32, #tpu.memory_space<vmem>>, vector<16x1xf32>
    %318 = vector.broadcast %317 : vector<16x1xf32> to vector<16x128xf32>
    %319 = arith.mulf %316, %318 : vector<16x128xf32>
    %320 = arith.addf %312, %319 : vector<16x128xf32>
    %c112_i32 = arith.constant 112 : i32
    %321 = tpu.dynamic_rotate %20 by %c112_i32 dim 1 : vector<16x128xf32>, i32 -> vector<16x128xf32>
    %c38 = arith.constant 38 : index
    %c0_126 = arith.constant 0 : index
    %322 = vector.load %arg6[%c38, %c0_126] : memref<49x128xf32, #tpu.memory_space<vmem>>, vector<1x128xf32>
    %323 = vector.broadcast %322 : vector<1x128xf32> to vector<16x128xf32>
    %324 = arith.mulf %321, %323 : vector<16x128xf32>
    %c0_127 = arith.constant 0 : index
    %c38_128 = arith.constant 38 : index
    %325 = vector.load %arg5[%c0_127, %c38_128] : memref<16x49xf32, #tpu.memory_space<vmem>>, vector<16x1xf32>
    %326 = vector.broadcast %325 : vector<16x1xf32> to vector<16x128xf32>
    %327 = arith.mulf %324, %326 : vector<16x128xf32>
    %328 = arith.addf %320, %327 : vector<16x128xf32>
    %c111_i32 = arith.constant 111 : i32
    %329 = tpu.dynamic_rotate %20 by %c111_i32 dim 1 : vector<16x128xf32>, i32 -> vector<16x128xf32>
    %c39 = arith.constant 39 : index
    %c0_129 = arith.constant 0 : index
    %330 = vector.load %arg6[%c39, %c0_129] : memref<49x128xf32, #tpu.memory_space<vmem>>, vector<1x128xf32>
    %331 = vector.broadcast %330 : vector<1x128xf32> to vector<16x128xf32>
    %332 = arith.mulf %329, %331 : vector<16x128xf32>
    %c0_130 = arith.constant 0 : index
    %c39_131 = arith.constant 39 : index
    %333 = vector.load %arg5[%c0_130, %c39_131] : memref<16x49xf32, #tpu.memory_space<vmem>>, vector<16x1xf32>
    %334 = vector.broadcast %333 : vector<16x1xf32> to vector<16x128xf32>
    %335 = arith.mulf %332, %334 : vector<16x128xf32>
    %336 = arith.addf %328, %335 : vector<16x128xf32>
    %c110_i32 = arith.constant 110 : i32
    %337 = tpu.dynamic_rotate %20 by %c110_i32 dim 1 : vector<16x128xf32>, i32 -> vector<16x128xf32>
    %c40 = arith.constant 40 : index
    %c0_132 = arith.constant 0 : index
    %338 = vector.load %arg6[%c40, %c0_132] : memref<49x128xf32, #tpu.memory_space<vmem>>, vector<1x128xf32>
    %339 = vector.broadcast %338 : vector<1x128xf32> to vector<16x128xf32>
    %340 = arith.mulf %337, %339 : vector<16x128xf32>
    %c0_133 = arith.constant 0 : index
    %c40_134 = arith.constant 40 : index
    %341 = vector.load %arg5[%c0_133, %c40_134] : memref<16x49xf32, #tpu.memory_space<vmem>>, vector<16x1xf32>
    %342 = vector.broadcast %341 : vector<16x1xf32> to vector<16x128xf32>
    %343 = arith.mulf %340, %342 : vector<16x128xf32>
    %344 = arith.addf %336, %343 : vector<16x128xf32>
    %c109_i32 = arith.constant 109 : i32
    %345 = tpu.dynamic_rotate %20 by %c109_i32 dim 1 : vector<16x128xf32>, i32 -> vector<16x128xf32>
    %c41 = arith.constant 41 : index
    %c0_135 = arith.constant 0 : index
    %346 = vector.load %arg6[%c41, %c0_135] : memref<49x128xf32, #tpu.memory_space<vmem>>, vector<1x128xf32>
    %347 = vector.broadcast %346 : vector<1x128xf32> to vector<16x128xf32>
    %348 = arith.mulf %345, %347 : vector<16x128xf32>
    %c0_136 = arith.constant 0 : index
    %c41_137 = arith.constant 41 : index
    %349 = vector.load %arg5[%c0_136, %c41_137] : memref<16x49xf32, #tpu.memory_space<vmem>>, vector<16x1xf32>
    %350 = vector.broadcast %349 : vector<16x1xf32> to vector<16x128xf32>
    %351 = arith.mulf %348, %350 : vector<16x128xf32>
    %352 = arith.addf %344, %351 : vector<16x128xf32>
    %c107_i32 = arith.constant 107 : i32
    %353 = tpu.dynamic_rotate %20 by %c107_i32 dim 1 : vector<16x128xf32>, i32 -> vector<16x128xf32>
    %c42 = arith.constant 42 : index
    %c0_138 = arith.constant 0 : index
    %354 = vector.load %arg6[%c42, %c0_138] : memref<49x128xf32, #tpu.memory_space<vmem>>, vector<1x128xf32>
    %355 = vector.broadcast %354 : vector<1x128xf32> to vector<16x128xf32>
    %356 = arith.mulf %353, %355 : vector<16x128xf32>
    %c0_139 = arith.constant 0 : index
    %c42_140 = arith.constant 42 : index
    %357 = vector.load %arg5[%c0_139, %c42_140] : memref<16x49xf32, #tpu.memory_space<vmem>>, vector<16x1xf32>
    %358 = vector.broadcast %357 : vector<16x1xf32> to vector<16x128xf32>
    %359 = arith.mulf %356, %358 : vector<16x128xf32>
    %360 = arith.addf %352, %359 : vector<16x128xf32>
    %c106_i32 = arith.constant 106 : i32
    %361 = tpu.dynamic_rotate %20 by %c106_i32 dim 1 : vector<16x128xf32>, i32 -> vector<16x128xf32>
    %c43 = arith.constant 43 : index
    %c0_141 = arith.constant 0 : index
    %362 = vector.load %arg6[%c43, %c0_141] : memref<49x128xf32, #tpu.memory_space<vmem>>, vector<1x128xf32>
    %363 = vector.broadcast %362 : vector<1x128xf32> to vector<16x128xf32>
    %364 = arith.mulf %361, %363 : vector<16x128xf32>
    %c0_142 = arith.constant 0 : index
    %c43_143 = arith.constant 43 : index
    %365 = vector.load %arg5[%c0_142, %c43_143] : memref<16x49xf32, #tpu.memory_space<vmem>>, vector<16x1xf32>
    %366 = vector.broadcast %365 : vector<16x1xf32> to vector<16x128xf32>
    %367 = arith.mulf %364, %366 : vector<16x128xf32>
    %368 = arith.addf %360, %367 : vector<16x128xf32>
    %c105_i32 = arith.constant 105 : i32
    %369 = tpu.dynamic_rotate %20 by %c105_i32 dim 1 : vector<16x128xf32>, i32 -> vector<16x128xf32>
    %c44 = arith.constant 44 : index
    %c0_144 = arith.constant 0 : index
    %370 = vector.load %arg6[%c44, %c0_144] : memref<49x128xf32, #tpu.memory_space<vmem>>, vector<1x128xf32>
    %371 = vector.broadcast %370 : vector<1x128xf32> to vector<16x128xf32>
    %372 = arith.mulf %369, %371 : vector<16x128xf32>
    %c0_145 = arith.constant 0 : index
    %c44_146 = arith.constant 44 : index
    %373 = vector.load %arg5[%c0_145, %c44_146] : memref<16x49xf32, #tpu.memory_space<vmem>>, vector<16x1xf32>
    %374 = vector.broadcast %373 : vector<16x1xf32> to vector<16x128xf32>
    %375 = arith.mulf %372, %374 : vector<16x128xf32>
    %376 = arith.addf %368, %375 : vector<16x128xf32>
    %c104_i32 = arith.constant 104 : i32
    %377 = tpu.dynamic_rotate %20 by %c104_i32 dim 1 : vector<16x128xf32>, i32 -> vector<16x128xf32>
    %c45 = arith.constant 45 : index
    %c0_147 = arith.constant 0 : index
    %378 = vector.load %arg6[%c45, %c0_147] : memref<49x128xf32, #tpu.memory_space<vmem>>, vector<1x128xf32>
    %379 = vector.broadcast %378 : vector<1x128xf32> to vector<16x128xf32>
    %380 = arith.mulf %377, %379 : vector<16x128xf32>
    %c0_148 = arith.constant 0 : index
    %c45_149 = arith.constant 45 : index
    %381 = vector.load %arg5[%c0_148, %c45_149] : memref<16x49xf32, #tpu.memory_space<vmem>>, vector<16x1xf32>
    %382 = vector.broadcast %381 : vector<16x1xf32> to vector<16x128xf32>
    %383 = arith.mulf %380, %382 : vector<16x128xf32>
    %384 = arith.addf %376, %383 : vector<16x128xf32>
    %c103_i32 = arith.constant 103 : i32
    %385 = tpu.dynamic_rotate %20 by %c103_i32 dim 1 : vector<16x128xf32>, i32 -> vector<16x128xf32>
    %c46 = arith.constant 46 : index
    %c0_150 = arith.constant 0 : index
    %386 = vector.load %arg6[%c46, %c0_150] : memref<49x128xf32, #tpu.memory_space<vmem>>, vector<1x128xf32>
    %387 = vector.broadcast %386 : vector<1x128xf32> to vector<16x128xf32>
    %388 = arith.mulf %385, %387 : vector<16x128xf32>
    %c0_151 = arith.constant 0 : index
    %c46_152 = arith.constant 46 : index
    %389 = vector.load %arg5[%c0_151, %c46_152] : memref<16x49xf32, #tpu.memory_space<vmem>>, vector<16x1xf32>
    %390 = vector.broadcast %389 : vector<16x1xf32> to vector<16x128xf32>
    %391 = arith.mulf %388, %390 : vector<16x128xf32>
    %392 = arith.addf %384, %391 : vector<16x128xf32>
    %c102_i32 = arith.constant 102 : i32
    %393 = tpu.dynamic_rotate %20 by %c102_i32 dim 1 : vector<16x128xf32>, i32 -> vector<16x128xf32>
    %c47 = arith.constant 47 : index
    %c0_153 = arith.constant 0 : index
    %394 = vector.load %arg6[%c47, %c0_153] : memref<49x128xf32, #tpu.memory_space<vmem>>, vector<1x128xf32>
    %395 = vector.broadcast %394 : vector<1x128xf32> to vector<16x128xf32>
    %396 = arith.mulf %393, %395 : vector<16x128xf32>
    %c0_154 = arith.constant 0 : index
    %c47_155 = arith.constant 47 : index
    %397 = vector.load %arg5[%c0_154, %c47_155] : memref<16x49xf32, #tpu.memory_space<vmem>>, vector<16x1xf32>
    %398 = vector.broadcast %397 : vector<16x1xf32> to vector<16x128xf32>
    %399 = arith.mulf %396, %398 : vector<16x128xf32>
    %400 = arith.addf %392, %399 : vector<16x128xf32>
    %c101_i32 = arith.constant 101 : i32
    %401 = tpu.dynamic_rotate %20 by %c101_i32 dim 1 : vector<16x128xf32>, i32 -> vector<16x128xf32>
    %c48 = arith.constant 48 : index
    %c0_156 = arith.constant 0 : index
    %402 = vector.load %arg6[%c48, %c0_156] : memref<49x128xf32, #tpu.memory_space<vmem>>, vector<1x128xf32>
    %403 = vector.broadcast %402 : vector<1x128xf32> to vector<16x128xf32>
    %404 = arith.mulf %401, %403 : vector<16x128xf32>
    %c0_157 = arith.constant 0 : index
    %c48_158 = arith.constant 48 : index
    %405 = vector.load %arg5[%c0_157, %c48_158] : memref<16x49xf32, #tpu.memory_space<vmem>>, vector<16x1xf32>
    %406 = vector.broadcast %405 : vector<16x1xf32> to vector<16x128xf32>
    %407 = arith.mulf %404, %406 : vector<16x128xf32>
    %408 = arith.addf %400, %407 : vector<16x128xf32>
    %c0_i32_159 = arith.constant 0 : i32
    %409 = tpu.memref_slice %arg21[%c0_i32_159] : memref<2x!tpu.dma_semaphore, #tpu.memory_space<semaphore_mem>> -> memref<1x!tpu.dma_semaphore, #tpu.memory_space<semaphore_mem>>
    %410 = tpu.memref_squeeze %409 : memref<1x!tpu.dma_semaphore, #tpu.memory_space<semaphore_mem>> -> memref<!tpu.dma_semaphore, #tpu.memory_space<semaphore_mem>>
    tpu.wait_dma2 semaphore(%410 : memref<!tpu.dma_semaphore, #tpu.memory_space<semaphore_mem>>) src(%arg7 : memref<128x256xbf16, #tpu.memory_space<any>>) dst(%arg19 : memref<128x256xbf16, #tpu.memory_space<vmem>>)
    %411 = arith.truncf %21 : vector<16x128xf32> to vector<16x128xbf16>
    %c0_160 = arith.constant 0 : index
    %c0_161 = arith.constant 0 : index
    %412 = vector.load %arg19[%c0_160, %c0_161] : memref<128x256xbf16, #tpu.memory_space<vmem>>, vector<128x256xbf16>
    %cst_162 = arith.constant dense<0.000000e+00> : vector<16x256xf32>
    %413 = tpu.matmul %411, %412, %cst_162 {dimension_numbers = #tpu.dot_dimension_numbers<[1], [0], [0], [1], [0, 0, 1, 1], [], []>} : vector<16x128xbf16>, vector<128x256xbf16>, vector<16x256xf32> -> vector<16x256xf32>
    %414 = vector.extract_strided_slice %413 {offsets = [0, 0], sizes = [16, 128], strides = [1, 1]} : vector<16x256xf32> to vector<16x128xf32>
    %415 = vector.extract_strided_slice %413 {offsets = [0, 128], sizes = [16, 128], strides = [1, 1]} : vector<16x256xf32> to vector<16x128xf32>
    %c0_163 = arith.constant 0 : index
    %c0_164 = arith.constant 0 : index
    %416 = vector.load %arg8[%c0_163, %c0_164] : memref<16x128xf32, #tpu.memory_space<vmem>>, vector<16x128xf32>
    %417 = arith.mulf %414, %416 : vector<16x128xf32>
    %c0_165 = arith.constant 0 : index
    %c0_166 = arith.constant 0 : index
    %418 = vector.load %arg9[%c0_165, %c0_166] : memref<16x128xf32, #tpu.memory_space<vmem>>, vector<16x128xf32>
    %419 = arith.mulf %415, %418 : vector<16x128xf32>
    %420 = arith.subf %417, %419 : vector<16x128xf32>
    %c0_167 = arith.constant 0 : index
    %c0_168 = arith.constant 0 : index
    %421 = vector.load %arg9[%c0_167, %c0_168] : memref<16x128xf32, #tpu.memory_space<vmem>>, vector<16x128xf32>
    %422 = arith.mulf %414, %421 : vector<16x128xf32>
    %c0_169 = arith.constant 0 : index
    %c0_170 = arith.constant 0 : index
    %423 = vector.load %arg8[%c0_169, %c0_170] : memref<16x128xf32, #tpu.memory_space<vmem>>, vector<16x128xf32>
    %424 = arith.mulf %415, %423 : vector<16x128xf32>
    %425 = arith.addf %422, %424 : vector<16x128xf32>
    %426 = arith.truncf %420 : vector<16x128xf32> to vector<16x128xbf16>
    %427 = arith.truncf %425 : vector<16x128xf32> to vector<16x128xbf16>
    %428 = tpu.concatenate %426, %427 in 1 : vector<16x128xbf16>, vector<16x128xbf16> -> vector<16x256xbf16>
    %c1_i32_171 = arith.constant 1 : i32
    %429 = tpu.memref_slice %arg21[%c1_i32_171] : memref<2x!tpu.dma_semaphore, #tpu.memory_space<semaphore_mem>> -> memref<1x!tpu.dma_semaphore, #tpu.memory_space<semaphore_mem>>
    %430 = tpu.memref_squeeze %429 : memref<1x!tpu.dma_semaphore, #tpu.memory_space<semaphore_mem>> -> memref<!tpu.dma_semaphore, #tpu.memory_space<semaphore_mem>>
    tpu.wait_dma2 semaphore(%430 : memref<!tpu.dma_semaphore, #tpu.memory_space<semaphore_mem>>) src(%arg10 : memref<256x128xbf16, #tpu.memory_space<any>>) dst(%arg20 : memref<256x128xbf16, #tpu.memory_space<vmem>>)
    %c0_172 = arith.constant 0 : index
    %c0_173 = arith.constant 0 : index
    %431 = vector.load %arg20[%c0_172, %c0_173] : memref<256x128xbf16, #tpu.memory_space<vmem>>, vector<256x128xbf16>
    %cst_174 = arith.constant dense<0.000000e+00> : vector<16x128xf32>
    %432 = tpu.matmul %428, %431, %cst_174 {dimension_numbers = #tpu.dot_dimension_numbers<[1], [0], [0], [1], [0, 0, 1, 1], [], []>} : vector<16x256xbf16>, vector<256x128xbf16>, vector<16x128xf32> -> vector<16x128xf32>
    %433 = arith.mulf %408, %432 : vector<16x128xf32>
    %c0_175 = arith.constant 0 : index
    %c0_176 = arith.constant 0 : index
    %434 = vector.load %arg11[%c0_175, %c0_176] : memref<16x1xf32, #tpu.memory_space<vmem>>, vector<16x1xf32>
    %435 = vector.broadcast %434 : vector<16x1xf32> to vector<16x128xf32>
    %436 = arith.addf %433, %435 : vector<16x128xf32>
    %cst_177 = arith.constant 0.000000e+00 : f32
    %437 = vector.broadcast %cst_177 : f32 to vector<16x128xf32>
    %438 = arith.maximumf %436, %437 : vector<16x128xf32>
    %c0_178 = arith.constant 0 : index
    %c0_179 = arith.constant 0 : index
    %439 = vector.load %arg12[%c0_178, %c0_179] : memref<8x16xbf16, #tpu.memory_space<vmem>>, vector<8x16xbf16>
    %440 = arith.truncf %438 : vector<16x128xf32> to vector<16x128xbf16>
    %cst_180 = arith.constant dense<0.000000e+00> : vector<8x128xf32>
    %441 = tpu.matmul %439, %440, %cst_180 {dimension_numbers = #tpu.dot_dimension_numbers<[1], [0], [0], [1], [0, 0, 1, 1], [], []>} : vector<8x16xbf16>, vector<16x128xbf16>, vector<8x128xf32> -> vector<8x128xf32>
    %442 = arith.addf %441, %11 : vector<8x128xf32>
    %c0_181 = arith.constant 0 : index
    %c0_182 = arith.constant 0 : index
    %443 = vector.load %arg13[%c0_181, %c0_182] : memref<2x128xbf16, #tpu.memory_space<vmem>>, vector<2x128xbf16>
    %444 = arith.truncf %442 : vector<8x128xf32> to vector<8x128xbf16>
    %cst_183 = arith.constant dense<0.000000e+00> : vector<2x8xf32>
    %445 = tpu.matmul %443, %444, %cst_183 {dimension_numbers = #tpu.dot_dimension_numbers<[1], [1], [0], [0], [0, 0, 1, 0], [], []>} : vector<2x128xbf16>, vector<8x128xbf16>, vector<2x8xf32> -> vector<2x8xf32>
    %446 = arith.truncf %445 : vector<2x8xf32> to vector<2x8xbf16>
    %c0_184 = arith.constant 0 : index
    %c0_185 = arith.constant 0 : index
    %447 = vector.load %arg14[%c0_184, %c0_185] : memref<8x32xbf16, #tpu.memory_space<vmem>>, vector<8x32xbf16>
    %cst_186 = arith.constant dense<0.000000e+00> : vector<2x32xf32>
    %448 = tpu.matmul %446, %447, %cst_186 {dimension_numbers = #tpu.dot_dimension_numbers<[1], [0], [0], [1], [0, 0, 1, 1], [], []>} : vector<2x8xbf16>, vector<8x32xbf16>, vector<2x32xf32> -> vector<2x32xf32>
    %c0_187 = arith.constant 0 : index
    %c0_188 = arith.constant 0 : index
    %449 = vector.load %arg15[%c0_187, %c0_188] : memref<1x32xf32, #tpu.memory_space<vmem>>, vector<1x32xf32>
    %450 = vector.broadcast %449 : vector<1x32xf32> to vector<2x32xf32>
    %451 = arith.addf %448, %450 : vector<2x32xf32>
    %cst_189 = arith.constant 0.000000e+00 : f32
    %452 = vector.broadcast %cst_189 : f32 to vector<2x32xf32>
    %453 = arith.maximumf %451, %452 : vector<2x32xf32>
    %454 = arith.truncf %453 : vector<2x32xf32> to vector<2x32xbf16>
    %c0_190 = arith.constant 0 : index
    %c0_191 = arith.constant 0 : index
    %455 = vector.load %arg16[%c0_190, %c0_191] : memref<32x10xbf16, #tpu.memory_space<vmem>>, vector<32x10xbf16>
    %cst_192 = arith.constant dense<0.000000e+00> : vector<2x10xf32>
    %456 = tpu.matmul %454, %455, %cst_192 {dimension_numbers = #tpu.dot_dimension_numbers<[1], [0], [0], [1], [0, 0, 1, 1], [], []>} : vector<2x32xbf16>, vector<32x10xbf16>, vector<2x10xf32> -> vector<2x10xf32>
    %c0_193 = arith.constant 0 : index
    %c0_194 = arith.constant 0 : index
    %457 = vector.load %arg17[%c0_193, %c0_194] : memref<1x10xf32, #tpu.memory_space<vmem>>, vector<1x10xf32>
    %458 = vector.broadcast %457 : vector<1x10xf32> to vector<2x10xf32>
    %459 = arith.addf %456, %458 : vector<2x10xf32>
    %c0_195 = arith.constant 0 : index
    %c0_196 = arith.constant 0 : index
    %460 = vector.load %arg18[%c0_195, %c0_196] : memref<2x10xf32, #tpu.memory_space<vmem>>, vector<2x10xf32>
    tpu.vector_store %arg18[%c0_195, %c0_196], %459 {strides = array<i32>} : memref<2x10xf32, #tpu.memory_space<vmem>>, vector<2x10xf32>,
    return
  }
}

</mosaic_0001>

<bundles_post_ra>
// kernel: forward.1
= control target key start
LH: loop header
LB: loop body
LE: loop exit
PB: predicated region body
PF: predicated region fallthrough
CT: control target
= control target key end

     0   :  { %s3807_s0 = inlined_call_operand.vmem [shape: bf16[32,128], index: 0, kind: input, shape index: {}]   ;;  %s3808_s1 = inlined_call_operand.vmem [shape: bf16[8,32], index: 1, kind: input, shape index: {}]   ;;  %s3809_s2 = inlined_call_operand.vmem [shape: f32[8,1], index: 2, kind: input, shape index: {}]   ;;  %s3810_s3 = inlined_call_operand.vmem [shape: bf16[32,8], index: 3, kind: input, shape index: {}]   ;;  %s3811_s4 = inlined_call_operand.vmem [shape: f32[32,1], index: 4, kind: input, shape index: {}]   ;;  %s3812_s5 = inlined_call_operand.vmem [shape: f32[16,49], index: 5, kind: input, shape index: {}]   ;;  %s3813_s6 = inlined_call_operand.vmem [shape: f32[49,128], index: 6, kind: input, shape index: {}]   ;;  %s3814_s7 = inlined_call_operand.vmem [shape: bf16[128,256], index: 7, kind: input, shape index: {}]   ;;  %s3815_s8 = inlined_call_operand.vmem [shape: f32[16,128], index: 8, kind: input, shape index: {}]   ;;  %s3816_s9 = inlined_call_operand.vmem [shape: f32[16,128], index: 9, kind: input, shape index: {}]   ;;  %s3817_s10 = inlined_call_operand.vmem [shape: bf16[256,128], index: 10, kind: input, shape index: {}]   ;;  %s3818_s11 = inlined_call_operand.vmem [shape: f32[16,1], index: 11, kind: input, shape index: {}]   ;;  %s3819_s12 = inlined_call_operand.vmem [shape: bf16[8,16], index: 12, kind: input, shape index: {}]   ;;  %s3820_s13 = inlined_call_operand.vmem [shape: bf16[2,128], index: 13, kind: input, shape index: {}]   ;;  %s3821_s14 = inlined_call_operand.vmem [shape: bf16[8,32], index: 14, kind: input, shape index: {}]   ;;  %s3822_s15 = inlined_call_operand.vmem [shape: f32[1,32], index: 15, kind: input, shape index: {}]   ;;  %s3823_s16 = inlined_call_operand.vmem [shape: bf16[32,10], index: 16, kind: input, shape index: {}]   ;;  %s3824_s17 = inlined_call_operand.vmem [shape: f32[1,10], index: 17, kind: input, shape index: {}]   ;;  %s3825_s18 = inlined_call_operand.hbm [shape: f32[2,10], index: 18, kind: output, shape index: {}]  }
   0x1   :  { %3857 = sst [smem:[#allocation84_spill]] %s3807_s0 }
   0x2   :  { %3858 = sst [smem:[#allocation85_spill]] %s3808_s1 }
   0x3   :  { %3859 = sst [smem:[#allocation86_spill]] %s3809_s2 }
   0x4   :  { %23 = vsyncpa [#allocation6], 0  ;;  %v74_v0 = vld [vmem:[%s3814_s7] sm:$0xf]  ;;  %v76_v1 = vld [vmem:[%s3814_s7 + $0x8] sm:$0xf] }
   0x5   :  { %75 = vst [vmem:[#allocation2] sm:$0xf] %v74_v0  ;;  %77 = vst [vmem:[#allocation2 + $0x4] sm:$0xf] %v76_v1  ;;  %v78_v2 = vld [vmem:[%s3814_s7 + $0x4] sm:$0xf] }
   0x6   :  { %v80_v3 = vld [vmem:[%s3814_s7 + $0xc] sm:$0xff]   ;;  %v84_v4 = vld [vmem:[%s3814_s7 + $0x18] sm:$0xf]  ;;  %79 = vst [vmem:[#allocation2 + $0x8] sm:$0xf] %v78_v2  ;;  %v88_v6 = vld [vmem:[%s3814_s7 + $0x1c] sm:$0xff]  }
   0x7   :  { %81 = vst [vmem:[#allocation2 + $0xc] sm:$0xff] %v80_v3   ;;  %85 = vst [vmem:[#allocation2 + $0x14] sm:$0xf] %v84_v4  ;;  %v86_v5 = vld [vmem:[%s3814_s7 + $0x14] sm:$0xf]  ;;  %v96_v9 = vld [vmem:[%s3814_s7 + $0x2c] sm:$0xff]  }
   0x8   :  { %v92_v7 = vld [vmem:[%s3814_s7 + $0x28] sm:$0xf]  ;;  %87 = vst [vmem:[#allocation2 + $0x18] sm:$0xf] %v86_v5  ;;  %89 = vst [vmem:[#allocation2 + $0x1c] sm:$0xff] %v88_v6   ;;  %v104_v12 = vld [vmem:[%s3814_s7 + $0x3c] sm:$0xff]  }
   0x9   :  { %93 = vst [vmem:[#allocation2 + $0x24] sm:$0xf] %v92_v7  ;;  %v94_v8 = vld [vmem:[%s3814_s7 + $0x24] sm:$0xf]  ;;  %v100_v10 = vld [vmem:[%s3814_s7 + $0x38] sm:$0xf] }
   0xa   :  { %95 = vst [vmem:[#allocation2 + $0x28] sm:$0xf] %v94_v8  ;;  %97 = vst [vmem:[#allocation2 + $0x2c] sm:$0xff] %v96_v9   ;;  %v102_v11 = vld [vmem:[%s3814_s7 + $0x34] sm:$0xf]  ;;  %v112_v15 = vld [vmem:[%s3814_s7 + $0x4c] sm:$0xff]  }
   0xb   :  { %101 = vst [vmem:[#allocation2 + $0x34] sm:$0xf] %v100_v10  ;;  %v108_v13 = vld [vmem:[%s3814_s7 + $0x48] sm:$0xf]  ;;  %103 = vst [vmem:[#allocation2 + $0x38] sm:$0xf] %v102_v11 }
   0xc   :  { %105 = vst [vmem:[#allocation2 + $0x3c] sm:$0xff] %v104_v12   ;;  %109 = vst [vmem:[#allocation2 + $0x44] sm:$0xf] %v108_v13  ;;  %v110_v14 = vld [vmem:[%s3814_s7 + $0x44] sm:$0xf]  ;;  %v120_v18 = vld [vmem:[%s3814_s7 + $0x5c] sm:$0xff]  }
   0xd   :  { %v116_v16 = vld [vmem:[%s3814_s7 + $0x58] sm:$0xf]  ;;  %111 = vst [vmem:[#allocation2 + $0x48] sm:$0xf] %v110_v14  ;;  %113 = vst [vmem:[#allocation2 + $0x4c] sm:$0xff] %v112_v15   ;;  %v128_v21 = vld [vmem:[%s3814_s7 + $0x6c] sm:$0xff]  }
   0xe   :  { %117 = vst [vmem:[#allocation2 + $0x54] sm:$0xf] %v116_v16  ;;  %v118_v17 = vld [vmem:[%s3814_s7 + $0x54] sm:$0xf]  ;;  %v124_v19 = vld [vmem:[%s3814_s7 + $0x68] sm:$0xf] }
   0xf   :  { %119 = vst [vmem:[#allocation2 + $0x58] sm:$0xf] %v118_v17  ;;  %121 = vst [vmem:[#allocation2 + $0x5c] sm:$0xff] %v120_v18   ;;  %v126_v20 = vld [vmem:[%s3814_s7 + $0x64] sm:$0xf] }
  0x10   :  { %125 = vst [vmem:[#allocation2 + $0x64] sm:$0xf] %v124_v19  ;;  %v132_v22 = vld [vmem:[%s3814_s7 + $0x78] sm:$0xf]  ;;  %127 = vst [vmem:[#allocation2 + $0x68] sm:$0xf] %v126_v20 }
  0x11   :  { %129 = vst [vmem:[#allocation2 + $0x6c] sm:$0xff] %v128_v21   ;;  %133 = vst [vmem:[#allocation2 + $0x74] sm:$0xf] %v132_v22  ;;  %v134_v23 = vld [vmem:[%s3814_s7 + $0x74] sm:$0xf] }
  0x12   :  { %v136_v24 = vld [vmem:[%s3814_s7 + $0x7c] sm:$0xf]  ;;  %135 = vst [vmem:[#allocation2 + $0x78] sm:$0xf] %v134_v23 }
  0x13   :  { %137 = vst [vmem:[#allocation2 + $0x7c] sm:$0xf] %v136_v24 }
  0x14   :  { %232 = vsyncadd [#allocation4], 2048  ;;  %v2668_v25 = vld [vmem:[%s3817_s10] sm:$0xff]  ;;  %v2673_v26 = vld [vmem:[%s3817_s10 + $0x8] sm:$0xff] }
  0x15   :  { %3860 = vst [vmem:[#allocation12_spill] sm:$0xff] %v2668_v25  ;;  %3861 = vst [vmem:[#allocation13_spill] sm:$0xff] %v2673_v26  ;;  %v2678_v27 = vld [vmem:[%s3817_s10 + $0x10] sm:$0xff]  ;;  %v2683_v28 = vld [vmem:[%s3817_s10 + $0x18] sm:$0xff] }
  0x16   :  { %3862 = vst [vmem:[#allocation14_spill] sm:$0xff] %v2678_v27  ;;  %3863 = vst [vmem:[#allocation15_spill] sm:$0xff] %v2683_v28  ;;  %v2688_v29 = vld [vmem:[%s3817_s10 + $0x20] sm:$0xff]  ;;  %v2693_v30 = vld [vmem:[%s3817_s10 + $0x28] sm:$0xff] }
  0x17   :  { %3864 = vst [vmem:[#allocation16_spill] sm:$0xff] %v2688_v29  ;;  %3865 = vst [vmem:[#allocation17_spill] sm:$0xff] %v2693_v30  ;;  %v2698_v31 = vld [vmem:[%s3817_s10 + $0x30] sm:$0xff]  ;;  %v2703_v32 = vld [vmem:[%s3817_s10 + $0x38] sm:$0xff] }
  0x18   :  { %3866 = vst [vmem:[#allocation18_spill] sm:$0xff] %v2698_v31  ;;  %3867 = vst [vmem:[#allocation19_spill] sm:$0xff] %v2703_v32  ;;  %v2708_v33 = vld [vmem:[%s3817_s10 + $0x40] sm:$0xff]  ;;  %v2713_v34 = vld [vmem:[%s3817_s10 + $0x48] sm:$0xff] }
  0x19   :  { %3868 = vst [vmem:[#allocation20_spill] sm:$0xff] %v2708_v33  ;;  %3869 = vst [vmem:[#allocation21_spill] sm:$0xff] %v2713_v34  ;;  %v2718_v35 = vld [vmem:[%s3817_s10 + $0x50] sm:$0xff]  ;;  %v2723_v36 = vld [vmem:[%s3817_s10 + $0x58] sm:$0xff] }
  0x1a   :  { %3870 = vst [vmem:[#allocation22_spill] sm:$0xff] %v2718_v35  ;;  %3871 = vst [vmem:[#allocation23_spill] sm:$0xff] %v2723_v36  ;;  %v2728_v37 = vld [vmem:[%s3817_s10 + $0x60] sm:$0xff]  ;;  %v2733_v38 = vld [vmem:[%s3817_s10 + $0x68] sm:$0xff] }
  0x1b   :  { %3872 = vst [vmem:[#allocation24_spill] sm:$0xff] %v2728_v37  ;;  %3873 = vst [vmem:[#allocation25_spill] sm:$0xff] %v2733_v38  ;;  %v2738_v39 = vld [vmem:[%s3817_s10 + $0x70] sm:$0xff]  ;;  %v2743_v40 = vld [vmem:[%s3817_s10 + $0x78] sm:$0xff] }
  0x1c   :  { %3874 = vst [vmem:[#allocation26_spill] sm:$0xff] %v2738_v39  ;;  %3875 = vst [vmem:[#allocation27_spill] sm:$0xff] %v2743_v40 }
  0x1d   :  { %305 = vsyncadd [#allocation4 + $0x1], 2048  ;;  %s3876_s20 = sld [smem:[#allocation84_spill]]  ;;  %v3827_v42 = vmov 0.0   ;;  %vm2396_vm0 = vmmov 0   ;;  %v2758_v44 = vld [vmem:[%s3812_s5 + $0x8] sm:$0xff] }
  0x1e   :  { %2119 = vmatprep.subr.bf16.mxu0 %v3827_v42  ;;  %2123 = vmatprep.mubr.msk.bf16.mxu0 %vm2396_vm0, %v3827_v42  ;;  %v2397_v45 = vmov 24   ;;  %v3829_v46 = vmov 0   ;;  %v380_v47 = vld [vmem:[%s3811_s4 + $0x8] sm:$0xff]  ;;  %s3877_s26 = sld [smem:[#allocation85_spill]]  ;;  %vm329_vm1 = vcmask 261120   ;;  %s3878_s29 = sld [smem:[#allocation86_spill]] }
  0x1f   :  { %2262 = vset.pattern.permute.xlu0 %v2397_v45  ;;  %2260 = vset.pattern.permute.xlu1 %v3829_v46  ;;  %v381_v50 = vld [vmem:[%s3811_s4 + $0x10] sm:$0xff]  ;;  %v379_v51 = vld [vmem:[%s3811_s4] sm:$0xff]  ;;  %v382_v53 = vld [vmem:[%s3811_s4 + $0x18] sm:$0xff]  ;;  %v2399_v54 = vmov 1   ;;  %v2400_v55 = vmov 2   ;;  %v2401_v56 = vmov 3  }
  0x20   :  { %486 = vperm.xlu0 %2262, %v2758_v44   ;;  %390 = vperm.xlu1 %2260, %v380_v47   ;;  %v2782_v52 = vld [vmem:[%s3812_s5] sm:$0xff]  ;;  %v2402_v57 = vmov 4   ;;  %vm413_vm2 = vcmask 64512   ;;  %v2403_v59 = vmov 5   ;;  %v2404_v60 = vmov 6   ;;  %s2445_s24 = smov 26  }
  0x21   :  { %v2360_v58 = vld [vmem:[%s3810_s3] sm:$0xff]   ;;  %v2405_v61 = vmov 7   ;;  %v2406_v62 = vmov 8   ;;  %v2407_v63 = vmov 9   ;;  %v2408_v0 = vmov 10   ;;  %s2446_s25 = smov 24  }
  0x22   :  { %2129 = vmatprep.mubr.msk.bf16.mxu1 %vm413_vm2, %v2360_v58  ;;  %v2409_v1 = vmov 11   ;;  %v2410_v2 = vmov 12   ;;  %v2411_v3 = vmov 13   ;;  %v2412_v4 = vmov 14   ;;  %s2448_s27 = smov 22   ;;  %s2449_s28 = smov 19  }
  0x23   :  { %v2358_v41 = vld [vmem:[%s3876_s20] sm:$0xff]   ;;  %v2359_v43 = vld [vmem:[%s3876_s20 + $0x8] sm:$0xff]   ;;  %v2413_v5 = vmov 15   ;;  %v2414_v6 = vmov 16   ;;  %v2415_v7 = vmov 17   ;;  %v2416_v8 = vmov 18  }
  0x24   :  { %2120 = vmatpush3.bf16.msra.mxu0 %v2358_v41  ;;  %v306_v48 = vld [vmem:[%s3877_s26] sm:$0xf]  ;;  %2263 = vset.pattern.permute.xlu0 %v3829_v46  ;;  %v2417_v9 = vmov 19   ;;  %v2418_v10 = vmov 20   ;;  %v2419_v11 = vmov 21   ;;  %v2420_v12 = vmov 22  }
  0x25   :  { %2121 = vmatprep.subr.bf16.mxu0 %v3827_v42  ;;  %v311_v49 = vld [vmem:[%s3878_s29] sm:$0xff]  ;;  %395 = vperm.xlu1 %2260, %v381_v50   ;;  %v2421_v13 = vmov 23   ;;  %v2422_v14 = vmov 25   ;;  %v2423_v15 = vmov 26   ;;  %v2424_v16 = vmov 27   ;;  %s2447_s26 = smov 25  }
  0x26   :  { %314 = vperm.xlu0 %2263, %v311_v49   ;;  %v2425_v17 = vmov 28   ;;  %v2426_v19 = vmov 29   ;;  %vm420_vm3 = vcmask 1043456   ;;  %v2361_v49 = vld [vmem:[%s3810_s3 + $0x8] sm:$0xff]   ;;  %v2428_v50 = vmov 31   ;;  %s2444_s3 = smov 27  }
  0x27   :  { %v2435_v58 = vmov 38   ;;  %s2450_s29 = smov 23   ;;  %s2451_s30 = smov 17  }
  0x28   :  { %2122 = vmatpush3.bf16.msra.mxu0 %v2359_v43  ;;  %s2452_s0 = smov 15   ;;  %s2453_s19 = smov 21  }
  0x29   :  { %2261 = vset.pattern.permute.xlu1 %v2397_v45  ;;  %v2427_v45 = vmov 30   ;;  %s2454_s1 = smov 13   ;;  %s2455_s20 = smov 10  }
  0x2a   :  { %385 = vperm.xlu0 %2263, %v379_v51   ;;  %481 = vperm.xlu1 %2261, %v2782_v52   ;;  %v2429_v51 = vmov 32   ;;  %s2456_s21 = smov 18   ;;  %s2457_s22 = smov 8  }
  0x2b   :  { %2124 = vmatmul.mubr.msk.bf16.vlgmr.msra.gmra.mrb[0].mxu0 %vm329_vm1, %v306_v48  ;;  %s2458_s10 = smov 6   ;;  %s2459_s4 = smov 16  }
  0x2c   :  { %s2460_s2 = smov 3   ;;  %s2461_s23 = smov 1  }
  0x2d   :  { %s3838_s7 = smov 14  }
  0x2e   :  { %400 = vperm.xlu0 %2263, %v382_v53   ;;  %2264 = vset.pattern.permute.xlu1 %v3829_v46  ;;  %v2430_v53 = vmov 33  }
  0x2f   :  { %507 = vperm.xlu1 %2264, %v2758_v44  }
  0x32   :  { %503 = vperm.xlu0 %2263, %v2782_v52  }
  0x33   :  { %2265 = vset.pattern.permute.xlu1 %v2399_v54 }
  0x34   :  { %526 = vperm.xlu1 %2265, %v2782_v52  }
  0x36   :  { %2266 = vset.pattern.permute.xlu0 %v2399_v54  ;;  %v2431_v54 = vmov 34  }
  0x37   :  { %530 = vperm.xlu0 %2266, %v2758_v44  }
  0x38   :  { %2268 = vset.pattern.permute.xlu1 %v2400_v55 }
  0x39   :  { %553 = vperm.xlu1 %2268, %v2758_v44  }
  0x3b   :  { %2267 = vset.pattern.permute.xlu0 %v2400_v55  ;;  %v2432_v55 = vmov 35  }
  0x3c   :  { %549 = vperm.xlu0 %2267, %v2782_v52  }
  0x3d   :  { %2269 = vset.pattern.permute.xlu1 %v2401_v56 }
  0x3e   :  { %572 = vperm.xlu1 %2269, %v2782_v52  }
  0x40   :  { %2270 = vset.pattern.permute.xlu0 %v2401_v56  ;;  %v2433_v56 = vmov 36  }
  0x41   :  { %576 = vperm.xlu0 %2270, %v2758_v44  }
  0x42   :  { %2272 = vset.pattern.permute.xlu1 %v2402_v57 }
  0x43   :  { %599 = vperm.xlu1 %2272, %v2758_v44  }
  0x45   :  { %2271 = vset.pattern.permute.xlu0 %v2402_v57  ;;  %v2434_v57 = vmov 37  }
  0x46   :  { %595 = vperm.xlu0 %2271, %v2782_v52  }
  0x47   :  { %2273 = vset.pattern.permute.xlu1 %v2403_v59 }
  0x48   :  { %618 = vperm.xlu1 %2273, %v2782_v52  }
  0x4a   :  { %2274 = vset.pattern.permute.xlu0 %v2403_v59  ;;  %v2436_v59 = vmov 39  }
  0x4b   :  { %622 = vperm.xlu0 %2274, %v2758_v44  }
  0x4c   :  { %2276 = vset.pattern.permute.xlu1 %v2404_v60 }
  0x4d   :  { %645 = vperm.xlu1 %2276, %v2758_v44  }
  0x4f   :  { %2275 = vset.pattern.permute.xlu0 %v2404_v60 }
  0x50   :  { %641 = vperm.xlu0 %2275, %v2782_v52  }
  0x51   :  { %2277 = vset.pattern.permute.xlu1 %v2405_v61 }
  0x52   :  { %664 = vperm.xlu1 %2277, %v2782_v52  }
  0x54   :  { %2278 = vset.pattern.permute.xlu0 %v2405_v61  ;;  %v2437_v61 = vmov 40  }
  0x55   :  { %668 = vperm.xlu0 %2278, %v2758_v44  }
  0x56   :  { %2280 = vset.pattern.permute.xlu1 %v2406_v62 }
  0x57   :  { %691 = vperm.xlu1 %2280, %v2758_v44  }
  0x59   :  { %2279 = vset.pattern.permute.xlu0 %v2406_v62 }
  0x5a   :  { %687 = vperm.xlu0 %2279, %v2782_v52  }
  0x5b   :  { %2281 = vset.pattern.permute.xlu1 %v2407_v63 }
  0x5c   :  { %710 = vperm.xlu1 %2281, %v2782_v52  }
  0x5e   :  { %2282 = vset.pattern.permute.xlu0 %v2407_v63  ;;  %v2438_v63 = vmov 41  }
  0x5f   :  { %714 = vperm.xlu0 %2282, %v2758_v44  }
  0x60   :  { %2284 = vset.pattern.permute.xlu1 %v2408_v0 }
  0x61   :  { %737 = vperm.xlu1 %2284, %v2758_v44  }
  0x63   :  { %2283 = vset.pattern.permute.xlu0 %v2408_v0 }
  0x64   :  { %733 = vperm.xlu0 %2283, %v2782_v52  }
  0x65   :  { %2285 = vset.pattern.permute.xlu1 %v2409_v1 }
  0x66   :  { %756 = vperm.xlu1 %2285, %v2782_v52  }
  0x68   :  { %2286 = vset.pattern.permute.xlu0 %v2409_v1  ;;  %v2439_v1 = vmov 42  }
  0x69   :  { %760 = vperm.xlu0 %2286, %v2758_v44  }
  0x6a   :  { %2288 = vset.pattern.permute.xlu1 %v2410_v2 }
  0x6b   :  { %783 = vperm.xlu1 %2288, %v2758_v44  }
  0x6d   :  { %2287 = vset.pattern.permute.xlu0 %v2410_v2 }
  0x6e   :  { %779 = vperm.xlu0 %2287, %v2782_v52  }
  0x6f   :  { %2289 = vset.pattern.permute.xlu1 %v2411_v3 }
  0x70   :  { %802 = vperm.xlu1 %2289, %v2782_v52  }
  0x72   :  { %2290 = vset.pattern.permute.xlu0 %v2411_v3  ;;  %v2440_v3 = vmov 43  }
  0x73   :  { %806 = vperm.xlu0 %2290, %v2758_v44  }
  0x74   :  { %2292 = vset.pattern.permute.xlu1 %v2412_v4 }
  0x75   :  { %829 = vperm.xlu1 %2292, %v2758_v44  }
  0x77   :  { %2291 = vset.pattern.permute.xlu0 %v2412_v4  ;;  %v2441_v4 = vmov 44  }
  0x78   :  { %825 = vperm.xlu0 %2291, %v2782_v52  }
  0x79   :  { %2293 = vset.pattern.permute.xlu1 %v2413_v5 }
  0x7a   :  { %848 = vperm.xlu1 %2293, %v2782_v52  }
  0x7c   :  { %2294 = vset.pattern.permute.xlu0 %v2413_v5 }
  0x7d   :  { %852 = vperm.xlu0 %2294, %v2758_v44  }
  0x7e   :  { %2296 = vset.pattern.permute.xlu1 %v2414_v6 }
  0x7f   :  { %875 = vperm.xlu1 %2296, %v2758_v44  }
  0x81   :  { %2295 = vset.pattern.permute.xlu0 %v2414_v6  ;;  %v2442_v6 = vmov 45  }
  0x82   :  { %871 = vperm.xlu0 %2295, %v2782_v52  }
  0x83   :  { %2297 = vset.pattern.permute.xlu1 %v2415_v7 }
  0x84   :  { %894 = vperm.xlu1 %2297, %v2782_v52  }
  0x86   :  { %2298 = vset.pattern.permute.xlu0 %v2415_v7 }
  0x87   :  { %898 = vperm.xlu0 %2298, %v2758_v44  }
  0x88   :  { %2300 = vset.pattern.permute.xlu1 %v2416_v8 }
  0x89   :  { %921 = vperm.xlu1 %2300, %v2758_v44  }
  0x8b   :  { %2299 = vset.pattern.permute.xlu0 %v2416_v8 }
  0x8c   :  { %917 = vperm.xlu0 %2299, %v2782_v52  }
  0x8d   :  { %2301 = vset.pattern.permute.xlu1 %v2417_v9 }
  0x8e   :  { %940 = vperm.xlu1 %2301, %v2782_v52  }
  0x90   :  { %2302 = vset.pattern.permute.xlu0 %v2417_v9 }
  0x91   :  { %944 = vperm.xlu0 %2302, %v2758_v44  }
  0x92   :  { %2304 = vset.pattern.permute.xlu1 %v2418_v10 }
  0x93   :  { %967 = vperm.xlu1 %2304, %v2758_v44  }
  0x95   :  { %2303 = vset.pattern.permute.xlu0 %v2418_v10 }
  0x96   :  { %963 = vperm.xlu0 %2303, %v2782_v52  }
  0x97   :  { %2305 = vset.pattern.permute.xlu1 %v2419_v11 }
  0x98   :  { %986 = vperm.xlu1 %2305, %v2782_v52  }
  0x9a   :  { %2306 = vset.pattern.permute.xlu0 %v2419_v11 }
  0x9b   :  { %990 = vperm.xlu0 %2306, %v2758_v44  }
  0x9c   :  { %2308 = vset.pattern.permute.xlu1 %v2420_v12 }
  0x9d   :  { %1013 = vperm.xlu1 %2308, %v2758_v44  }
  0x9f   :  { %2307 = vset.pattern.permute.xlu0 %v2420_v12  ;;  %v2847_v18 = vpop.permute.xlu0 %486  ;;  %v2882_v60 = vpop.permute.xlu1 %390 }
  0xa0   :  { %1009 = vperm.xlu0 %2307, %v2782_v52   ;;  %3879 = vst [vmem:[#allocation28_spill] sm:$0xff] %v2847_v18 }
  0xa1   :  { %2309 = vset.pattern.permute.xlu1 %v2421_v13 }
  0xa2   :  { %1032 = vperm.xlu1 %2309, %v2782_v52  }
  0xa4   :  { %2310 = vset.pattern.permute.xlu0 %v2421_v13  ;;  %v396_v62 = vpop.permute.xlu1 %395 }
  0xa5   :  { %1036 = vperm.xlu0 %2310, %v2758_v44   ;;  %v315_v20 = vpop.permute.xlu0 %314 }
  0xa6   :  { %2312 = vset.pattern.permute.xlu1 %v2422_v14 }
  0xa7   :  { %1059 = vperm.xlu1 %2312, %v2758_v44  }
  0xa9   :  { %2311 = vset.pattern.permute.xlu0 %v2422_v14  ;;  %v2888_v0 = vpop.permute.xlu1 %481 }
  0xaa   :  { %1055 = vperm.xlu0 %2311, %v2782_v52  }
  0xab   :  { %2313 = vset.pattern.permute.xlu1 %v2423_v15 }
  0xac   :  { %1078 = vperm.xlu1 %2313, %v2782_v52  }
  0xae   :  { %2314 = vset.pattern.permute.xlu0 %v2423_v15  ;;  %v2893_v2 = vpop.permute.xlu1 %507 }
  0xaf   :  { %1082 = vperm.xlu0 %2314, %v2758_v44   ;;  %3881 = vst [vmem:[#allocation30_spill] sm:$0xff] %v2893_v2 }
  0xb0   :  { %2316 = vset.pattern.permute.xlu1 %v2424_v16 }
  0xb1   :  { %1105 = vperm.xlu1 %2316, %v2758_v44  }
  0xb3   :  { %2315 = vset.pattern.permute.xlu0 %v2424_v16  ;;  %v2897_v5 = vpop.permute.xlu1 %526 }
  0xb4   :  { %1101 = vperm.xlu0 %2315, %v2782_v52  }
  0xb5   :  { %2317 = vset.pattern.permute.xlu1 %v2425_v17 }
  0xb6   :  { %1124 = vperm.xlu1 %2317, %v2782_v52  }
  0xb8   :  { %2318 = vset.pattern.permute.xlu0 %v2425_v17  ;;  %v2900_v7 = vpop.permute.xlu1 %553 }
  0xb9   :  { %1128 = vperm.xlu0 %2318, %v2758_v44   ;;  %3882 = vst [vmem:[#allocation31_spill] sm:$0xff] %v2900_v7  ;;  %v3217_v7 = vld [vmem:[%s3813_s6 + $0x3] ss:$0 sm:$0xff] }
  0xba   :  { %2320 = vset.pattern.permute.xlu1 %v2426_v19 }
  0xbb   :  { %1151 = vperm.xlu1 %2320, %v2758_v44  }
  0xbd   :  { %2319 = vset.pattern.permute.xlu0 %v2426_v19  ;;  %v2904_v8 = vpop.permute.xlu1 %572 }
  0xbe   :  { %1147 = vperm.xlu0 %2319, %v2782_v52  }
  0xbf   :  { %2321 = vset.pattern.permute.xlu1 %v2427_v45 }
  0xc0   :  { %1170 = vperm.xlu1 %2321, %v2782_v52  }
  0xc2   :  { %2322 = vset.pattern.permute.xlu0 %v2427_v45  ;;  %v2906_v9 = vpop.permute.xlu1 %599 }
  0xc3   :  { %1174 = vperm.xlu0 %2322, %v2758_v44   ;;  %3883 = vst [vmem:[#allocation32_spill] sm:$0xff] %v2906_v9 }
  0xc4   :  { %2324 = vset.pattern.permute.xlu1 %v2428_v50 }
  0xc5   :  { %1197 = vperm.xlu1 %2324, %v2758_v44  }
  0xc7   :  { %2323 = vset.pattern.permute.xlu0 %v2428_v50  ;;  %v2908_v10 = vpop.permute.xlu1 %618  ;;  %v386_v50 = vpop.permute.xlu0 %385 }
  0xc8   :  { %1193 = vperm.xlu0 %2323, %v2782_v52  }
  0xc9   :  { %2325 = vset.pattern.permute.xlu1 %v2429_v51 }
  0xca   :  { %1216 = vperm.xlu1 %2325, %v2782_v52  }
  0xcc   :  { %2326 = vset.pattern.permute.xlu0 %v2429_v51  ;;  %v2910_v11 = vpop.permute.xlu1 %645 }
  0xcd   :  { %1220 = vperm.xlu0 %2326, %v2758_v44   ;;  %3884 = vst [vmem:[#allocation33_spill] sm:$0xff] %v2910_v11  ;;  %v3209_v11 = vld [vmem:[%s3813_s6 + $0x2] ss:$0 sm:$0xff] }
  0xce   :  { %2328 = vset.pattern.permute.xlu1 %v2430_v53  ;;  %3926 = vst [vmem:[#allocation74_spill] sm:$0xff] %v3209_v11 }
  0xcf   :  { %1243 = vperm.xlu1 %2328, %v2758_v44  }
  0xd1   :  { %2327 = vset.pattern.permute.xlu0 %v2430_v53  ;;  %v2912_v12 = vpop.permute.xlu1 %664  ;;  %v401_v53 = vpop.permute.xlu0 %400 }
  0xd2   :  { %1239 = vperm.xlu0 %2327, %v2782_v52  }
  0xd3   :  { %2329 = vset.pattern.permute.xlu1 %v2431_v54 }
  0xd4   :  { %1262 = vperm.xlu1 %2329, %v2782_v52  }
  0xd6   :  { %2330 = vset.pattern.permute.xlu0 %v2431_v54  ;;  %v2914_v13 = vpop.permute.xlu1 %691 }
  0xd7   :  { %1266 = vperm.xlu0 %2330, %v2758_v44   ;;  %3885 = vst [vmem:[#allocation34_spill] sm:$0xff] %v2914_v13 }
  0xd8   :  { %2332 = vset.pattern.permute.xlu1 %v2432_v55 }
  0xd9   :  { %1289 = vperm.xlu1 %2332, %v2758_v44  }
  0xdb   :  { %2331 = vset.pattern.permute.xlu0 %v2432_v55  ;;  %v2916_v14 = vpop.permute.xlu1 %710  ;;  %v2949_v55 = vpop.permute.xlu0 %503 }
  0xdc   :  { %1285 = vperm.xlu0 %2331, %v2782_v52  }
  0xdd   :  { %2333 = vset.pattern.permute.xlu1 %v2433_v56 }
  0xde   :  { %1308 = vperm.xlu1 %2333, %v2782_v52  }
  0xe0   :  { %2334 = vset.pattern.permute.xlu0 %v2433_v56  ;;  %v2918_v15 = vpop.permute.xlu1 %737 }
  0xe1   :  { %1312 = vperm.xlu0 %2334, %v2758_v44   ;;  %3886 = vst [vmem:[#allocation35_spill] sm:$0xff] %v2918_v15 }
  0xe2   :  { %2336 = vset.pattern.permute.xlu1 %v2434_v57 }
  0xe3   :  { %1335 = vperm.xlu1 %2336, %v2758_v44  }
  0xe5   :  { %2335 = vset.pattern.permute.xlu0 %v2434_v57  ;;  %v2920_v16 = vpop.permute.xlu1 %756  ;;  %v2953_v57 = vpop.permute.xlu0 %530 }
  0xe6   :  { %1331 = vperm.xlu0 %2335, %v2782_v52   ;;  %3894 = vst [vmem:[#allocation43_spill] sm:$0xff] %v2953_v57  ;;  %v3224_v57 = vld [vmem:[%s3813_s6 + $0x4] ss:$0 sm:$0xff] }
  0xe7   :  { %2337 = vset.pattern.permute.xlu1 %v2435_v58 }
  0xe8   :  { %1354 = vperm.xlu1 %2337, %v2782_v52  }
  0xea   :  { %2338 = vset.pattern.permute.xlu0 %v2435_v58  ;;  %v2922_v17 = vpop.permute.xlu1 %783 }
  0xeb   :  { %1358 = vperm.xlu0 %2338, %v2758_v44   ;;  %3887 = vst [vmem:[#allocation36_spill] sm:$0xff] %v2922_v17 }
  0xec   :  { %2340 = vset.pattern.permute.xlu1 %v2436_v59 }
  0xed   :  { %1381 = vperm.xlu1 %2340, %v2758_v44  }
  0xef   :  { %2339 = vset.pattern.permute.xlu0 %v2436_v59  ;;  %v2924_v19 = vpop.permute.xlu1 %802 }
  0xf0   :  { %1377 = vperm.xlu0 %2339, %v2782_v52  }
  0xf1   :  { %2341 = vset.pattern.permute.xlu1 %v2437_v61 }
  0xf2   :  { %1400 = vperm.xlu1 %2341, %v2782_v52  }
  0xf4   :  { %2342 = vset.pattern.permute.xlu0 %v2437_v61  ;;  %v2957_v61 = vpop.permute.xlu0 %549 }
  0xf5   :  { %1404 = vperm.xlu0 %2342, %v2758_v44  }
  0xf6   :  { %2344 = vset.pattern.permute.xlu1 %v2438_v63 }
  0xf7   :  { %1427 = vperm.xlu1 %2344, %v2758_v44  }
  0xf9   :  { %2343 = vset.pattern.permute.xlu0 %v2438_v63 }
  0xfa   :  { %1423 = vperm.xlu0 %2343, %v2782_v52  }
  0xfb   :  { %2345 = vset.pattern.permute.xlu1 %v2439_v1 }
  0xfc   :  { %1446 = vperm.xlu1 %2345, %v2782_v52  }
  0xfe   :  { %v367_v21 = vpop.f32.mrb[0].mxu0  ;;  %2346 = vset.pattern.permute.xlu0 %v2439_v1 }
  0xff   :  { %v368_v22 = vadd.f32 %v367_v21, %v315_v20  ;;  %v2125_v23 = vpop.f32.mrb[1].mxu0  ;;  %1450 = vperm.xlu0 %2346, %v2758_v44   ;;  %v2926_v20 = vpop.permute.xlu1 %829 }
 0x100   :  { %v370_v24 = vpop.f32.mrb[2].mxu0  ;;  %2347 = vset.pattern.permute.xlu1 %v2440_v3  ;;  %3888 = vst [vmem:[#allocation37_spill] sm:$0xff] %v2926_v20 }
 0x101   :  { %v2853_v41 = vmax.f32 %v368_v22, 0.0  ;;  %v2126_v43 = vpop.f32.mrb[3].mxu0  ;;  %1469 = vperm.xlu1 %2347, %v2782_v52  }
 0x103   :  { %3880 = vst [vmem:[#allocation29_spill] sm:$0xff] %v2853_v41  ;;  %v378_v47 = vpack.c.bf16 %v2853_v41, %v2853_v41  ;;  %2348 = vset.pattern.permute.xlu0 %v2441_v4  ;;  %v2928_v21 = vpop.permute.xlu1 %848 }
 0x104   :  { %1492 = vperm.xlu0 %2348, %v2782_v52  }
 0x105   :  { %2159 = vmatprep.subr.msk.bf16.mxu1 %vm420_vm3, %v378_v47  ;;  %v422_v48 = vsel %vm420_vm3, %v378_v47, 0  ;;  %1473 = vperm.xlu1 %2347, %v2758_v44   ;;  %v3831_v47 = vmov 46  }
 0x106   :  { %2128 = vmatpush3.bf16.msra.mxu1 %v422_v48 }
 0x107   :  { %v2930_v22 = vpop.permute.xlu1 %875 }
 0x108   :  { %2351 = vset.pattern.permute.xlu0 %v2442_v6  ;;  %3889 = vst [vmem:[#allocation38_spill] sm:$0xff] %v2930_v22 }
 0x109   :  { %2130 = vmatmul.mubr.msk.bf16.vlgmr.msra.gmra.mrb[0].mxu1 %vm413_vm2, %v2361_v49  ;;  %2349 = vset.pattern.permute.xlu1 %v2441_v4 }
 0x10a   :  { %1496 = vperm.xlu1 %2349, %v2758_v44  }
 0x10b   :  { %v2932_v23 = vpop.permute.xlu1 %894 }
 0x10e   :  { %2350 = vset.pattern.permute.xlu1 %v2442_v6 }
 0x10f   :  { %1515 = vperm.xlu1 %2350, %v2782_v52   ;;  %v2934_v24 = vpop.permute.xlu1 %921 }
 0x110   :  { %3890 = vst [vmem:[#allocation39_spill] sm:$0xff] %v2934_v24 }
 0x113   :  { %v2936_v43 = vpop.permute.xlu1 %940  ;;  %2353 = vset.pattern.permute.xlu1 %v3831_v47 }
 0x117   :  { %v2938_v45 = vpop.permute.xlu1 %967 }
 0x118   :  { %3891 = vst [vmem:[#allocation40_spill] sm:$0xff] %v2938_v45 }
 0x11b   :  { %v2941_v48 = vpop.permute.xlu1 %986 }
 0x11f   :  { %v2943_v49 = vpop.permute.xlu1 %1013 }
 0x120   :  { %3892 = vst [vmem:[#allocation41_spill] sm:$0xff] %v2943_v49 }
 0x123   :  { %v2945_v51 = vpop.permute.xlu1 %1032 }
 0x127   :  { %v2947_v54 = vpop.permute.xlu1 %1059 }
 0x128   :  { %3893 = vst [vmem:[#allocation42_spill] sm:$0xff] %v2947_v54  ;;  %v3843_v54 = vmov 48  }
 0x12b   :  { %v2951_v56 = vpop.permute.xlu1 %1078 }
 0x130   :  { %v2955_v59 = vpop.permute.xlu1 %1105 }
 0x131   :  { %3895 = vst [vmem:[#allocation44_spill] sm:$0xff] %v2955_v59 }
 0x1dc   :  { %v2131_v58 = vpop.f32.mrb[0].mxu1 }
 0x1dd   :  { %v2959_v63 = vadd.f32 %v2131_v58, %v396_v62  ;;  %v458_v1 = vpop.f32.mrb[1].mxu1  ;;  %v2972_v62 = vpop.permute.xlu1 %1124 }
 0x1de   :  { %v459_v3 = vadd.f32 %v458_v1, %v386_v50  ;;  %v2132_v4 = vpop.f32.mrb[2].mxu1  ;;  %v2974_v50 = vpop.permute.xlu0 %576 }
 0x1df   :  { %3896 = vst [vmem:[#allocation45_spill] sm:$0xff] %v2959_v63  ;;  %v2962_v42 = vadd.f32 %v2132_v4, %v401_v53  ;;  %v461_v46 = vpop.f32.mrb[3].mxu1  ;;  %3898 = vst [vmem:[#allocation47_spill] sm:$0xff] %v2974_v50 }
 0x1e0   :  { %v2964_v47 = vmax.f32 %v459_v3, 0.0  ;;  %v462_v41 = vadd.f32 %v461_v46, %v2882_v60 }
 0x1e1   :  { %3897 = vst [vmem:[#allocation46_spill] sm:$0xff] %v2962_v42  ;;  %v2979_v46 = vpop.permute.xlu1 %1151 }
 0x1e2   :  { %v2968_v40 = vmax.f32 %v462_v41, 0.0  ;;  %491 = vrot.lane.b32.xlu1 %v2964_v47, %s2444_s3  ;;  %3899 = vst [vmem:[#allocation48_spill] sm:$0xff] %v2979_v46  ;;  %v2981_v41 = vpop.permute.xlu0 %595 }
 0x1e4   :  { %516 = vrot.lane.b32.xlu0 %v2968_v40, %s2445_s24 }
 0x1e5   :  { %v2987_v60 = vpop.permute.xlu1 %1170 }
 0x1e6   :  { %514 = vrot.lane.b32.xlu1 %v2964_v47, %s2445_s24  ;;  %v2989_v53 = vpop.permute.xlu0 %622  ;;  %s2463_s24 = smov 126  }
 0x1e7   :  { %3900 = vst [vmem:[#allocation49_spill] sm:$0xff] %v2989_v53 }
 0x1e8   :  { %562 = vrot.lane.b32.xlu0 %v2968_v40, %s2446_s25 }
 0x1e9   :  { %v2995_v58 = vpop.permute.xlu1 %1197 }
 0x1ea   :  { %537 = vrot.lane.b32.xlu1 %v2964_v47, %s2447_s26  ;;  %3901 = vst [vmem:[#allocation50_spill] sm:$0xff] %v2995_v58  ;;  %v2997_v1 = vpop.permute.xlu0 %641  ;;  %v3841_v58 = vmov 47  }
 0x1ec   :  { %608 = vrot.lane.b32.xlu0 %v2968_v40, %s2448_s27 }
 0x1ed   :  { %v3003_v3 = vpop.permute.xlu1 %1216 }
 0x1ee   :  { %560 = vrot.lane.b32.xlu1 %v2964_v47, %s2446_s25  ;;  %v3005_v4 = vpop.permute.xlu0 %668  ;;  %s2464_s25 = smov 123  }
 0x1ef   :  { %3902 = vst [vmem:[#allocation51_spill] sm:$0xff] %v3005_v4 }
 0x1f0   :  { %654 = vrot.lane.b32.xlu0 %v2968_v40, %s2449_s28 }
 0x1f1   :  { %v3012_v32 = vpop.permute.xlu1 %1243 }
 0x1f2   :  { %583 = vrot.lane.b32.xlu1 %v2964_v47, %s2450_s29  ;;  %3903 = vst [vmem:[#allocation52_spill] sm:$0xff] %v3012_v32  ;;  %v3014_v6 = vpop.permute.xlu0 %687 }
 0x1f4   :  { %700 = vrot.lane.b32.xlu0 %v2968_v40, %s2451_s30 }
 0x1f5   :  { %v3021_v31 = vpop.permute.xlu1 %1262 }
 0x1f6   :  { %606 = vrot.lane.b32.xlu1 %v2964_v47, %s2448_s27  ;;  %v3023_v39 = vpop.permute.xlu0 %714  ;;  %s3833_s27 = smov 11  }
 0x1f7   :  { %3904 = vst [vmem:[#allocation53_spill] sm:$0xff] %v3023_v39 }
 0x1f8   :  { %746 = vrot.lane.b32.xlu0 %v2968_v40, %s2452_s0 }
 0x1f9   :  { %v3031_v30 = vpop.permute.xlu1 %1289 }
 0x1fa   :  { %629 = vrot.lane.b32.xlu1 %v2964_v47, %s2453_s19  ;;  %3905 = vst [vmem:[#allocation54_spill] sm:$0xff] %v3031_v30  ;;  %v3033_v38 = vpop.permute.xlu0 %733 }
 0x1fc   :  { %792 = vrot.lane.b32.xlu0 %v2968_v40, %s2454_s1 }
 0x1fd   :  { %v3040_v29 = vpop.permute.xlu1 %1308 }
 0x1fe   :  { %652 = vrot.lane.b32.xlu1 %v2964_v47, %s2449_s28  ;;  %v3042_v37 = vpop.permute.xlu0 %760  ;;  %s2466_s28 = smov 121  }
 0x1ff   :  { %3906 = vst [vmem:[#allocation55_spill] sm:$0xff] %v3042_v37 }
 0x200   :  { %838 = vrot.lane.b32.xlu0 %v2968_v40, %s2455_s20 }
 0x201   :  { %v3050_v28 = vpop.permute.xlu1 %1335 }
 0x202   :  { %675 = vrot.lane.b32.xlu1 %v2964_v47, %s2456_s21  ;;  %3907 = vst [vmem:[#allocation56_spill] sm:$0xff] %v3050_v28  ;;  %v3052_v36 = vpop.permute.xlu0 %779 }
 0x204   :  { %884 = vrot.lane.b32.xlu0 %v2968_v40, %s2457_s22 }
 0x205   :  { %v3060_v27 = vpop.permute.xlu1 %1354 }
 0x206   :  { %698 = vrot.lane.b32.xlu1 %v2964_v47, %s2451_s30  ;;  %v3062_v35 = vpop.permute.xlu0 %806  ;;  %s2467_s30 = smov 119  }
 0x207   :  { %3908 = vst [vmem:[#allocation57_spill] sm:$0xff] %v3062_v35 }
 0x208   :  { %930 = vrot.lane.b32.xlu0 %v2968_v40, %s2458_s10 }
 0x209   :  { %v3070_v26 = vpop.permute.xlu1 %1381 }
 0x20a   :  { %721 = vrot.lane.b32.xlu1 %v2964_v47, %s2459_s4  ;;  %3909 = vst [vmem:[#allocation58_spill] sm:$0xff] %v3070_v26  ;;  %v3072_v34 = vpop.permute.xlu0 %825 }
 0x20c   :  { %976 = vrot.lane.b32.xlu0 %v2968_v40, %s2460_s2 }
 0x20d   :  { %v3080_v25 = vpop.permute.xlu1 %1400 }
 0x20e   :  { %744 = vrot.lane.b32.xlu1 %v2964_v47, %s2452_s0  ;;  %s3834_s0 = smov 9   ;;  %v3082_v33 = vpop.permute.xlu0 %852 }
 0x20f   :  { %3910 = vst [vmem:[#allocation59_spill] sm:$0xff] %v3082_v33 }
 0x210   :  { %1022 = vrot.lane.b32.xlu0 %v2968_v40, %s2461_s23 }
 0x211   :  { %v3090_v42 = vpop.permute.xlu1 %1427 }
 0x212   :  { %767 = vrot.lane.b32.xlu1 %v2964_v47, %s3838_s7  ;;  %3911 = vst [vmem:[#allocation60_spill] sm:$0xff] %v3090_v42  ;;  %v3092_v63 = vpop.permute.xlu0 %871  ;;  %s2475_s7 = smov 107   ;;  %v3913_v42 = vmov 46  }
 0x214   :  { %1068 = vrot.lane.b32.xlu0 %v2968_v40, %s2463_s24 }
 0x215   :  { %v3100_v26 = vpop.permute.xlu1 %1446 }
 0x216   :  { %790 = vrot.lane.b32.xlu1 %v2964_v47, %s2454_s1  ;;  %s2469_s1 = smov 117   ;;  %v3102_v28 = vpop.permute.xlu0 %898 }
 0x217   :  { %3912 = vst [vmem:[#allocation61_spill] sm:$0xff] %v3102_v28 }
 0x218   :  { %1114 = vrot.lane.b32.xlu0 %v2968_v40, %s2464_s25 }
 0x219   :  { %v3108_v30 = vpop.permute.xlu1 %1469 }
 0x21a   :  { %813 = vrot.lane.b32.xlu1 %v2964_v47, %s3833_s27  ;;  %s3837_s27 = smov 7   ;;  %3914 = vst [vmem:[#allocation62_spill] sm:$0xff] %v3108_v30  ;;  %v3110_v32 = vpop.permute.xlu0 %917 }
 0x21c   :  { %1160 = vrot.lane.b32.xlu0 %v2968_v40, %s2466_s28 }
 0x21e   :  { %836 = vrot.lane.b32.xlu1 %v2964_v47, %s2455_s20  ;;  %s2470_s20 = smov 114   ;;  %v3122_v30 = vpop.permute.xlu0 %944 }
 0x21f   :  { %3916 = vst [vmem:[#allocation64_spill] sm:$0xff] %v3122_v30 }
 0x220   :  { %1206 = vrot.lane.b32.xlu0 %v2968_v40, %s2467_s30 }
 0x222   :  { %859 = vrot.lane.b32.xlu1 %v2964_v47, %s3834_s0  ;;  %s2472_s0 = smov 112   ;;  %v3129_v59 = vpop.permute.xlu0 %963 }
 0x224   :  { %1252 = vrot.lane.b32.xlu0 %v2968_v40, %s2469_s1 }
 0x226   :  { %882 = vrot.lane.b32.xlu1 %v2964_v47, %s2457_s22  ;;  %s2473_s22 = smov 110  }
 0x228   :  { %1298 = vrot.lane.b32.xlu0 %v2968_v40, %s2470_s20 }
 0x22a   :  { %905 = vrot.lane.b32.xlu1 %v2964_v47, %s3837_s27  ;;  %s3839_s27 = smov 5  }
 0x22c   :  { %1344 = vrot.lane.b32.xlu0 %v2968_v40, %s2472_s0 }
 0x22e   :  { %928 = vrot.lane.b32.xlu1 %v2964_v47, %s2458_s10  ;;  %s2476_s10 = smov 2  }
 0x230   :  { %1390 = vrot.lane.b32.xlu0 %v2968_v40, %s2473_s22 }
 0x232   :  { %951 = vrot.lane.b32.xlu1 %v2964_v47, %s3839_s27  ;;  %s3842_s27 = smov 127  }
 0x234   :  { %1436 = vrot.lane.b32.xlu0 %v2968_v40, %s2475_s7 }
 0x236   :  { %974 = vrot.lane.b32.xlu1 %v2964_v47, %s2460_s2  ;;  %s3840_s2 = smov 105  }
 0x238   :  { %1519 = vperm.xlu0 %2351, %v2758_v44  }
 0x23a   :  { %997 = vrot.lane.b32.xlu1 %v2964_v47, %s2476_s10 }
 0x23c   :  { %2352 = vset.pattern.permute.xlu0 %v3913_v42  ;;  %v3120_v42 = vpop.permute.xlu1 %1473 }
 0x23d   :  { %1538 = vperm.xlu0 %2352, %v2782_v52   ;;  %3915 = vst [vmem:[#allocation63_spill] sm:$0xff] %v3120_v42 }
 0x23e   :  { %1020 = vrot.lane.b32.xlu1 %v2964_v47, %s2461_s23  ;;  %s3844_s23 = smov 125  }
 0x240   :  { %v3127_v46 = vpop.permute.xlu1 %1496 }
 0x241   :  { %1482 = vrot.lane.b32.xlu0 %v2968_v40, %s3840_s2  ;;  %3917 = vst [vmem:[#allocation65_spill] sm:$0xff] %v3127_v46  ;;  %s3847_s2 = smov 103  }
 0x242   :  { %1043 = vrot.lane.b32.xlu1 %v2964_v47, %s3842_s27  ;;  %2355 = vset.pattern.permute.xlu0 %v3841_v58  ;;  %v3141_v58 = vpop.permute.xlu0 %990  ;;  %s2484_s27 = smov 122  }
 0x243   :  { %3919 = vst [vmem:[#allocation67_spill] sm:$0xff] %v3141_v58 }
 0x245   :  { %1565 = vperm.xlu0 %2355, %v2758_v44   ;;  %v3139_v44 = vpop.permute.xlu1 %1515 }
 0x246   :  { %1066 = vrot.lane.b32.xlu1 %v2964_v47, %s2463_s24  ;;  %3918 = vst [vmem:[#allocation66_spill] sm:$0xff] %v3139_v44  ;;  %s3845_s24 = smov 102  }
 0x249   :  { %2356 = vset.pattern.permute.xlu0 %v3843_v54  ;;  %v3147_v54 = vpop.permute.xlu0 %1009 }
 0x24a   :  { %1584 = vperm.xlu0 %2356, %v2782_v52   ;;  %1089 = vrot.lane.b32.xlu1 %v2964_v47, %s3844_s23  ;;  %s3846_s23 = smov 101  }
 0x24d   :  { %v3155_v46 = vpop.permute.xlu0 %1036 }
 0x24e   :  { %1528 = vrot.lane.b32.xlu0 %v2968_v40, %s3847_s2  ;;  %1112 = vrot.lane.b32.xlu1 %v2964_v47, %s2464_s25  ;;  %s2486_s25 = smov 120   ;;  %3920 = vst [vmem:[#allocation68_spill] sm:$0xff] %v3155_v46 }
 0x251   :  { %v3159_v58 = vpop.permute.xlu0 %1055 }
 0x252   :  { %1551 = vrot.lane.b32.xlu0 %v2968_v40, %s3845_s24  ;;  %1135 = vrot.lane.b32.xlu1 %v2964_v47, %s2484_s27  ;;  %s2487_s24 = smov 118  }
 0x254   :  { %v492_v52 = vpop.permute.xlu1 %491 }
 0x255   :  { %v3165_v30 = vpop.permute.xlu0 %1082 }
 0x256   :  { %1574 = vrot.lane.b32.xlu0 %v2968_v40, %s3846_s23  ;;  %1158 = vrot.lane.b32.xlu1 %v2964_v47, %s2466_s28  ;;  %3921 = vst [vmem:[#allocation69_spill] sm:$0xff] %v3165_v30  ;;  %s2488_s28 = smov 115  }
 0x258   :  { %v515_v44 = vpop.permute.xlu1 %514 }
 0x259   :  { %v3169_v28 = vpop.permute.xlu0 %1101 }
 0x25a   :  { %1181 = vrot.lane.b32.xlu1 %v2964_v47, %s2486_s25 }
 0x25c   :  { %v538_v42 = vpop.permute.xlu1 %537 }
 0x25d   :  { %v3175_v33 = vpop.permute.xlu0 %1128 }
 0x25e   :  { %1204 = vrot.lane.b32.xlu1 %v2964_v47, %s2467_s30  ;;  %s2489_s30 = smov 113   ;;  %3922 = vst [vmem:[#allocation70_spill] sm:$0xff] %v3175_v33  ;;  %v3192_v33 = vld [vmem:[%s3813_s6] ss:$0 sm:$0xff] }
 0x25f   :  { %3924 = vst [vmem:[#allocation72_spill] sm:$0xff] %v3192_v33  ;;  %v500_v4 = vmul.f32 %v3192_v33, %v492_v52  ;;  %v546_v52 = vmul.f32 %v3209_v11, %v538_v42 }
 0x260   :  { %v561_v49 = vpop.permute.xlu1 %560 }
 0x261   :  { %v3179_v35 = vpop.permute.xlu0 %1147  ;;  %v510_v50 = vmul.f32 %v2949_v55, %v500_v4  ;;  %v569_v4 = vmul.f32 %v3217_v7, %v561_v49  ;;  %v556_v18 = vmul.f32 %v2957_v61, %v546_v52 }
 0x262   :  { %1227 = vrot.lane.b32.xlu1 %v2964_v47, %s2487_s24 }
 0x264   :  { %v584_v45 = vpop.permute.xlu1 %583 }
 0x265   :  { %v3185_v37 = vpop.permute.xlu0 %1174  ;;  %v592_v33 = vmul.f32 %v3224_v57, %v584_v45 }
 0x266   :  { %1250 = vrot.lane.b32.xlu1 %v2964_v47, %s2469_s1  ;;  %s3849_s1 = smov 111   ;;  %3923 = vst [vmem:[#allocation71_spill] sm:$0xff] %v3185_v37  ;;  %v3202_v37 = vld [vmem:[%s3813_s6 + $0x1] ss:$0 sm:$0xff] }
 0x267   :  { %3925 = vst [vmem:[#allocation73_spill] sm:$0xff] %v3202_v37  ;;  %v523_v53 = vmul.f32 %v3202_v37, %v515_v44  ;;  %v489_v44 = vmul.f32 %v2888_v0, %v2964_v47  ;;  %v3237_v37 = vld [vmem:[%s3813_s6 + $0x5] ss:$0 sm:$0xff]  ;;  %v3244_v0 = vld [vmem:[%s3813_s6 + $0x6] ss:$0 sm:$0xff]  ;;  %v602_v52 = vmul.f32 %v2981_v41, %v592_v33 }
 0x268   :  { %v607_v24 = vpop.permute.xlu1 %606 }
 0x269   :  { %v3196_v13 = vpop.permute.xlu0 %1193  ;;  %v533_v55 = vmul.f32 %v2897_v5, %v523_v53  ;;  %v512_v11 = vadd.f32 %v510_v50, %v489_v44  ;;  %v579_v5 = vmul.f32 %v2904_v8, %v569_v4  ;;  %v615_v49 = vmul.f32 %v3237_v37, %v607_v24  ;;  %v3262_v8 = vld [vmem:[%s3813_s6 + $0x8] ss:$0 sm:$0xff]  ;;  %v3271_v4 = vld [vmem:[%s3813_s6 + $0x9] ss:$0 sm:$0xff] }
 0x26a   :  { %1273 = vrot.lane.b32.xlu1 %v2964_v47, %s2488_s28 }
 0x26b   :  { %v535_v61 = vadd.f32 %v533_v55, %v512_v11  ;;  %v625_v11 = vmul.f32 %v2908_v10, %v615_v49  ;;  %v3278_v10 = vld [vmem:[%s3813_s6 + $0xa] ss:$0 sm:$0xff] }
 0x26c   :  { %v630_v46 = vpop.permute.xlu1 %629 }
 0x26d   :  { %v3228_v2 = vpop.permute.xlu0 %1220  ;;  %v558_v53 = vadd.f32 %v556_v18, %v535_v61  ;;  %v638_v44 = vmul.f32 %v3244_v0, %v630_v46 }
 0x26e   :  { %1296 = vrot.lane.b32.xlu1 %v2964_v47, %s2470_s20  ;;  %s3848_s20 = smov 109   ;;  %3927 = vst [vmem:[#allocation75_spill] sm:$0xff] %v3228_v2  ;;  %v3255_v2 = vld [vmem:[%s3813_s6 + $0x7] ss:$0 sm:$0xff] }
 0x26f   :  { %v581_v33 = vadd.f32 %v579_v5, %v558_v53  ;;  %v648_v41 = vmul.f32 %v2997_v1, %v638_v44  ;;  %v3289_v44 = vld [vmem:[%s3813_s6 + $0xb] ss:$0 sm:$0xff] }
 0x270   :  { %v653_v22 = vpop.permute.xlu1 %652 }
 0x271   :  { %v3248_v45 = vpop.permute.xlu0 %1239  ;;  %v661_v18 = vmul.f32 %v3255_v2, %v653_v22  ;;  %v604_v46 = vadd.f32 %v602_v52, %v581_v33 }
 0x272   :  { %1319 = vrot.lane.b32.xlu1 %v2964_v47, %s2489_s30 }
 0x273   :  { %v671_v5 = vmul.f32 %v2912_v12, %v661_v18  ;;  %v3296_v12 = vld [vmem:[%s3813_s6 + $0xc] ss:$0 sm:$0xff] }
 0x274   :  { %v676_v20 = vpop.permute.xlu1 %675 }
 0x275   :  { %v684_v55 = vmul.f32 %v3262_v8, %v676_v20  ;;  %v3280_v22 = vpop.permute.xlu0 %1266  ;;  %v627_v20 = vadd.f32 %v625_v11, %v604_v46 }
 0x276   :  { %1342 = vrot.lane.b32.xlu1 %v2964_v47, %s2472_s0 }
 0x277   :  { %v650_v61 = vadd.f32 %v648_v41, %v627_v20  ;;  %v694_v53 = vmul.f32 %v3014_v6, %v684_v55  ;;  %v3308_v55 = vld [vmem:[%s3813_s6 + $0xd] ss:$0 sm:$0xff] }
 0x278   :  { %v699_v30 = vpop.permute.xlu1 %698 }
 0x279   :  { %v707_v1 = vmul.f32 %v3271_v4, %v699_v30  ;;  %v673_v6 = vadd.f32 %v671_v5, %v650_v61 }
 0x27a   :  { %1365 = vrot.lane.b32.xlu1 %v2964_v47, %s3849_s1  ;;  %s3931_s1 = smov 7  }
 0x27b   :  { %v717_v30 = vmul.f32 %v2916_v14, %v707_v1  ;;  %v696_v33 = vadd.f32 %v694_v53, %v673_v6  ;;  %v3315_v14 = vld [vmem:[%s3813_s6 + $0xe] ss:$0 sm:$0xff]  ;;  %v3324_v53 = vld [vmem:[%s3813_s6 + $0xf] ss:$0 sm:$0xff] }
 0x27c   :  { %v722_v17 = vpop.permute.xlu1 %721 }
 0x27d   :  { %v730_v52 = vmul.f32 %v3278_v10, %v722_v17  ;;  %v3300_v17 = vpop.permute.xlu0 %1285  ;;  %v719_v5 = vadd.f32 %v717_v30, %v696_v33 }
 0x27e   :  { %1388 = vrot.lane.b32.xlu1 %v2964_v47, %s2473_s22  ;;  %s3929_s22 = smov 11  }
 0x27f   :  { %v740_v46 = vmul.f32 %v3033_v38, %v730_v52 }
 0x280   :  { %v745_v15 = vpop.permute.xlu1 %744 }
 0x281   :  { %v753_v11 = vmul.f32 %v3289_v44, %v745_v15 }
 0x282   :  { %1411 = vrot.lane.b32.xlu1 %v2964_v47, %s3848_s20  ;;  %s3956_s20 = smov 102  }
 0x283   :  { %v763_v15 = vmul.f32 %v2920_v16, %v753_v11  ;;  %v3331_v16 = vld [vmem:[%s3813_s6 + $0x10] ss:$0 sm:$0xff] }
 0x284   :  { %v3194_v39 = vpop.permute.xlu1 %767 }
 0x285   :  { %v776_v41 = vmul.f32 %v3296_v12, %v3194_v39  ;;  %v742_v39 = vadd.f32 %v740_v46, %v719_v5  ;;  %v3342_v46 = vld [vmem:[%s3813_s6 + $0x11] ss:$0 sm:$0xff] }
 0x286   :  { %1434 = vrot.lane.b32.xlu1 %v2964_v47, %s2475_s7  ;;  %s3930_s7 = smov 9  }
 0x287   :  { %v786_v20 = vmul.f32 %v3052_v36, %v776_v41 }
 0x288   :  { %v791_v9 = vpop.permute.xlu1 %790 }
 0x289   :  { %v799_v38 = vmul.f32 %v3308_v55, %v791_v9  ;;  %v3333_v9 = vpop.permute.xlu0 %1312 }
 0x28a   :  { %493 = vrot.lane.b32.xlu1 %v2968_v40, %s2444_s3  ;;  %s3934_s3 = smov 127  }
 0x28b   :  { %v809_v52 = vmul.f32 %v2924_v19, %v799_v38  ;;  %v3349_v19 = vld [vmem:[%s3813_s6 + $0x12] ss:$0 sm:$0xff] }
 0x28c   :  { %v814_v42 = vpop.permute.xlu1 %813 }
 0x28d   :  { %v822_v61 = vmul.f32 %v3315_v14, %v814_v42  ;;  %v765_v42 = vadd.f32 %v763_v15, %v742_v39 }
 0x28e   :  { %539 = vrot.lane.b32.xlu1 %v2968_v40, %s2447_s26 }
 0x28f   :  { %v788_v11 = vadd.f32 %v786_v20, %v765_v42  ;;  %v832_v6 = vmul.f32 %v3072_v34, %v822_v61  ;;  %v3360_v20 = vld [vmem:[%s3813_s6 + $0x13] ss:$0 sm:$0xff] }
 0x290   :  { %v837_v50 = vpop.permute.xlu1 %836 }
 0x291   :  { %v845_v36 = vmul.f32 %v3324_v53, %v837_v50  ;;  %v811_v34 = vadd.f32 %v809_v52, %v788_v11  ;;  %v3376_v11 = vld [vmem:[%s3813_s6 + $0x15] ss:$0 sm:$0xff] }
 0x292   :  { %585 = vrot.lane.b32.xlu1 %v2968_v40, %s2450_s29 }
 0x293   :  { %v855_v50 = vmul.f32 %v2928_v21, %v845_v36  ;;  %v834_v38 = vadd.f32 %v832_v6, %v811_v34  ;;  %v3367_v21 = vld [vmem:[%s3813_s6 + $0x14] ss:$0 sm:$0xff] }
 0x294   :  { %v860_v24 = vpop.permute.xlu1 %859 }
 0x295   :  { %v868_v33 = vmul.f32 %v3331_v16, %v860_v24  ;;  %v3353_v24 = vpop.permute.xlu0 %1331 }
 0x296   :  { %631 = vrot.lane.b32.xlu1 %v2968_v40, %s2453_s19  ;;  %s3959_s19 = smov 101  }
 0x297   :  { %v878_v5 = vmul.f32 %v3092_v63, %v868_v33  ;;  %v857_v63 = vadd.f32 %v855_v50, %v834_v38  ;;  %v3394_v38 = vld [vmem:[%s3813_s6 + $0x17] ss:$0 sm:$0xff] }
 0x298   :  { %v883_v49 = vpop.permute.xlu1 %882 }
 0x299   :  { %v891_v41 = vmul.f32 %v3342_v46, %v883_v49 }
 0x29a   :  { %677 = vrot.lane.b32.xlu1 %v2968_v40, %s2456_s21  ;;  %s3933_s21 = smov 5  }
 0x29b   :  { %v901_v49 = vmul.f32 %v2932_v23, %v891_v41  ;;  %v3383_v23 = vld [vmem:[%s3813_s6 + $0x16] ss:$0 sm:$0xff] }
 0x29c   :  { %v906_v18 = vpop.permute.xlu1 %905 }
 0x29d   :  { %v914_v39 = vmul.f32 %v3349_v19, %v906_v18  ;;  %v880_v18 = vadd.f32 %v878_v5, %v857_v63 }
 0x29e   :  { %723 = vrot.lane.b32.xlu1 %v2968_v40, %s2459_s4  ;;  %s3928_s4 = smov 14  }
 0x29f   :  { %v924_v36 = vmul.f32 %v3110_v32, %v914_v39 }
 0x2a0   :  { %v929_v1 = vpop.permute.xlu1 %928 }
 0x2a1   :  { %v937_v61 = vmul.f32 %v3360_v20, %v929_v1  ;;  %v3385_v1 = vpop.permute.xlu0 %1358 }
 0x2a2   :  { %769 = vrot.lane.b32.xlu1 %v2968_v40, %s3928_s4  ;;  %3932 = vst [vmem:[#allocation76_spill] sm:$0xff] %v3385_v1 }
 0x2a3   :  { %v947_v6 = vmul.f32 %v2936_v43, %v937_v61  ;;  %v3401_v43 = vld [vmem:[%s3813_s6 + $0x19] ss:$0 sm:$0xff] }
 0x2a4   :  { %v952_v30 = vpop.permute.xlu1 %951 }
 0x2a5   :  { %v960_v42 = vmul.f32 %v3367_v21, %v952_v30  ;;  %v903_v30 = vadd.f32 %v901_v49, %v880_v18  ;;  %v3405_v49 = vpop.permute.xlu0 %1377 }
 0x2a6   :  { %815 = vrot.lane.b32.xlu1 %v2968_v40, %s3929_s22 }
 0x2a7   :  { %v926_v50 = vadd.f32 %v924_v36, %v903_v30  ;;  %v970_v41 = vmul.f32 %v3129_v59, %v960_v42 }
 0x2a8   :  { %v975_v15 = vpop.permute.xlu1 %974 }
 0x2a9   :  { %v983_v32 = vmul.f32 %v3376_v11, %v975_v15  ;;  %v949_v59 = vadd.f32 %v947_v6, %v926_v50 }
 0x2aa   :  { %861 = vrot.lane.b32.xlu1 %v2968_v40, %s3930_s7 }
 0x2ab   :  { %v993_v15 = vmul.f32 %v2941_v48, %v983_v32  ;;  %v972_v61 = vadd.f32 %v970_v41, %v949_v59  ;;  %v3415_v48 = vld [vmem:[%s3813_s6 + $0x1a] ss:$0 sm:$0xff]  ;;  %v3436_v59 = vld [vmem:[%s3813_s6 + $0x1c] ss:$0 sm:$0xff] }
 0x2ac   :  { %v998_v52 = vpop.permute.xlu1 %997 }
 0x2ad   :  { %v1006_v34 = vmul.f32 %v3383_v23, %v998_v52  ;;  %v995_v36 = vadd.f32 %v993_v15, %v972_v61 }
 0x2ae   :  { %907 = vrot.lane.b32.xlu1 %v2968_v40, %s3931_s1  ;;  %s3951_s1 = smov 103  }
 0x2af   :  { %v1016_v63 = vmul.f32 %v3147_v54, %v1006_v34  ;;  %v3424_v54 = vld [vmem:[%s3813_s6 + $0x1b] ss:$0 sm:$0xff] }
 0x2b0   :  { %v1021_v33 = vpop.permute.xlu1 %1020 }
 0x2b1   :  { %v1029_v5 = vmul.f32 %v3394_v38, %v1021_v33  ;;  %v1018_v32 = vadd.f32 %v1016_v63, %v995_v36 }
 0x2b2   :  { %953 = vrot.lane.b32.xlu1 %v2968_v40, %s3933_s21 }
 0x2b3   :  { %v1039_v18 = vmul.f32 %v2945_v51, %v1029_v5  ;;  %v3426_v51 = vpop.permute.xlu0 %1404 }
 0x2b4   :  { %v1044_v39 = vpop.permute.xlu1 %1043  ;;  %3935 = vst [vmem:[#allocation77_spill] sm:$0xff] %v3426_v51 }
 0x2b5   :  { %v1052_v52 = vmul.f32 %v3401_v43, %v1044_v39  ;;  %v1041_v50 = vadd.f32 %v1039_v18, %v1018_v32 }
 0x2b6   :  { %999 = vrot.lane.b32.xlu1 %v2968_v40, %s2476_s10  ;;  %s3936_s10 = smov 125  }
 0x2b7   :  { %v1062_v30 = vmul.f32 %v3159_v58, %v1052_v52  ;;  %v3438_v61 = vpop.permute.xlu0 %1423  ;;  %v3446_v52 = vld [vmem:[%s3813_s6 + $0x1d] ss:$0 sm:$0xff] }
 0x2b8   :  { %v1067_v42 = vpop.permute.xlu1 %1066 }
 0x2b9   :  { %v1075_v6 = vmul.f32 %v3415_v48, %v1067_v42  ;;  %v1064_v15 = vadd.f32 %v1062_v30, %v1041_v50  ;;  %v3458_v30 = vld [vmem:[%s3813_s6 + $0x1e] ss:$0 sm:$0xff] }
 0x2ba   :  { %1045 = vrot.lane.b32.xlu1 %v2968_v40, %s3934_s3  ;;  %s3940_s3 = smov 109  }
 0x2bb   :  { %v1085_v33 = vmul.f32 %v2951_v56, %v1075_v6  ;;  %v3452_v6 = vpop.permute.xlu0 %1450 }
 0x2bc   :  { %v1090_v41 = vpop.permute.xlu1 %1089  ;;  %3937 = vst [vmem:[#allocation78_spill] sm:$0xff] %v3452_v6 }
 0x2bd   :  { %v1098_v34 = vmul.f32 %v3424_v54, %v1090_v41  ;;  %v1087_v5 = vadd.f32 %v1085_v33, %v1064_v15  ;;  %v3466_v41 = vld [vmem:[%s3813_s6 + $0x1f] ss:$0 sm:$0xff] }
 0x2be   :  { %1091 = vrot.lane.b32.xlu1 %v2968_v40, %s3936_s10  ;;  %s2492_s10 = smov 106  }
 0x2bf   :  { %v1108_v58 = vmul.f32 %v3169_v28, %v1098_v34  ;;  %v3469_v15 = vpop.permute.xlu0 %1492 }
 0x2c0   :  { %v1113_v39 = vpop.permute.xlu1 %1112  ;;  %3938 = vst [vmem:[#allocation79_spill] sm:$0xff] %v3469_v15 }
 0x2c1   :  { %v1121_v56 = vmul.f32 %v3436_v59, %v1113_v39  ;;  %v1110_v63 = vadd.f32 %v1108_v58, %v1087_v5 }
 0x2c2   :  { %1137 = vrot.lane.b32.xlu1 %v2968_v40, %s2484_s27 }
 0x2c3   :  { %v1131_v28 = vmul.f32 %v2972_v62, %v1121_v56  ;;  %v3478_v56 = vld [vmem:[%s3813_s6 + $0x20] ss:$0 sm:$0xff] }
 0x2c4   :  { %v1136_v18 = vpop.permute.xlu1 %1135 }
 0x2c5   :  { %v1144_v36 = vmul.f32 %v3446_v52, %v1136_v18  ;;  %v1133_v42 = vadd.f32 %v1131_v28, %v1110_v63  ;;  %v3486_v18 = vld [vmem:[%s3813_s6 + $0x21] ss:$0 sm:$0xff] }
 0x2c6   :  { %1183 = vrot.lane.b32.xlu1 %v2968_v40, %s2486_s25  ;;  %s3941_s25 = smov 105  }
 0x2c7   :  { %v1154_v32 = vmul.f32 %v3179_v35, %v1144_v36  ;;  %v3488_v36 = vpop.permute.xlu0 %516 }
 0x2c8   :  { %v1159_v33 = vpop.permute.xlu1 %1158 }
 0x2c9   :  { %v1167_v50 = vmul.f32 %v3458_v30, %v1159_v33  ;;  %v1156_v62 = vadd.f32 %v1154_v32, %v1133_v42 }
 0x2ca   :  { %1229 = vrot.lane.b32.xlu1 %v2968_v40, %s2487_s24 }
 0x2cb   :  { %v1177_v34 = vmul.f32 %v2987_v60, %v1167_v50 }
 0x2cc   :  { %v1182_v35 = vpop.permute.xlu1 %1181 }
 0x2cd   :  { %v1190_v58 = vmul.f32 %v3466_v41, %v1182_v35  ;;  %v1179_v5 = vadd.f32 %v1177_v34, %v1156_v62  ;;  %v3498_v62 = vld [vmem:[%s3813_s6 + $0x22] ss:$0 sm:$0xff]  ;;  %v3500_v35 = vpop.permute.xlu0 %562 }
 0x2ce   :  { %1275 = vrot.lane.b32.xlu1 %v2968_v40, %s2488_s28  ;;  %s3939_s28 = smov 111  }
 0x2cf   :  { %v1200_v39 = vmul.f32 %v3196_v13, %v1190_v58 }
 0x2d0   :  { %v1205_v63 = vpop.permute.xlu1 %1204 }
 0x2d1   :  { %v1213_v28 = vmul.f32 %v3478_v56, %v1205_v63  ;;  %v1202_v60 = vadd.f32 %v1200_v39, %v1179_v5  ;;  %v3508_v5 = vld [vmem:[%s3813_s6 + $0x23] ss:$0 sm:$0xff] }
 0x2d2   :  { %1321 = vrot.lane.b32.xlu1 %v2968_v40, %s2489_s30 }
 0x2d3   :  { %v1223_v13 = vmul.f32 %v3003_v3, %v1213_v28 }
 0x2d4   :  { %v1228_v42 = vpop.permute.xlu1 %1227 }
 0x2d5   :  { %v1236_v32 = vmul.f32 %v3486_v18, %v1228_v42  ;;  %v1225_v33 = vadd.f32 %v1223_v13, %v1202_v60  ;;  %v3513_v60 = vpop.permute.xlu0 %608  ;;  %v3519_v42 = vld [vmem:[%s3813_s6 + $0x24] ss:$0 sm:$0xff] }
 0x2d6   :  { %1367 = vrot.lane.b32.xlu1 %v2968_v40, %s3939_s28 }
 0x2d7   :  { %v1246_v50 = vmul.f32 %v3248_v45, %v1236_v32 }
 0x2d8   :  { %v1251_v34 = vpop.permute.xlu1 %1250 }
 0x2d9   :  { %v1259_v58 = vmul.f32 %v3498_v62, %v1251_v34  ;;  %v1248_v3 = vadd.f32 %v1246_v50, %v1225_v33  ;;  %v3526_v50 = vld [vmem:[%s3813_s6 + $0x25] ss:$0 sm:$0xff] }
 0x2da   :  { %1413 = vrot.lane.b32.xlu1 %v2968_v40, %s3940_s3  ;;  %s2493_s3 = smov 104  }
 0x2db   :  { %v1269_v45 = vmul.f32 %v3021_v31, %v1259_v58 }
 0x2dc   :  { %v1274_v39 = vpop.permute.xlu1 %1273 }
 0x2dd   :  { %v1282_v63 = vmul.f32 %v3508_v5, %v1274_v39  ;;  %v1271_v28 = vadd.f32 %v1269_v45, %v1248_v3  ;;  %v2362_v39 = vld [vmem:[%s3812_s5 + $0x8] sm:$0xff] }
 0x2de   :  { %1457 = vrot.lane.b32.xlu1 %v2964_v47, %s2492_s10 }
 0x2df   :  { %v1292_v13 = vmul.f32 %v3300_v17, %v1282_v63  ;;  %v3529_v17 = vpop.permute.xlu0 %654 }
 0x2e0   :  { %v1297_v32 = vpop.permute.xlu1 %1296 }
 0x2e1   :  { %v1305_v33 = vmul.f32 %v3519_v42, %v1297_v32  ;;  %v1294_v31 = vadd.f32 %v1292_v13, %v1271_v28  ;;  %v3539_v28 = vld [vmem:[%s3813_s6 + $0x26] ss:$0 sm:$0xff] }
 0x2e2   :  { %1459 = vrot.lane.b32.xlu1 %v2968_v40, %s2492_s10 }
 0x2e3   :  { %v1315_v34 = vmul.f32 %v3040_v29, %v1305_v33  ;;  %v3547_v33 = vld [vmem:[%s3813_s6 + $0x27] ss:$0 sm:$0xff] }
 0x2e4   :  { %v1320_v58 = vpop.permute.xlu1 %1319  ;;  %3942 = vst [vmem:[#allocation80_spill] sm:$0xff] %v3547_v33 }
 0x2e5   :  { %v1328_v3 = vmul.f32 %v3526_v50, %v1320_v58  ;;  %v1317_v45 = vadd.f32 %v1315_v34, %v1294_v31  ;;  %v3549_v31 = vpop.permute.xlu0 %700  ;;  %v3943_v34 = vmov 47  }
 0x2e6   :  { %1542 = vperm.xlu1 %2353, %v2362_v39  }
 0x2e7   :  { %v1338_v63 = vmul.f32 %v3353_v24, %v1328_v3 }
 0x2e8   :  { %v1343_v13 = vpop.permute.xlu1 %1342 }
 0x2e9   :  { %v1351_v29 = vmul.f32 %v3539_v28, %v1343_v13  ;;  %v1340_v32 = vadd.f32 %v1338_v63, %v1317_v45  ;;  %v2363_v45 = vld [vmem:[%s3812_s5] sm:$0xff]  ;;  %v3561_v13 = vld [vmem:[%s3813_s6 + $0x28] ss:$0 sm:$0xff] }
 0x2ea   :  { %1480 = vrot.lane.b32.xlu1 %v2964_v47, %s3941_s25  ;;  %3944 = vst [vmem:[#allocation81_spill] sm:$0xff] %v3561_v13 }
 0x2eb   :  { %v1361_v24 = vmul.f32 %v3060_v27, %v1351_v29  ;;  %2354 = vset.pattern.permute.xlu1 %v3943_v34  ;;  %v3563_v27 = vpop.permute.xlu0 %746 }
 0x2ec   :  { %v1366_v58 = vpop.permute.xlu1 %1365 }
 0x2ed   :  { %v1374_v3 = vmul.f32 %v3547_v33, %v1366_v58  ;;  %v1363_v15 = vadd.f32 %v1361_v24, %v1340_v32  ;;  %v3570_v32 = vld [vmem:[%s3813_s6 + $0x29] ss:$0 sm:$0xff]  ;;  %v3946_v24 = vmov 48  }
 0x2ee   :  { %1561 = vperm.xlu1 %2354, %v2363_v45   ;;  %3945 = vst [vmem:[#allocation82_spill] sm:$0xff] %v3570_v32 }
 0x2ef   :  { %v1384_v63 = vmul.f32 %v3405_v49, %v1374_v3 }
 0x2f0   :  { %v1389_v6 = vpop.permute.xlu1 %1388 }
 0x2f1   :  { %v1397_v29 = vmul.f32 %v3561_v13, %v1389_v6  ;;  %v1386_v34 = vadd.f32 %v1384_v63, %v1363_v15  ;;  %v793_v6 = vpop.permute.xlu0 %792  ;;  %v3580_v63 = vld [vmem:[%s3813_s6 + $0x2a] ss:$0 sm:$0xff] }
 0x2f2   :  { %1503 = vrot.lane.b32.xlu1 %v2964_v47, %s2493_s3  ;;  %3947 = vst [vmem:[#allocation83_spill] sm:$0xff] %v3580_v63 }
 0x2f3   :  { %v1407_v49 = vmul.f32 %v3080_v25, %v1397_v29  ;;  %2357 = vset.pattern.permute.xlu1 %v3946_v24 }
 0x2f4   :  { %v1412_v58 = vpop.permute.xlu1 %1411 }
 0x2f5   :  { %v1420_v3 = vmul.f32 %v3570_v32, %v1412_v58  ;;  %v1409_v45 = vadd.f32 %v1407_v49, %v1386_v34  ;;  %v3948_v34 = vld [vmem:[#allocation73_spill] sm:$0xff]  ;;  %v839_v58 = vpop.permute.xlu0 %838  ;;  %v3949_v32 = vld [vmem:[#allocation72_spill] sm:$0xff] }
 0x2f6   :  { %1505 = vrot.lane.b32.xlu1 %v2968_v40, %s2493_s3  ;;  %v524_v49 = vmul.f32 %v3948_v34, %v3488_v36  ;;  %v3955_v34 = vld [vmem:[#allocation74_spill] sm:$0xff] }
 0x2f7   :  { %v1430_v15 = vmul.f32 %v3438_v61, %v1420_v3  ;;  %v3952_v3 = vld [vmem:[#allocation28_spill] sm:$0xff] }
 0x2f8   :  { %v1435_v51 = vpop.permute.xlu1 %1434  ;;  %v490_v33 = vmul.f32 %v3952_v3, %v2968_v40  ;;  %v3958_v40 = vld [vmem:[#allocation47_spill] sm:$0xff] }
 0x2f9   :  { %v1443_v13 = vmul.f32 %v3580_v63, %v1435_v51  ;;  %v1432_v25 = vadd.f32 %v1430_v15, %v1409_v45  ;;  %v3953_v51 = vld [vmem:[#allocation30_spill] sm:$0xff]  ;;  %v3954_v15 = vld [vmem:[#allocation43_spill] sm:$0xff] }
 0x2fa   :  { %1588 = vperm.xlu1 %2357, %v2362_v39  }
 0x2fb   :  { %v1453_v29 = vmul.f32 %v3100_v26, %v1443_v13  ;;  %v534_v26 = vmul.f32 %v3954_v15, %v524_v49  ;;  %v570_v13 = vmul.f32 %v3217_v7, %v3500_v35  ;;  %v3960_v35 = vld [vmem:[#allocation32_spill] sm:$0xff] }
 0x2fc   :  { %v494_v24 = vpop.permute.xlu1 %493 }
 0x2fd   :  { %v501_v1 = vmul.f32 %v3949_v32, %v494_v24  ;;  %v3587_v61 = vadd.f32 %v1453_v29, %v1432_v25  ;;  %v885_v32 = vpop.permute.xlu0 %884  ;;  %v3957_v29 = vld [vmem:[#allocation31_spill] sm:$0xff]  ;;  %v580_v3 = vmul.f32 %v3958_v40, %v570_v13 }
 0x2fe   :  { %1526 = vrot.lane.b32.xlu1 %v2964_v47, %s3951_s1 }
 0x2ff   :  { %3950 = vst [vmem:[#allocation73_spill] sm:$0xff] %v3587_v61  ;;  %v511_v45 = vmul.f32 %v3953_v51, %v501_v1  ;;  %v616_v1 = vmul.f32 %v3237_v37, %v3513_v60  ;;  %v3962_v60 = vld [vmem:[#allocation33_spill] sm:$0xff] }
 0x300   :  { %v540_v39 = vpop.permute.xlu1 %539 }
 0x301   :  { %v513_v36 = vadd.f32 %v511_v45, %v490_v33  ;;  %v547_v63 = vmul.f32 %v3955_v34, %v540_v39  ;;  %v3961_v39 = vld [vmem:[#allocation49_spill] sm:$0xff] }
 0x302   :  { %1549 = vrot.lane.b32.xlu1 %v2964_v47, %s3956_s20  ;;  %v626_v15 = vmul.f32 %v3961_v39, %v616_v1  ;;  %v3964_v1 = vld [vmem:[#allocation34_spill] sm:$0xff] }
 0x303   :  { %v536_v25 = vadd.f32 %v534_v26, %v513_v36  ;;  %v557_v24 = vmul.f32 %v3957_v29, %v547_v63  ;;  %v662_v63 = vmul.f32 %v3255_v2, %v3529_v17  ;;  %v931_v26 = vpop.permute.xlu0 %930 }
 0x304   :  { %v586_v61 = vpop.permute.xlu1 %585 }
 0x305   :  { %v559_v49 = vadd.f32 %v557_v24, %v536_v25  ;;  %v593_v51 = vmul.f32 %v3224_v57, %v586_v61  ;;  %v3963_v61 = vld [vmem:[#allocation51_spill] sm:$0xff] }
 0x306   :  { %1572 = vrot.lane.b32.xlu1 %v2964_v47, %s3959_s19  ;;  %v672_v25 = vmul.f32 %v3963_v61, %v662_v63  ;;  %v708_v47 = vmul.f32 %v3271_v4, %v3549_v31  ;;  %v3967_v31 = vld [vmem:[#allocation55_spill] sm:$0xff] }
 0x307   :  { %v582_v7 = vadd.f32 %v580_v3, %v559_v49  ;;  %v603_v33 = vmul.f32 %v3960_v35, %v593_v51  ;;  %v977_v40 = vpop.permute.xlu0 %976  ;;  %v3965_v49 = vld [vmem:[#allocation53_spill] sm:$0xff] }
 0x308   :  { %v632_v45 = vpop.permute.xlu1 %631  ;;  %v718_v51 = vmul.f32 %v3965_v49, %v708_v47 }
 0x309   :  { %v605_v13 = vadd.f32 %v603_v33, %v582_v7  ;;  %v639_v36 = vmul.f32 %v3244_v0, %v632_v45  ;;  %v754_v0 = vmul.f32 %v3289_v44, %v3563_v27  ;;  %v3966_v45 = vld [vmem:[#allocation35_spill] sm:$0xff]  ;;  %v3969_v44 = vld [vmem:[#allocation57_spill] sm:$0xff] }
 0x30b   :  { %v628_v37 = vadd.f32 %v626_v15, %v605_v13  ;;  %v649_v34 = vmul.f32 %v3962_v60, %v639_v36  ;;  %v764_v15 = vmul.f32 %v3967_v31, %v754_v0  ;;  %v1023_v63 = vpop.permute.xlu0 %1022  ;;  %v3968_v60 = vld [vmem:[#allocation36_spill] sm:$0xff] }
 0x30c   :  { %v678_v57 = vpop.permute.xlu1 %677 }
 0x30d   :  { %v651_v29 = vadd.f32 %v649_v34, %v628_v37  ;;  %v685_v24 = vmul.f32 %v3262_v8, %v678_v57  ;;  %v800_v8 = vmul.f32 %v3308_v55, %v793_v6  ;;  %v3971_v6 = vld [vmem:[#allocation59_spill] sm:$0xff] }
 0x30f   :  { %v674_v3 = vadd.f32 %v672_v25, %v651_v29  ;;  %v695_v2 = vmul.f32 %v3964_v1, %v685_v24  ;;  %v810_v27 = vmul.f32 %v3969_v44, %v800_v8  ;;  %v1069_v47 = vpop.permute.xlu0 %1068  ;;  %v3970_v24 = vld [vmem:[#allocation37_spill] sm:$0xff] }
 0x310   :  { %v724_v17 = vpop.permute.xlu1 %723 }
 0x311   :  { %v697_v7 = vadd.f32 %v695_v2, %v674_v3  ;;  %v731_v35 = vmul.f32 %v3278_v10, %v724_v17  ;;  %v846_v10 = vmul.f32 %v3324_v53, %v839_v58  ;;  %v3973_v53 = vld [vmem:[#allocation61_spill] sm:$0xff] }
 0x313   :  { %v720_v33 = vadd.f32 %v718_v51, %v697_v7  ;;  %v741_v39 = vmul.f32 %v3966_v45, %v731_v35  ;;  %v856_v1 = vmul.f32 %v3971_v6, %v846_v10  ;;  %v3972_v51 = vld [vmem:[#allocation38_spill] sm:$0xff]  ;;  %v1115_v35 = vpop.permute.xlu0 %1114 }
 0x314   :  { %v770_v4 = vpop.permute.xlu1 %769 }
 0x315   :  { %v743_v13 = vadd.f32 %v741_v39, %v720_v33  ;;  %v777_v36 = vmul.f32 %v3296_v12, %v770_v4  ;;  %v892_v12 = vmul.f32 %v3342_v46, %v885_v32  ;;  %v3974_v4 = vld [vmem:[#allocation39_spill] sm:$0xff]  ;;  %v3975_v46 = vld [vmem:[#allocation64_spill] sm:$0xff] }
 0x317   :  { %v766_v37 = vadd.f32 %v764_v15, %v743_v13  ;;  %v787_v34 = vmul.f32 %v3968_v60, %v777_v36  ;;  %v902_v58 = vmul.f32 %v3973_v53, %v892_v12  ;;  %v1161_v36 = vpop.permute.xlu0 %1160  ;;  %v3976_v60 = vld [vmem:[#allocation40_spill] sm:$0xff]  ;;  %v1122_v53 = vmul.f32 %v3436_v59, %v1115_v35 }
 0x318   :  { %v816_v57 = vpop.permute.xlu1 %815 }
 0x319   :  { %v789_v61 = vadd.f32 %v787_v34, %v766_v37  ;;  %v823_v25 = vmul.f32 %v3315_v14, %v816_v57  ;;  %v938_v14 = vmul.f32 %v3360_v20, %v931_v26  ;;  %v3977_v26 = vld [vmem:[#allocation67_spill] sm:$0xff] }
 0x31b   :  { %v812_v29 = vadd.f32 %v810_v27, %v789_v61  ;;  %v833_v3 = vmul.f32 %v3970_v24, %v823_v25  ;;  %v948_v32 = vmul.f32 %v3975_v46, %v938_v14  ;;  %v3978_v61 = vld [vmem:[#allocation41_spill] sm:$0xff]  ;;  %v1207_v24 = vpop.permute.xlu0 %1206 }
 0x31c   :  { %v862_v55 = vpop.permute.xlu1 %861 }
 0x31d   :  { %v835_v2 = vadd.f32 %v833_v3, %v812_v29  ;;  %v869_v17 = vmul.f32 %v3331_v16, %v862_v55  ;;  %v984_v16 = vmul.f32 %v3376_v11, %v977_v40  ;;  %v3979_v11 = vld [vmem:[#allocation68_spill] sm:$0xff] }
 0x31f   :  { %v858_v49 = vadd.f32 %v856_v1, %v835_v2  ;;  %v879_v0 = vmul.f32 %v3972_v51, %v869_v17  ;;  %v994_v57 = vmul.f32 %v3977_v26, %v984_v16  ;;  %v3980_v1 = vld [vmem:[#allocation42_spill] sm:$0xff] }
 0x320   :  { %v908_v7 = vpop.permute.xlu1 %907 }
 0x321   :  { %v881_v33 = vadd.f32 %v879_v0, %v858_v49  ;;  %v915_v45 = vmul.f32 %v3349_v19, %v908_v7  ;;  %v1030_v19 = vmul.f32 %v3394_v38, %v1023_v63  ;;  %v3981_v38 = vld [vmem:[#allocation69_spill] sm:$0xff]  ;;  %v1253_v49 = vpop.permute.xlu0 %1252  ;;  %v3982_v0 = vld [vmem:[#allocation44_spill] sm:$0xff] }
 0x323   :  { %v904_v39 = vadd.f32 %v902_v58, %v881_v33  ;;  %v925_v31 = vmul.f32 %v3974_v4, %v915_v45  ;;  %v1040_v40 = vmul.f32 %v3979_v11, %v1030_v19  ;;  %v3984_v4 = vld [vmem:[#allocation48_spill] sm:$0xff] }
 0x324   :  { %v954_v15 = vpop.permute.xlu1 %953 }
 0x325   :  { %v927_v8 = vadd.f32 %v925_v31, %v904_v39  ;;  %v961_v13 = vmul.f32 %v3367_v21, %v954_v15  ;;  %v1076_v21 = vmul.f32 %v3415_v48, %v1069_v47  ;;  %v1299_v45 = vpop.permute.xlu0 %1298  ;;  %v1168_v15 = vmul.f32 %v3458_v30, %v1161_v36 }
 0x327   :  { %v950_v37 = vadd.f32 %v948_v32, %v927_v8  ;;  %v971_v34 = vmul.f32 %v3976_v60, %v961_v13  ;;  %v1086_v63 = vmul.f32 %v3981_v38, %v1076_v21  ;;  %v3985_v8 = vld [vmem:[#allocation71_spill] sm:$0xff]  ;;  %v3986_v13 = vld [vmem:[#allocation50_spill] sm:$0xff]  ;;  %v1214_v60 = vmul.f32 %v3478_v56, %v1207_v24 }
 0x328   :  { %v1000_v20 = vpop.permute.xlu1 %999  ;;  %v1178_v59 = vmul.f32 %v3985_v8, %v1168_v15  ;;  %v3989_v21 = vld [vmem:[#allocation54_spill] sm:$0xff]  ;;  %v3997_v15 = vld [vmem:[#allocation60_spill] sm:$0xff] }
 0x329   :  { %v973_v44 = vadd.f32 %v971_v34, %v950_v37  ;;  %v1007_v27 = vmul.f32 %v3383_v23, %v1000_v20  ;;  %v1345_v16 = vpop.permute.xlu0 %1344 }
 0x32b   :  { %v996_v10 = vadd.f32 %v994_v57, %v973_v44  ;;  %v1017_v25 = vmul.f32 %v3978_v61, %v1007_v27  ;;  %v3987_v57 = vld [vmem:[#allocation75_spill] sm:$0xff]  ;;  %v3988_v44 = vld [vmem:[#allocation52_spill] sm:$0xff] }
 0x32c   :  { %v1046_v29 = vpop.permute.xlu1 %1045  ;;  %v1224_v19 = vmul.f32 %v3987_v57, %v1214_v60 }
 0x32d   :  { %v1019_v3 = vadd.f32 %v1017_v25, %v996_v10  ;;  %v1053_v55 = vmul.f32 %v3401_v43, %v1046_v29  ;;  %v3983_v43 = vld [vmem:[#allocation70_spill] sm:$0xff]  ;;  %v1391_v34 = vpop.permute.xlu0 %1390  ;;  %v1260_v10 = vmul.f32 %v3498_v62, %v1253_v49 }
 0x32e   :  { %v1132_v14 = vmul.f32 %v3983_v43, %v1122_v53 }
 0x32f   :  { %v1042_v6 = vadd.f32 %v1040_v40, %v1019_v3  ;;  %v1063_v12 = vmul.f32 %v3980_v1, %v1053_v55  ;;  %v1270_v56 = vmul.f32 %v3280_v22, %v1260_v10  ;;  %v1352_v22 = vmul.f32 %v3539_v28, %v1345_v16 }
 0x330   :  { %v1092_v2 = vpop.permute.xlu1 %1091 }
 0x331   :  { %v1065_v17 = vadd.f32 %v1063_v12, %v1042_v6  ;;  %v1099_v23 = vmul.f32 %v3424_v54, %v1092_v2  ;;  %v3990_v2 = vld [vmem:[#allocation56_spill] sm:$0xff] }
 0x333   :  { %v1088_v51 = vadd.f32 %v1086_v63, %v1065_v17  ;;  %v1109_v7 = vmul.f32 %v3982_v0, %v1099_v23  ;;  %v3991_v23 = vld [vmem:[#allocation80_spill] sm:$0xff] }
 0x334   :  { %v1138_v48 = vpop.permute.xlu1 %1137 }
 0x335   :  { %v1111_v47 = vadd.f32 %v1109_v7, %v1088_v51  ;;  %v1145_v58 = vmul.f32 %v3446_v52, %v1138_v48  ;;  %v3992_v51 = vld [vmem:[#allocation76_spill] sm:$0xff]  ;;  %v3993_v48 = vld [vmem:[#allocation58_spill] sm:$0xff] }
 0x337   :  { %v1134_v39 = vadd.f32 %v1132_v14, %v1111_v47  ;;  %v1155_v31 = vmul.f32 %v3984_v4, %v1145_v58  ;;  %v3995_v14 = vld [vmem:[#allocation82_spill] sm:$0xff] }
 0x338   :  { %v1184_v33 = vpop.permute.xlu1 %1183 }
 0x339   :  { %v1157_v46 = vadd.f32 %v1155_v31, %v1134_v39  ;;  %v1191_v32 = vmul.f32 %v3466_v41, %v1184_v33  ;;  %v1437_v41 = vpop.permute.xlu0 %1436  ;;  %v3996_v39 = vld [vmem:[#allocation77_spill] sm:$0xff] }
 0x33b   :  { %v1180_v35 = vadd.f32 %v1178_v59, %v1157_v46  ;;  %v1201_v37 = vmul.f32 %v3986_v13, %v1191_v32  ;;  %v2067_v46 = vld [vmem:[%s3813_s6 + $0x2b] ss:$0 sm:$0xff]  ;;  %v3998_v32 = vld [vmem:[#allocation83_spill] sm:$0xff] }
 0x33c   :  { %v1230_v54 = vpop.permute.xlu1 %1229  ;;  %v1444_v16 = vmul.f32 %v3998_v32, %v1437_v41  ;;  %v2069_v41 = vld [vmem:[%s3813_s6 + $0x2d] ss:$0 sm:$0xff] }
 0x33d   :  { %v1203_v20 = vadd.f32 %v1201_v37, %v1180_v35  ;;  %v1237_v26 = vmul.f32 %v3486_v18, %v1230_v54  ;;  %v1520_v29 = vpop.permute.xlu0 %1519  ;;  %v1306_v18 = vmul.f32 %v3519_v42, %v1299_v45  ;;  %v1362_v42 = vmul.f32 %v3992_v51, %v1352_v22  ;;  %v2068_v37 = vld [vmem:[%s3813_s6 + $0x2c] ss:$0 sm:$0xff]  ;;  %v4002_v22 = vld [vmem:[#allocation62_spill] sm:$0xff] }
 0x33f   :  { %v1226_v36 = vadd.f32 %v1224_v19, %v1203_v20  ;;  %v1247_v27 = vmul.f32 %v3988_v44, %v1237_v26  ;;  %v1316_v62 = vmul.f32 %v3333_v9, %v1306_v18 }
 0x340   :  { %v1276_v52 = vpop.permute.xlu1 %1275 }
 0x341   :  { %v1249_v61 = vadd.f32 %v1247_v27, %v1226_v36  ;;  %v1283_v25 = vmul.f32 %v3508_v5, %v1276_v52  ;;  %v3671_v3 = vpop.permute.xlu0 %1538  ;;  %v3999_v52 = vld [vmem:[#allocation78_spill] sm:$0xff]  ;;  %v2071_v36 = vld [vmem:[%s3813_s6 + $0x2f] ss:$0 sm:$0xff]  ;;  %v2070_v27 = vld [vmem:[%s3813_s6 + $0x2e] ss:$0 sm:$0xff] }
 0x342   :  { %v1454_v60 = vmul.f32 %v3999_v52, %v1444_v16 }
 0x343   :  { %v1272_v40 = vadd.f32 %v1270_v56, %v1249_v61  ;;  %v1293_v24 = vmul.f32 %v3989_v21, %v1283_v25  ;;  %v4001_v61 = vld [vmem:[#allocation65_spill] sm:$0xff] }
 0x344   :  { %v1322_v30 = vpop.permute.xlu1 %1321 }
 0x345   :  { %v1295_v6 = vadd.f32 %v1293_v24, %v1272_v40  ;;  %v1329_v1 = vmul.f32 %v3526_v50, %v1322_v30  ;;  %v1483_v38 = vpop.permute.xlu0 %1482  ;;  %v3994_v50 = vld [vmem:[#allocation81_spill] sm:$0xff] }
 0x346   :  { %v1398_v58 = vmul.f32 %v3994_v50, %v1391_v34  ;;  %v4000_v34 = vld [vmem:[#allocation63_spill] sm:$0xff]  ;;  %v1490_v57 = vmul.f32 %v2068_v37, %v1483_v38  ;;  %v4005_v50 = vld [vmem:[#allocation66_spill] sm:$0xff] }
 0x347   :  { %v1318_v12 = vadd.f32 %v1316_v62, %v1295_v6  ;;  %v1339_v5 = vmul.f32 %v3990_v2, %v1329_v1 }
 0x348   :  { %v1368_v11 = vpop.permute.xlu1 %1367  ;;  %v1408_v4 = vmul.f32 %v3996_v39, %v1398_v58  ;;  %v1500_v25 = vmul.f32 %v4001_v61, %v1490_v57 }
 0x349   :  { %v1341_v17 = vadd.f32 %v1339_v5, %v1318_v12  ;;  %v1375_v49 = vmul.f32 %v3991_v23, %v1368_v11  ;;  %v1566_v0 = vpop.permute.xlu0 %1565 }
 0x34b   :  { %v1364_v53 = vadd.f32 %v1362_v42, %v1341_v17  ;;  %v1385_v47 = vmul.f32 %v3993_v48, %v1375_v49  ;;  %v4003_v42 = vld [vmem:[#allocation79_spill] sm:$0xff]  ;;  %v4004_v48 = vld [vmem:[#allocation73_spill] sm:$0xff] }
 0x34c   :  { %v1414_v55 = vpop.permute.xlu1 %1413 }
 0x34d   :  { %v1387_v43 = vadd.f32 %v1385_v47, %v1364_v53  ;;  %v1421_v33 = vmul.f32 %v3995_v14, %v1414_v55  ;;  %v1585_v45 = vpop.permute.xlu0 %1584  ;;  %v2072_v55 = vld [vmem:[%s3813_s6 + $0x30] ss:$0 sm:$0xff] }
 0x34f   :  { %v1410_v31 = vadd.f32 %v1408_v4, %v1387_v43  ;;  %v1431_v54 = vmul.f32 %v3997_v15, %v1421_v33 }
 0x350   :  { %v1458_v63 = vpop.permute.xlu1 %1457 }
 0x351   :  { %v1529_v59 = vpop.permute.xlu0 %1528  ;;  %v1433_v13 = vadd.f32 %v1431_v54, %v1410_v31  ;;  %v1466_v21 = vmul.f32 %v2067_v46, %v1458_v63 }
 0x352   :  { %v1536_v40 = vmul.f32 %v2070_v27, %v1529_v59 }
 0x353   :  { %v1456_v19 = vadd.f32 %v1454_v60, %v1433_v13  ;;  %v1476_v17 = vmul.f32 %v4002_v22, %v1466_v21 }
 0x354   :  { %v1460_v7 = vpop.permute.xlu1 %1459 }
 0x355   :  { %v1467_v8 = vmul.f32 %v2067_v46, %v1460_v7  ;;  %v1552_v30 = vpop.permute.xlu0 %1551  ;;  %v1478_v47 = vadd.f32 %v1476_v17, %v4004_v48 }
 0x356   :  { %v1559_v56 = vmul.f32 %v2071_v36, %v1552_v30 }
 0x357   :  { %v1477_v20 = vmul.f32 %v4000_v34, %v1467_v8 }
 0x358   :  { %v1569_v5 = vmul.f32 %v1566_v0, %v1559_v56 }
 0x359   :  { %v1479_v44 = vadd.f32 %v1477_v20, %v1456_v19  ;;  %v1575_v6 = vpop.permute.xlu0 %1574 }
 0x35a   :  { %v1582_v38 = vmul.f32 %v2072_v55, %v1575_v6 }
 0x35b   :  { %v1502_v24 = vadd.f32 %v1500_v25, %v1479_v44 }
 0x365   :  { %v1543_v9 = vpop.permute.xlu1 %1542 }
 0x366   :  { %v1546_v62 = vmul.f32 %v1543_v9, %v1536_v40 }
 0x369   :  { %v1481_v28 = vpop.permute.xlu1 %1480 }
 0x36a   :  { %v1489_v12 = vmul.f32 %v2068_v37, %v1481_v28 }
 0x36c   :  { %v1499_v63 = vmul.f32 %v4003_v42, %v1489_v12 }
 0x36d   :  { %v1562_v35 = vpop.permute.xlu1 %1561 }
 0x36e   :  { %v1501_v14 = vadd.f32 %v1499_v63, %v1478_v47 }
 0x371   :  { %v1504_v26 = vpop.permute.xlu1 %1503 }
 0x372   :  { %v1512_v23 = vmul.f32 %v2069_v41, %v1504_v26 }
 0x374   :  { %v1522_v58 = vmul.f32 %v4005_v50, %v1512_v23 }
 0x375   :  { %v1506_v10 = vpop.permute.xlu1 %1505 }
 0x376   :  { %v1513_v11 = vmul.f32 %v2069_v41, %v1506_v10  ;;  %v1524_v39 = vadd.f32 %v1522_v58, %v1501_v14 }
 0x378   :  { %v1523_v18 = vmul.f32 %v1520_v29, %v1513_v11 }
 0x379   :  { %v1589_v1 = vpop.permute.xlu1 %1588 }
 0x37a   :  { %v1525_v2 = vadd.f32 %v1523_v18, %v1502_v24  ;;  %v1592_v29 = vmul.f32 %v1589_v1, %v1582_v38 }
 0x37c   :  { %v1548_v49 = vadd.f32 %v1546_v62, %v1525_v2 }
 0x37d   :  { %v1527_v51 = vpop.permute.xlu1 %1526 }
 0x37e   :  { %v1571_v7 = vadd.f32 %v1569_v5, %v1548_v49  ;;  %v1535_v53 = vmul.f32 %v2070_v27, %v1527_v51 }
 0x380   :  { %v3710_v43 = vadd.f32 %v1592_v29, %v1571_v7  ;;  %v1545_v0 = vmul.f32 %v3671_v3, %v1535_v53 }
 0x381   :  { %v1550_v9 = vpop.permute.xlu1 %1549 }
 0x382   :  { %v1558_v33 = vmul.f32 %v2071_v36, %v1550_v9  ;;  %v1547_v31 = vadd.f32 %v1545_v0, %v1524_v39 }
 0x384   :  { %v1568_v4 = vmul.f32 %v1562_v35, %v1558_v33 }
 0x385   :  { %v1573_v28 = vpop.permute.xlu1 %1572 }
 0x386   :  { %v1581_v15 = vmul.f32 %v2072_v55, %v1573_v28  ;;  %v1570_v54 = vadd.f32 %v1568_v4, %v1547_v31 }
 0x388   :  { %v1591_v46 = vmul.f32 %v1585_v45, %v1581_v15 }
 0x38a   :  { %v3713_v32 = vadd.f32 %v1591_v46, %v1570_v54 }
 0x38b   :  { %2389 = dma.done.wait [#allocation4], 2048 }
 0x38c   :  { %2390 = vsyncadd [#allocation4], 4294965248  ;;  %v4006_v16 = vmov 0   ;;  %v1601_v8 = vld [vmem:[#allocation2 + $0x8] sm:$0xff]  ;;  %v1600_v59 = vld [vmem:[#allocation2] sm:$0xff] }
 0x38d   :  { %1648 = vmatprep.mubr.bf16.mxu1 %v4006_v16  ;;  %v1603_v13 = vld [vmem:[#allocation2 + $0x18] sm:$0xff]  ;;  %1616 = vmatprep.subr.bf16.mxu1 %v1601_v8  ;;  %v1602_v3 = vld [vmem:[#allocation2 + $0x10] sm:$0xff]  ;;  %v1605_v37 = vld [vmem:[#allocation2 + $0x28] sm:$0xff] }
 0x38e   :  { %1617 = vmatpush1.bf16.msra.mxu1 %v1600_v59  ;;  %v1604_v35 = vld [vmem:[#allocation2 + $0x20] sm:$0xff]  ;;  %v1607_v52 = vld [vmem:[#allocation2 + $0x38] sm:$0xff]  ;;  %v1606_v45 = vld [vmem:[#allocation2 + $0x30] sm:$0xff] }
 0x38f   :  { %1618 = vmatprep.subr.bf16.mxu1 %v1603_v13  ;;  %v1609_v60 = vld [vmem:[#allocation2 + $0x48] sm:$0xff]  ;;  %v1608_v34 = vld [vmem:[#allocation2 + $0x40] sm:$0xff]  ;;  %v1611_v20 = vld [vmem:[#allocation2 + $0x58] sm:$0xff] }
 0x390   :  { %v1610_v26 = vld [vmem:[#allocation2 + $0x50] sm:$0xff]  ;;  %v1613_v57 = vld [vmem:[#allocation2 + $0x68] sm:$0xff]  ;;  %v1612_v19 = vld [vmem:[#allocation2 + $0x60] sm:$0xff] }
 0x391   :  { %v1615_v30 = vld [vmem:[#allocation2 + $0x78] sm:$0xff]  ;;  %v1614_v36 = vld [vmem:[#allocation2 + $0x70] sm:$0xff]  ;;  %v1659_v25 = vld [vmem:[%s3815_s8] sm:$0xff] }
 0x392   :  { %1619 = vmatpush1.bf16.msra.mxu1 %v1602_v3  ;;  %v4007_v44 = vld [vmem:[#allocation45_spill] sm:$0xff]  ;;  %v4009_v41 = vld [vmem:[#allocation46_spill] sm:$0xff]  ;;  %v1663_v11 = vld [vmem:[%s3816_s9] sm:$0xff] }
 0x393   :  { %1620 = vmatprep.subr.bf16.mxu1 %v1605_v37  ;;  %v4008_v27 = vmax.f32 %v4007_v44, 0.0  ;;  %v4010_v10 = vmax.f32 %v4009_v41, 0.0  ;;  %v1660_v40 = vld [vmem:[%s3815_s8 + $0x8] sm:$0xff] }
 0x394   :  { %v1664_v21 = vld [vmem:[%s3816_s9 + $0x8] sm:$0xff] }
 0x395   :  { %v1599_v61 = vpack.c.bf16 %v4010_v10, %v4008_v27  ;;  %v4011_v7 = vld [vmem:[#allocation20_spill] sm:$0xff] }
 0x396   :  { %1621 = vmatpush1.bf16.msra.mxu1 %v1604_v35  ;;  %2088 = vmatprep.subr.bf16.mxu0 %v4011_v7 }
 0x397   :  { %1622 = vmatprep.subr.bf16.mxu1 %v1607_v52 }
 0x39a   :  { %1623 = vmatpush1.bf16.msra.mxu1 %v1606_v45 }
 0x39b   :  { %1624 = vmatprep.subr.bf16.mxu1 %v1609_v60 }
 0x39e   :  { %1625 = vmatpush1.bf16.msra.mxu1 %v1608_v34 }
 0x39f   :  { %1626 = vmatprep.subr.bf16.mxu1 %v1611_v20 }
 0x3a2   :  { %1627 = vmatpush1.bf16.msra.mxu1 %v1610_v26 }
 0x3a3   :  { %1628 = vmatprep.subr.bf16.mxu1 %v1613_v57 }
 0x3a6   :  { %1629 = vmatpush1.bf16.msra.mxu1 %v1612_v19 }
 0x3a7   :  { %1630 = vmatprep.subr.bf16.mxu1 %v1615_v30 }
 0x3aa   :  { %1631 = vmatpush1.bf16.msra.mxu1 %v1614_v36 }
 0x3ad   :  { %1649 = vmatmul.mubr.bf16.vlgmr.msra.gmra.mrb[4].mxu1 %v1599_v61 }
 0x480   :  { %v1650_v56 = vpop.f32.mrb[4].mxu1 }
 0x481   :  { %v1661_v24 = vmul.f32 %v1659_v25, %v1650_v56  ;;  %v1669_v18 = vmul.f32 %v1663_v11, %v1650_v56  ;;  %v1652_v55 = vpop.f32.mrb[5].mxu1 }
 0x482   :  { %v1665_v6 = vmul.f32 %v1663_v11, %v1652_v55  ;;  %v1671_v1 = vmul.f32 %v1659_v25, %v1652_v55  ;;  %v1654_v62 = vpop.f32.mrb[6].mxu1 }
 0x483   :  { %v1656_v12 = vpop.f32.mrb[7].mxu1  ;;  %v1662_v2 = vmul.f32 %v1660_v40, %v1654_v62  ;;  %v1670_v5 = vmul.f32 %v1664_v21, %v1654_v62 }
 0x484   :  { %v1667_v38 = vsub.f32 %v1661_v24, %v1665_v6  ;;  %v1673_v22 = vadd.f32 %v1671_v1, %v1669_v18  ;;  %v1666_v17 = vmul.f32 %v1664_v21, %v1656_v12  ;;  %v1672_v23 = vmul.f32 %v1660_v40, %v1656_v12 }
 0x486   :  { %v1668_v49 = vsub.f32 %v1662_v2, %v1666_v17  ;;  %v1674_v51 = vadd.f32 %v1672_v23, %v1670_v5 }
 0x488   :  { %v1675_v42 = vpack.c.bf16 %v1668_v49, %v1667_v38  ;;  %v1676_v63 = vpack.c.bf16 %v1674_v51, %v1673_v22 }
 0x48a   :  { %1729 = vmatprep.mubr.bf16.mxu0 %v1676_v63 }
 0x48b   :  { %2391 = dma.done.wait [#allocation4 + $0x1], 2048 }
 0x48c   :  { %2392 = vsyncadd [#allocation4 + $0x1], 4294965248  ;;  %v4012_v29 = vld [vmem:[#allocation12_spill] sm:$0xff]  ;;  %2364 = vset.pattern.permute.xlu0 %v4006_v16  ;;  %v4013_v53 = vld [vmem:[#allocation21_spill] sm:$0xff]  ;;  %v4014_v48 = vmov 0.0   ;;  %vm1758_vm4 = vcmask 130048  }
 0x48d   :  { %2089 = vmatpush3.bf16.msra.mxu0 %v4012_v29  ;;  %2133 = vmatprep.subr.bf16.mxu1 %v4014_v48  ;;  %v4015_v47 = vld [vmem:[#allocation13_spill] sm:$0xff]  ;;  %v4016_v50 = vld [vmem:[#allocation22_spill] sm:$0xff]  ;;  %v1740_v58 = vld [vmem:[%s3818_s11] sm:$0xff]  ;;  %s2494_s30 = smov [#allocation5]   ;;  %vm1967_vm5 = vcmask 74752  }
 0x48e   :  { %2090 = vmatprep.subr.bf16.mxu0 %v4013_v53  ;;  %2135 = vmatprep.mubr.msk.bf16.mxu1 %vm2396_vm0, %v4014_v48  ;;  %v4017_v9 = vld [vmem:[#allocation14_spill] sm:$0xff]  ;;  %v1741_v14 = vld [vmem:[%s3818_s11 + $0x8] sm:$0xff]  ;;  %v4018_v0 = vld [vmem:[#allocation23_spill] sm:$0xff] }
 0x48f   :  { %1744 = vperm.xlu0 %2364, %v1740_v58   ;;  %v4019_v33 = vld [vmem:[#allocation15_spill] sm:$0xff]  ;;  %v4020_v39 = vld [vmem:[#allocation24_spill] sm:$0xff]  ;;  %v4022_v28 = vld [vmem:[#allocation25_spill] sm:$0xff] }
 0x490   :  { %v4021_v4 = vld [vmem:[#allocation16_spill] sm:$0xff]  ;;  %v4023_v31 = vld [vmem:[#allocation17_spill] sm:$0xff]  ;;  %v4024_v15 = vld [vmem:[#allocation26_spill] sm:$0xff] }
 0x491   :  { %2091 = vmatpush3.bf16.msra.mxu0 %v4015_v47  ;;  %v4025_v54 = vld [vmem:[#allocation18_spill] sm:$0xff]  ;;  %v4026_v46 = vld [vmem:[#allocation27_spill] sm:$0xff]  ;;  %v4028_v27 = vld [vmem:[#allocation29_spill] sm:$0xff] }
 0x492   :  { %2092 = vmatprep.subr.bf16.mxu0 %v4016_v50  ;;  %v4027_v16 = vld [vmem:[#allocation19_spill] sm:$0xff]  ;;  %v2366_v1 = vld [vmem:[%s3823_s16 + $0x8] sm:$0xff]  }
 0x493   :  { %1749 = vperm.xlu0 %2364, %v1741_v14   ;;  %v1756_v36 = vld [vmem:[%s3819_s12] sm:$0xf] }
 0x494   :  { %v1802_v56 = vld [vmem:[%s3820_s13] sm:$0x1] }
 0x495   :  { %2093 = vmatpush3.bf16.msra.mxu0 %v4017_v9  ;;  %v2365_v6 = vld [vmem:[%s3823_s16] sm:$0xff]   ;;  %s1975_s16 = sshll.u32 %s2494_s30, 4  ;;  %s1976_s16 = int_to_ptr.vmem [resolvable:$true] %s1975_s16 }
 0x496   :  { %2094 = vmatprep.subr.bf16.mxu0 %v4018_v0  ;;  %v2074_v62 = vld [vmem:[%s3822_s15] ss:$0 sm:$0xff]  ;;  %s2367_s15 = scalar_lea.vmem %s1976_s16, 32  ;;  %p2372_p1 = scmp.lt.s32.totalorder %s1976_s16, %s1976_s16 }
 0x497   :  { %v2076_v49 = vld [vmem:[%s3824_s17] ss:$0 sm:$0xff]  ;;  %p2368_p0 = scmp.ne.s32.totalorder %s1976_s16, %s2367_s15  ;;  %p2373_p2 = scmp.lt.s32.totalorder %s2367_s15, %s2367_s15 }
 0x499   :  { %2095 = vmatpush3.bf16.msra.mxu0 %v4019_v33  ;;  %p2374_p3 = por %p2373_p2, %p2372_p1 }
 0x49a   :  { %2096 = vmatprep.subr.bf16.mxu0 %v4020_v39 }
 0x49b   :  { %p2375_p4 = pnand %p2374_p3, %p2368_p0 }
 0x49d   :  { %2097 = vmatpush3.bf16.msra.mxu0 %v4021_v4 }
 0x49e   :  { %2098 = vmatprep.subr.bf16.mxu0 %v4022_v28 }
 0x4a1   :  { %2099 = vmatpush3.bf16.msra.mxu0 %v4023_v31 }
 0x4a2   :  { %2100 = vmatprep.subr.bf16.mxu0 %v4024_v15 }
 0x4a5   :  { %2101 = vmatpush3.bf16.msra.mxu0 %v4025_v54 }
 0x4a6   :  { %2102 = vmatprep.subr.bf16.mxu0 %v4026_v46 }
 0x4a9   :  { %2103 = vmatpush3.bf16.msra.mxu0 %v4027_v16 }
 0x4aa   :  { %2139 = vmatprep.subr.bf16.mxu0 %v4014_v48 }
 0x4ac   :  { %1730 = vmatmul.mubr.bf16.vlgmr.msra.gmra.mrb[4].mxu0 %v1675_v42 }
 0x4ad   :  { %2141 = vmatprep.mubr.msk.bf16.mxu0 %vm2396_vm0, %v4014_v48 }
 0x50e   :  { %v1745_v59 = vpop.permute.xlu0 %1744 }
 0x512   :  { %v1750_v20 = vpop.permute.xlu0 %1749 }
 0x57f   :  { %v2104_v8 = vpop.f32.mrb[4].mxu0 }
 0x580   :  { %v2105_v13 = vpop.f32.mrb[5].mxu0 }
 0x581   :  { %v2106_v3 = vadd.f32 %v2105_v13, %v2104_v8  ;;  %v2107_v37 = vpop.f32.mrb[6].mxu0 }
 0x582   :  { %v2108_v35 = vpop.f32.mrb[7].mxu0 }
 0x583   :  { %v1738_v52 = vmul.f32 %v2106_v3, %v3713_v32  ;;  %v2109_v45 = vadd.f32 %v2108_v35, %v2107_v37 }
 0x585   :  { %v1752_v60 = vadd.f32 %v1745_v59, %v1738_v52  ;;  %v1739_v34 = vmul.f32 %v2109_v45, %v3710_v43  ;;  %v1845_v43 = vld [vmem:[%s3821_s14] sm:$0xf] }
 0x586   :  { %v1857_v32 = vsel %vm420_vm3, %v1845_v43, 0 }
 0x587   :  { %v1753_v26 = vadd.f32 %v1750_v20, %v1739_v34  ;;  %v1754_v19 = vmax.f32 %v1752_v60, 0.0 }
 0x589   :  { %v1755_v57 = vmax.f32 %v1753_v26, 0.0 }
 0x58b   :  { %v1757_v30 = vpack.c.bf16 %v1755_v57, %v1754_v19 }
 0x58d   :  { %2134 = vmatpush3.bf16.msra.mxu1 %v1757_v30 }
 0x58e   :  { %2145 = vmatprep.subr.bf16.mxu1 %v4014_v48 }
 0x590   :  { %2136 = vmatmul.mubr.msk.bf16.vlgmr.msra.gmra.mrb[8].mxu1 %vm1758_vm4, %v1756_v36 }
 0x591   :  { %2147 = vmatprep.mubr.msk.bf16.mxu1 %vm2396_vm0, %v4014_v48  ;;  %2146 = vmatpush3.bf16.msra.mxu1 %v1857_v32 }
 0x663   :  { %v1796_v44 = vpop.f32.mrb[8].mxu1 }
 0x664   :  { %v1797_v41 = vadd.f32 %v1796_v44, %v4028_v27  ;;  %v2137_v10 = vpop.f32.mrb[9].mxu1 }
 0x665   :  { %v1799_v61 = vpop.f32.mrb[10].mxu1 }
 0x666   :  { %v1803_v25 = vpack.c.bf16 %v1797_v41, %v1797_v41  ;;  %v2138_v11 = vpop.f32.mrb[11].mxu1 }
 0x668   :  { %2140 = vmatpush3.bf16.xpose.msra.mxu0 %v1803_v25 }
 0x669   :  { %2151 = vmatprep.subr.bf16.mxu0 %v4014_v48 }
 0x66f   :  { %2142 = vmatmul.mubr.bf16.vlgmr.msra.gmra.mrb[8].mxu0 %v1802_v56 }
 0x670   :  { %2155 = vmatprep.mubr.msk.bf16.mxu0 %vm2396_vm0, %v4014_v48  ;;  %2152 = vmatpush3.bf16.msra.mxu0 %v2365_v6 }
 0x671   :  { %2153 = vmatprep.subr.bf16.mxu0 %v4014_v48 }
 0x674   :  { %2154 = vmatpush3.bf16.msra.mxu0 %v2366_v1 }
 0x742   :  { %v1838_v40 = vpop.f32.mrb[8].mxu0 }
 0x743   :  { %v1844_v21 = vpack.c.bf16 %v1838_v40, %v1838_v40  ;;  %v2143_v24 = vpop.f32.mrb[9].mxu0 }
 0x744   :  { %v1841_v18 = vpop.f32.mrb[10].mxu0 }
 0x745   :  { %v2144_v55 = vpop.f32.mrb[11].mxu0  ;;  %2148 = vmatmul.mubr.msk.bf16.vlgmr.msra.gmra.mrb[12].mxu1 %vm413_vm2, %v1844_v21 }
 0x818   :  { %v1893_v12 = vpop.f32.mrb[12].mxu1 }
 0x819   :  { %v1894_v2 = vadd.f32 %v2074_v62, %v1893_v12  ;;  %v2149_v5 = vpop.f32.mrb[13].mxu1 }
 0x81a   :  { %v1896_v38 = vpop.f32.mrb[14].mxu1 }
 0x81b   :  { %v1899_v22 = vmax.f32 %v1894_v2, 0.0  ;;  %v2150_v17 = vpop.f32.mrb[15].mxu1 }
 0x81d   :  { %v1900_v23 = vpack.c.bf16 %v1899_v22, %v1899_v22 }
 0x81f   :  { %2156 = vmatmul.mubr.msk.bf16.vlgmr.msra.gmra.mrb[12].mxu0 %vm329_vm1, %v1900_v23 }
 0x8f2   :  { %v1961_v51 = vpop.f32.mrb[12].mxu0 }
 0x8f3   :  { %v1962_v42 = vadd.f32 %v2076_v49, %v1961_v51  ;;  %v2157_v63 = vpop.f32.mrb[13].mxu0 }
 0x8f4   :  { %v1964_v7 = vpop.f32.mrb[14].mxu0 }
 0x8f5   :  { %v2158_v29 = vpop.f32.mrb[15].mxu0  ;;  %1968 = vst.msk [vmem:[#allocation5] sm:$0x3] %vm1967_vm5, %v1962_v42 }
 0x8f6   :  { %2378 = shalt.err (!%p2375_p4)
}
 0x8f7   :  { %s2379_s17 = scalar_lea.hbm %s3825_s18, 32 }
 0x8f8   :  { %p2380_p5 = scmp.ne.s32.totalorder %s3825_s18, %s2379_s17  ;;  %p2383_p6 = scmp.lt.u32.totalorder %s2379_s17, %s3825_s18 }
 0x8fa   :  { %p2385_p7 = pnand %p2383_p6, %p2380_p5 }
 0x8fc   :  { %2388 = shalt.err (!%p2385_p7)
}
 0x8fd   :  { %1978 = dma.vmem_to_hbm [thread:$0]  %s1976_s16, 32, %s3825_s18, [#allocation6]  }
 0x8fe   :  { %2393 = dma.done.wait [#allocation6], 32  }
 0x8ff   :  { %2394 = vsyncadd [#allocation6], 4294967264 }
 0x900   :  { %1982 = vsyncpa [#allocation6], 1 }
 0x901   :  { %1983 = vsyncmov [#allocation4] }
 0x904   :  { %s1984_s8 = vpop.sfrf %1983 }
 0x905   :  { %p2080_p8 = scmp.ne.s32.totalorder %s1984_s8, 0 }
 0x907   :  { %1988 = shalt.err (%p2080_p8)  }
 0x908   :  { %1990 = vsyncmov [#allocation4 + $0x1] }
 0x90b   :  { %s1991_s9 = vpop.sfrf %1990 }
 0x90c   :  { %p2081_p9 = scmp.ne.s32.totalorder %s1991_s9, 0 }
 0x90e   :  { %1995 = shalt.err (%p2081_p9)  }

</bundles_post_ra>
